<compile_context>
chip_gen: v7x
topology: tpu7x:2x2x1
jax: 0.10.0
libtpu: 0.0.40
codegen_flags: <defaults>
</compile_context>

<pallas_src>
import functools

import jax
import jax.numpy as jnp
from jax.experimental import pallas as pl
from jax.experimental.pallas import tpu as pltpu


# ------------------------------ small helpers --------------------------------

def _round_up(n, m):
    return ((n + m - 1) // m) * m


def _sigmoid(x):
    # exp lands on the EUP slot; keep the rest on the VPU.
    return 1.0 / (1.0 + jnp.exp(-x))


def _lstm_gates(z, h):
    """z: (Bblk, 4H) f32 pre-activation, PyTorch gate order (i, f, g, o)."""
    s = _sigmoid(z)                        # one full-width sigmoid
    g = jnp.tanh(z[:, 2 * h:3 * h])        # tanh only on the g lanes
    return s[:, 0:h], s[:, h:2 * h], g, s[:, 3 * h:4 * h]


def _conv_relu_pool(x2, l_cur, b_blk, w0_ref, w1_ref, w2_ref, b_ref):
    """Conv1d(k=3, stride=1, padding=1) + bias + ReLU + MaxPool1d(2, 2), batched.

    x2: (l_cur*b_blk, Cin) f32, length-major rows (row = l*b_blk + b).
    w{0,1,2}_ref: (Cin, Cout) per-tap weights (bf16); b_ref: (1, Cout) f32.
    Returns ((l_cur//2)*b_blk, Cout) f32 with the same row convention.
    """
    cin = x2.shape[1]
    cout = b_ref.shape[1]
    mx = w0_ref.dtype
    zrow = jnp.zeros((b_blk, cin), jnp.float32)
    # Length-major layout: the shifted taps are whole row-block moves
    # (tile-aligned concatenate); the zero row-blocks ARE the padding=1 rows.
    x_prev = jnp.concatenate([zrow, x2[:-b_blk, :]], axis=0)   # x[l-1]
    x_next = jnp.concatenate([x2[b_blk:, :], zrow], axis=0)    # x[l+1]
    # 3 accumulated MXU dots (K = Cin), M = l_cur*b_blk rows.
    y = (jnp.dot(x_prev.astype(mx), w0_ref[...], preferred_element_type=jnp.float32)
         + jnp.dot(x2.astype(mx), w1_ref[...], preferred_element_type=jnp.float32)
         + jnp.dot(x_next.astype(mx), w2_ref[...], preferred_element_type=jnp.float32)
         + b_ref[...])
    y = jnp.maximum(y, 0.0)                                    # ReLU (f32, VPU)
    l_out = l_cur // 2
    y3 = y.reshape(l_out, 2 * b_blk, cout)                     # tile renumbering only
    pooled = jnp.maximum(y3[:, :b_blk, :], y3[:, b_blk:, :])   # MaxPool1d(2,2), VPU
    return pooled.reshape(l_out * b_blk, cout)


# ------------------------------- fused kernel --------------------------------

def _fused_forward_kernel(x_ref,
                          w1k0_ref, w1k1_ref, w1k2_ref, b1_ref,
                          w2k0_ref, w2k1_ref, w2k2_ref, b2_ref,
                          fc1w_ref, fc1b_ref,
                          wih0_ref, whh0_ref, lb0_ref,
                          wih1_ref, whh1_ref, lb1_ref,
                          fc2wc_ref, fc2wr_ref, fc2b_ref,
                          out_ref):
    L, b_blk, cin = x_ref.shape
    mx = w1k0_ref.dtype                                        # MXU operand dtype (bf16)

    # ---- CNN trunk (all intermediates stay as VMEM-backed values) ----
    x2 = x_ref[...].reshape(L * b_blk, cin)                    # leading-merge, cheap
    p1 = _conv_relu_pool(x2, L, b_blk, w1k0_ref, w1k1_ref, w1k2_ref, b1_ref)
    p2 = _conv_relu_pool(p1, L // 2, b_blk, w2k0_ref, w2k1_ref, w2k2_ref, b2_ref)
    T = L // 4
    C = p2.shape[1]                                            # 64

    # ---- fc1 over the channels-last flatten: T accumulated (Bblk,64)x(64,128)
    # dots against the pre-permuted fc1 weight (no scratch flatten buffer). ----
    fc1w = fc1w_ref[...]                                       # (T*C, 128) bf16, hoisted
    acc = jnp.zeros((b_blk, fc1b_ref.shape[1]), jnp.float32)
    for t in range(T):
        chunk = p2[t * b_blk:(t + 1) * b_blk, :].astype(mx)    # aligned value slice
        acc = acc + jnp.dot(chunk, fc1w[t * C:(t + 1) * C, :],
                            preferred_element_type=jnp.float32)
    cnn_feat = jnp.maximum(acc + fc1b_ref[...], 0.0)           # (Bblk, 128)

    # ---- 2-layer LSTM over p2 (batch_first; gate order i,f,g,o) ----
    H = whh0_ref.shape[0]                                      # 32
    whh0 = whh0_ref[...]                                       # hoisted weight loads
    wih1 = wih1_ref[...]
    whh1 = whh1_ref[...]
    lb1 = lb1_ref[...]
    # Layer-0 input projection for all timesteps and all batch rows: one dot.
    xproj0 = (jnp.dot(p2.astype(mx), wih0_ref[...],
                      preferred_element_type=jnp.float32) + lb0_ref[...])   # (T*Bblk, 4H)

    h1 = jnp.zeros((b_blk, H), jnp.float32)
    c1 = jnp.zeros((b_blk, H), jnp.float32)
    h2 = jnp.zeros((b_blk, H), jnp.float32)
    c2 = jnp.zeros((b_blk, H), jnp.float32)
    # TODO(synk): for large seq_len (T >> 8) switch to lax.fori_loop(unroll=True)
    # to bound live ranges; at T = L//4 = 8 the static unroll is fine.
    for t in range(T):
        z0 = (xproj0[t * b_blk:(t + 1) * b_blk, :]
              + jnp.dot(h1.astype(mx), whh0, preferred_element_type=jnp.float32))
        i, f, g, o = _lstm_gates(z0, H)
        c1 = f * c1 + i * g
        h1 = o * jnp.tanh(c1)

        z1 = (jnp.dot(h1.astype(mx), wih1, preferred_element_type=jnp.float32)
              + jnp.dot(h2.astype(mx), whh1, preferred_element_type=jnp.float32)
              + lb1)
        i, f, g, o = _lstm_gates(z1, H)
        c2 = f * c2 + i * g
        h2 = o * jnp.tanh(c2)

    # ---- fc2([cnn_feat | h2]) as two dots (no concat materialised) ----
    out = (jnp.dot(cnn_feat.astype(mx), fc2wc_ref[...], preferred_element_type=jnp.float32)
           + jnp.dot(h2.astype(mx), fc2wr_ref[...], preferred_element_type=jnp.float32)
           + fc2b_ref[...])
    out_ref[...] = out                                         # (Bblk, 128) full-tile store


# ------------------------------ pallas_call wrapper ---------------------------

def fused_forward(x_lbc, p, *, block_batch=128):
    """x_lbc: (L, B, Cin) f32 length-major input; p: prepared params.

    Returns (Bpad, ncpad) f32 logits (lane-padded; caller slices).
    """
    L, B, cin = x_lbc.shape
    ncpad = p["fc2_b"].shape[1]

    b_blk = min(block_batch, _round_up(B, 8))                  # multiple of 8
    b_pad = _round_up(B, b_blk)
    if b_pad != B:
        x_lbc = jnp.pad(x_lbc, ((0, 0), (0, b_pad - B), (0, 0)))

    weights = (p["w1k0"], p["w1k1"], p["w1k2"], p["b1"],
               p["w2k0"], p["w2k1"], p["w2k2"], p["b2"],
               p["fc1_w"], p["fc1_b"],
               p["wih0"], p["whh0"], p["lb0"],
               p["wih1"], p["whh1"], p["lb1"],
               p["fc2_w_cnn"], p["fc2_w_rnn"], p["fc2_b"])

    in_specs = ([pl.BlockSpec((L, b_blk, cin), lambda i: (0, i, 0))]
                + [pl.BlockSpec(w.shape, lambda i: (0, 0)) for w in weights])

    out = pl.pallas_call(
        _fused_forward_kernel,
        out_shape=jax.ShapeDtypeStruct((b_pad, ncpad), jnp.float32),
        grid=(b_pad // b_blk,),
        in_specs=in_specs,
        out_specs=pl.BlockSpec((b_blk, ncpad), lambda i: (i, 0)),
        compiler_params=pltpu.CompilerParams(
            dimension_semantics=("parallel",),                 # batch blocks across TCs
            vmem_limit_bytes=64 * 1024 * 1024),
    )(x_lbc, *weights)
    return out


def neural_network_forward(x_ncl, prepped, *, num_classes, block_batch=128):
    """x_ncl: (B, 8, L) float32, PyTorch Conv1d NCW layout."""
    B, _, L = x_ncl.shape
    assert L % 4 == 0, "kernel requires seq_len % 4 == 0 (even pooling)"
    x = jnp.transpose(x_ncl, (2, 0, 1)).astype(jnp.float32)    # -> (L, B, Cin)
    logits_padded = fused_forward(x, prepped, block_batch=block_batch)
    return logits_padded[:B, :num_classes]


# ------------------------------- parameter prep -------------------------------

def init_params(key, num_classes, seq_len, in_channels=8):
    """Deterministic synthetic parameters in PyTorch shapes/conventions."""
    l4 = seq_len // 4
    ks = jax.random.split(key, 16)

    def rnd(i, shape, scale=0.1):
        return scale * jax.random.normal(ks[i], shape, dtype=jnp.float32)

    return {
        "conv1_w": rnd(0, (64, in_channels, 3)), "conv1_b": rnd(1, (64,)),
        "conv2_w": rnd(2, (64, 64, 3)),          "conv2_b": rnd(3, (64,)),
        "fc1_w": rnd(4, (128, 64 * l4)),         "fc1_b": rnd(5, (128,)),
        "w_ih_l0": rnd(6, (128, 64)),  "w_hh_l0": rnd(7, (128, 32)),
        "b_ih_l0": rnd(8, (128,)),     "b_hh_l0": rnd(9, (128,)),
        "w_ih_l1": rnd(10, (128, 32)), "w_hh_l1": rnd(11, (128, 32)),
        "b_ih_l1": rnd(12, (128,)),    "b_hh_l1": rnd(13, (128,)),
        "fc2_w": rnd(14, (num_classes, 128 + 32)), "fc2_b": rnd(15, (num_classes,)),
    }


def prepare_params(params, mxu_dtype=jnp.bfloat16):
    """One-time conversion from PyTorch layouts to kernel-friendly layouts.

    Matmul weights are cast to bf16 (MXU operands, f32 accumulation); biases
    stay f32 since they are added after accumulation on the VPU.
    """
    conv1_w = params["conv1_w"]                  # (64, Cin, 3)
    conv2_w = params["conv2_w"]                  # (64, 64, 3)
    c2out = conv2_w.shape[0]                     # 64
    fc1_w = params["fc1_w"]                      # (128, 64*T), columns = c*T + t
    fc1_out, fc1_in = fc1_w.shape
    T = fc1_in // c2out
    fc2_w = params["fc2_w"]                      # (num_classes, 128 + H)
    nc = fc2_w.shape[0]
    ncpad = _round_up(nc, 128)                   # lane-dense output width

    def tap(w, k):                               # (Cout, Cin, 3) -> (Cin, Cout) for tap k
        return jnp.transpose(w[:, :, k]).astype(mxu_dtype)

    # Permute fc1 columns once so fc1 consumes the channels-last flatten (t, c).
    fc1_w_prepped = jnp.transpose(fc1_w.reshape(fc1_out, c2out, T),
                                  (2, 1, 0)).reshape(fc1_in, fc1_out)

    fc2_w_t = jnp.transpose(fc2_w)               # (128 + H, nc)
    colpad = ((0, 0), (0, ncpad - nc))
    f32 = jnp.float32
    return {
        "w1k0": tap(conv1_w, 0), "w1k1": tap(conv1_w, 1), "w1k2": tap(conv1_w, 2),
        "b1": params["conv1_b"].reshape(1, -1).astype(f32),
        "w2k0": tap(conv2_w, 0), "w2k1": tap(conv2_w, 1), "w2k2": tap(conv2_w, 2),
        "b2": params["conv2_b"].reshape(1, -1).astype(f32),
        "fc1_w": fc1_w_prepped.astype(mxu_dtype),
        "fc1_b": params["fc1_b"].reshape(1, -1).astype(f32),
        "wih0": jnp.transpose(params["w_ih_l0"]).astype(mxu_dtype),
        "whh0": jnp.transpose(params["w_hh_l0"]).astype(mxu_dtype),
        "lb0": (params["b_ih_l0"] + params["b_hh_l0"]).reshape(1, -1).astype(f32),
        "wih1": jnp.transpose(params["w_ih_l1"]).astype(mxu_dtype),
        "whh1": jnp.transpose(params["w_hh_l1"]).astype(mxu_dtype),
        "lb1": (params["b_ih_l1"] + params["b_hh_l1"]).reshape(1, -1).astype(f32),
        "fc2_w_cnn": jnp.pad(fc2_w_t[:fc1_out, :], colpad).astype(mxu_dtype),
        "fc2_w_rnn": jnp.pad(fc2_w_t[fc1_out:, :], colpad).astype(mxu_dtype),
        "fc2_b": jnp.pad(params["fc2_b"], (0, ncpad - nc)).reshape(1, -1).astype(f32),
    }


# ------------------------------------ main -------------------------------------

if __name__ == "__main__":
    num_classes = 10
    seq_len = 32       # small, consistent with the module (seq_len // 4 == 8)
    batch = 2

    key = jax.random.PRNGKey(0)
    kx, kp = jax.random.split(key)
    x = jax.random.normal(kx, (batch, 8, seq_len), dtype=jnp.float32)
    params = init_params(kp, num_classes, seq_len)
    prepped = prepare_params(params)

    fwd = jax.jit(functools.partial(neural_network_forward, num_classes=num_classes))
    out = jax.block_until_ready(fwd(x, prepped))

    assert out.shape == (batch, num_classes)
    assert bool(jnp.all(jnp.isfinite(out)))
    print("KERNEL_OK")
</pallas_src>

<mosaic_0001>
module attributes {stable_mosaic.version = 11 : i64} {
  func.func @_fused_forward_kernel(%arg0: i32, %arg1: memref<32x8x8xf32, #tpu.memory_space<vmem>>, %arg2: memref<8x64xbf16, #tpu.memory_space<vmem>>, %arg3: memref<8x64xbf16, #tpu.memory_space<vmem>>, %arg4: memref<8x64xbf16, #tpu.memory_space<vmem>>, %arg5: memref<1x64xf32, #tpu.memory_space<vmem>>, %arg6: memref<64x64xbf16, #tpu.memory_space<vmem>>, %arg7: memref<64x64xbf16, #tpu.memory_space<vmem>>, %arg8: memref<64x64xbf16, #tpu.memory_space<vmem>>, %arg9: memref<1x64xf32, #tpu.memory_space<vmem>>, %arg10: memref<512x128xbf16, #tpu.memory_space<vmem>>, %arg11: memref<1x128xf32, #tpu.memory_space<vmem>>, %arg12: memref<64x128xbf16, #tpu.memory_space<vmem>>, %arg13: memref<32x128xbf16, #tpu.memory_space<vmem>>, %arg14: memref<1x128xf32, #tpu.memory_space<vmem>>, %arg15: memref<32x128xbf16, #tpu.memory_space<vmem>>, %arg16: memref<32x128xbf16, #tpu.memory_space<vmem>>, %arg17: memref<1x128xf32, #tpu.memory_space<vmem>>, %arg18: memref<128x128xbf16, #tpu.memory_space<vmem>>, %arg19: memref<32x128xbf16, #tpu.memory_space<vmem>>, %arg20: memref<1x128xf32, #tpu.memory_space<vmem>>, %arg21: memref<8x128xf32, #tpu.memory_space<vmem>>) attributes {dimension_semantics = [#tpu.dimension_semantics<parallel>], iteration_bounds = array<i64: 1>, scalar_prefetch = 0 : i64, scratch_operands = 0 : i64, tpu.core_type = #tpu.core_type<tc>, window_params = [{transform_indices = @transform_0, window_bounds = array<i64: 32, 8, 8>}, {pipeline_mode = #tpu.pipeline_mode<synchronous>, transform_indices = @transform_1, window_bounds = array<i64: 8, 64>}, {pipeline_mode = #tpu.pipeline_mode<synchronous>, transform_indices = @transform_2, window_bounds = array<i64: 8, 64>}, {pipeline_mode = #tpu.pipeline_mode<synchronous>, transform_indices = @transform_3, window_bounds = array<i64: 8, 64>}, {pipeline_mode = #tpu.pipeline_mode<synchronous>, transform_indices = @transform_4, window_bounds = array<i64: 1, 64>}, {pipeline_mode = #tpu.pipeline_mode<synchronous>, transform_indices = @transform_5, window_bounds = array<i64: 64, 64>}, {pipeline_mode = #tpu.pipeline_mode<synchronous>, transform_indices = @transform_6, window_bounds = array<i64: 64, 64>}, {pipeline_mode = #tpu.pipeline_mode<synchronous>, transform_indices = @transform_7, window_bounds = array<i64: 64, 64>}, {pipeline_mode = #tpu.pipeline_mode<synchronous>, transform_indices = @transform_8, window_bounds = array<i64: 1, 64>}, {pipeline_mode = #tpu.pipeline_mode<synchronous>, transform_indices = @transform_9, window_bounds = array<i64: 512, 128>}, {pipeline_mode = #tpu.pipeline_mode<synchronous>, transform_indices = @transform_10, window_bounds = array<i64: 1, 128>}, {pipeline_mode = #tpu.pipeline_mode<synchronous>, transform_indices = @transform_11, window_bounds = array<i64: 64, 128>}, {pipeline_mode = #tpu.pipeline_mode<synchronous>, transform_indices = @transform_12, window_bounds = array<i64: 32, 128>}, {pipeline_mode = #tpu.pipeline_mode<synchronous>, transform_indices = @transform_13, window_bounds = array<i64: 1, 128>}, {pipeline_mode = #tpu.pipeline_mode<synchronous>, transform_indices = @transform_14, window_bounds = array<i64: 32, 128>}, {pipeline_mode = #tpu.pipeline_mode<synchronous>, transform_indices = @transform_15, window_bounds = array<i64: 32, 128>}, {pipeline_mode = #tpu.pipeline_mode<synchronous>, transform_indices = @transform_16, window_bounds = array<i64: 1, 128>}, {pipeline_mode = #tpu.pipeline_mode<synchronous>, transform_indices = @transform_17, window_bounds = array<i64: 128, 128>}, {pipeline_mode = #tpu.pipeline_mode<synchronous>, transform_indices = @transform_18, window_bounds = array<i64: 32, 128>}, {pipeline_mode = #tpu.pipeline_mode<synchronous>, transform_indices = @transform_19, window_bounds = array<i64: 1, 128>}, {transform_indices = @transform_20, window_bounds = array<i64: 8, 128>}]} {
    %c0 = arith.constant 0 : index
    %c0_0 = arith.constant 0 : index
    %c0_1 = arith.constant 0 : index
    %0 = vector.load %arg1[%c0, %c0_0, %c0_1] : memref<32x8x8xf32, #tpu.memory_space<vmem>>, vector<32x8x8xf32>
    %1 = vector.shape_cast %0 : vector<32x8x8xf32> to vector<256x8xf32>
    %cst = arith.constant 0.000000e+00 : f32
    %2 = vector.broadcast %cst : f32 to vector<8x8xf32>
    %3 = vector.extract_strided_slice %1 {offsets = [0, 0], sizes = [248, 8], strides = [1, 1]} : vector<256x8xf32> to vector<248x8xf32>
    %4 = tpu.concatenate %2, %3 in 0 : vector<8x8xf32>, vector<248x8xf32> -> vector<256x8xf32>
    %5 = vector.extract_strided_slice %1 {offsets = [8, 0], sizes = [248, 8], strides = [1, 1]} : vector<256x8xf32> to vector<248x8xf32>
    %6 = tpu.concatenate %5, %2 in 0 : vector<248x8xf32>, vector<8x8xf32> -> vector<256x8xf32>
    %7 = arith.truncf %4 : vector<256x8xf32> to vector<256x8xbf16>
    %c0_2 = arith.constant 0 : index
    %c0_3 = arith.constant 0 : index
    %8 = vector.load %arg2[%c0_2, %c0_3] : memref<8x64xbf16, #tpu.memory_space<vmem>>, vector<8x64xbf16>
    %cst_4 = arith.constant dense<0.000000e+00> : vector<256x64xf32>
    %9 = tpu.matmul %7, %8, %cst_4 {dimension_numbers = #tpu.dot_dimension_numbers<[1], [0], [0], [1], [0, 0, 1, 1], [], []>} : vector<256x8xbf16>, vector<8x64xbf16>, vector<256x64xf32> -> vector<256x64xf32>
    %10 = arith.truncf %1 : vector<256x8xf32> to vector<256x8xbf16>
    %c0_5 = arith.constant 0 : index
    %c0_6 = arith.constant 0 : index
    %11 = vector.load %arg3[%c0_5, %c0_6] : memref<8x64xbf16, #tpu.memory_space<vmem>>, vector<8x64xbf16>
    %cst_7 = arith.constant dense<0.000000e+00> : vector<256x64xf32>
    %12 = tpu.matmul %10, %11, %cst_7 {dimension_numbers = #tpu.dot_dimension_numbers<[1], [0], [0], [1], [0, 0, 1, 1], [], []>} : vector<256x8xbf16>, vector<8x64xbf16>, vector<256x64xf32> -> vector<256x64xf32>
    %13 = arith.addf %9, %12 : vector<256x64xf32>
    %14 = arith.truncf %6 : vector<256x8xf32> to vector<256x8xbf16>
    %c0_8 = arith.constant 0 : index
    %c0_9 = arith.constant 0 : index
    %15 = vector.load %arg4[%c0_8, %c0_9] : memref<8x64xbf16, #tpu.memory_space<vmem>>, vector<8x64xbf16>
    %cst_10 = arith.constant dense<0.000000e+00> : vector<256x64xf32>
    %16 = tpu.matmul %14, %15, %cst_10 {dimension_numbers = #tpu.dot_dimension_numbers<[1], [0], [0], [1], [0, 0, 1, 1], [], []>} : vector<256x8xbf16>, vector<8x64xbf16>, vector<256x64xf32> -> vector<256x64xf32>
    %17 = arith.addf %13, %16 : vector<256x64xf32>
    %c0_11 = arith.constant 0 : index
    %c0_12 = arith.constant 0 : index
    %18 = vector.load %arg5[%c0_11, %c0_12] : memref<1x64xf32, #tpu.memory_space<vmem>>, vector<1x64xf32>
    %19 = vector.broadcast %18 : vector<1x64xf32> to vector<256x64xf32>
    %20 = arith.addf %17, %19 : vector<256x64xf32>
    %cst_13 = arith.constant 0.000000e+00 : f32
    %21 = vector.broadcast %cst_13 : f32 to vector<256x64xf32>
    %22 = arith.maximumf %20, %21 : vector<256x64xf32>
    %23 = vector.shape_cast %22 : vector<256x64xf32> to vector<16x16x64xf32>
    %24 = vector.extract_strided_slice %23 {offsets = [0, 0, 0], sizes = [16, 8, 64], strides = [1, 1, 1]} : vector<16x16x64xf32> to vector<16x8x64xf32>
    %25 = vector.extract_strided_slice %23 {offsets = [0, 8, 0], sizes = [16, 8, 64], strides = [1, 1, 1]} : vector<16x16x64xf32> to vector<16x8x64xf32>
    %26 = arith.maximumf %24, %25 : vector<16x8x64xf32>
    %27 = vector.shape_cast %26 : vector<16x8x64xf32> to vector<128x64xf32>
    %cst_14 = arith.constant 0.000000e+00 : f32
    %28 = vector.broadcast %cst_14 : f32 to vector<8x64xf32>
    %29 = vector.extract_strided_slice %27 {offsets = [0, 0], sizes = [120, 64], strides = [1, 1]} : vector<128x64xf32> to vector<120x64xf32>
    %30 = tpu.concatenate %28, %29 in 0 : vector<8x64xf32>, vector<120x64xf32> -> vector<128x64xf32>
    %31 = vector.extract_strided_slice %27 {offsets = [8, 0], sizes = [120, 64], strides = [1, 1]} : vector<128x64xf32> to vector<120x64xf32>
    %32 = tpu.concatenate %31, %28 in 0 : vector<120x64xf32>, vector<8x64xf32> -> vector<128x64xf32>
    %33 = arith.truncf %30 : vector<128x64xf32> to vector<128x64xbf16>
    %c0_15 = arith.constant 0 : index
    %c0_16 = arith.constant 0 : index
    %34 = vector.load %arg6[%c0_15, %c0_16] : memref<64x64xbf16, #tpu.memory_space<vmem>>, vector<64x64xbf16>
    %cst_17 = arith.constant dense<0.000000e+00> : vector<128x64xf32>
    %35 = tpu.matmul %33, %34, %cst_17 {dimension_numbers = #tpu.dot_dimension_numbers<[1], [0], [0], [1], [0, 0, 1, 1], [], []>} : vector<128x64xbf16>, vector<64x64xbf16>, vector<128x64xf32> -> vector<128x64xf32>
    %36 = arith.truncf %27 : vector<128x64xf32> to vector<128x64xbf16>
    %c0_18 = arith.constant 0 : index
    %c0_19 = arith.constant 0 : index
    %37 = vector.load %arg7[%c0_18, %c0_19] : memref<64x64xbf16, #tpu.memory_space<vmem>>, vector<64x64xbf16>
    %cst_20 = arith.constant dense<0.000000e+00> : vector<128x64xf32>
    %38 = tpu.matmul %36, %37, %cst_20 {dimension_numbers = #tpu.dot_dimension_numbers<[1], [0], [0], [1], [0, 0, 1, 1], [], []>} : vector<128x64xbf16>, vector<64x64xbf16>, vector<128x64xf32> -> vector<128x64xf32>
    %39 = arith.addf %35, %38 : vector<128x64xf32>
    %40 = arith.truncf %32 : vector<128x64xf32> to vector<128x64xbf16>
    %c0_21 = arith.constant 0 : index
    %c0_22 = arith.constant 0 : index
    %41 = vector.load %arg8[%c0_21, %c0_22] : memref<64x64xbf16, #tpu.memory_space<vmem>>, vector<64x64xbf16>
    %cst_23 = arith.constant dense<0.000000e+00> : vector<128x64xf32>
    %42 = tpu.matmul %40, %41, %cst_23 {dimension_numbers = #tpu.dot_dimension_numbers<[1], [0], [0], [1], [0, 0, 1, 1], [], []>} : vector<128x64xbf16>, vector<64x64xbf16>, vector<128x64xf32> -> vector<128x64xf32>
    %43 = arith.addf %39, %42 : vector<128x64xf32>
    %c0_24 = arith.constant 0 : index
    %c0_25 = arith.constant 0 : index
    %44 = vector.load %arg9[%c0_24, %c0_25] : memref<1x64xf32, #tpu.memory_space<vmem>>, vector<1x64xf32>
    %45 = vector.broadcast %44 : vector<1x64xf32> to vector<128x64xf32>
    %46 = arith.addf %43, %45 : vector<128x64xf32>
    %cst_26 = arith.constant 0.000000e+00 : f32
    %47 = vector.broadcast %cst_26 : f32 to vector<128x64xf32>
    %48 = arith.maximumf %46, %47 : vector<128x64xf32>
    %49 = vector.shape_cast %48 : vector<128x64xf32> to vector<8x16x64xf32>
    %50 = vector.extract_strided_slice %49 {offsets = [0, 0, 0], sizes = [8, 8, 64], strides = [1, 1, 1]} : vector<8x16x64xf32> to vector<8x8x64xf32>
    %51 = vector.extract_strided_slice %49 {offsets = [0, 8, 0], sizes = [8, 8, 64], strides = [1, 1, 1]} : vector<8x16x64xf32> to vector<8x8x64xf32>
    %52 = arith.maximumf %50, %51 : vector<8x8x64xf32>
    %53 = vector.shape_cast %52 : vector<8x8x64xf32> to vector<64x64xf32>
    %c0_27 = arith.constant 0 : index
    %c0_28 = arith.constant 0 : index
    %54 = vector.load %arg10[%c0_27, %c0_28] : memref<512x128xbf16, #tpu.memory_space<vmem>>, vector<512x128xbf16>
    %cst_29 = arith.constant 0.000000e+00 : f32
    %55 = vector.broadcast %cst_29 : f32 to vector<8x128xf32>
    %56 = vector.extract_strided_slice %53 {offsets = [0, 0], sizes = [8, 64], strides = [1, 1]} : vector<64x64xf32> to vector<8x64xf32>
    %57 = arith.truncf %56 : vector<8x64xf32> to vector<8x64xbf16>
    %58 = vector.extract_strided_slice %54 {offsets = [0, 0], sizes = [64, 128], strides = [1, 1]} : vector<512x128xbf16> to vector<64x128xbf16>
    %cst_30 = arith.constant dense<0.000000e+00> : vector<8x128xf32>
    %59 = tpu.matmul %57, %58, %cst_30 {dimension_numbers = #tpu.dot_dimension_numbers<[1], [0], [0], [1], [0, 0, 1, 1], [], []>} : vector<8x64xbf16>, vector<64x128xbf16>, vector<8x128xf32> -> vector<8x128xf32>
    %60 = arith.addf %55, %59 : vector<8x128xf32>
    %61 = vector.extract_strided_slice %53 {offsets = [8, 0], sizes = [8, 64], strides = [1, 1]} : vector<64x64xf32> to vector<8x64xf32>
    %62 = arith.truncf %61 : vector<8x64xf32> to vector<8x64xbf16>
    %63 = vector.extract_strided_slice %54 {offsets = [64, 0], sizes = [64, 128], strides = [1, 1]} : vector<512x128xbf16> to vector<64x128xbf16>
    %cst_31 = arith.constant dense<0.000000e+00> : vector<8x128xf32>
    %64 = tpu.matmul %62, %63, %cst_31 {dimension_numbers = #tpu.dot_dimension_numbers<[1], [0], [0], [1], [0, 0, 1, 1], [], []>} : vector<8x64xbf16>, vector<64x128xbf16>, vector<8x128xf32> -> vector<8x128xf32>
    %65 = arith.addf %60, %64 : vector<8x128xf32>
    %66 = vector.extract_strided_slice %53 {offsets = [16, 0], sizes = [8, 64], strides = [1, 1]} : vector<64x64xf32> to vector<8x64xf32>
    %67 = arith.truncf %66 : vector<8x64xf32> to vector<8x64xbf16>
    %68 = vector.extract_strided_slice %54 {offsets = [128, 0], sizes = [64, 128], strides = [1, 1]} : vector<512x128xbf16> to vector<64x128xbf16>
    %cst_32 = arith.constant dense<0.000000e+00> : vector<8x128xf32>
    %69 = tpu.matmul %67, %68, %cst_32 {dimension_numbers = #tpu.dot_dimension_numbers<[1], [0], [0], [1], [0, 0, 1, 1], [], []>} : vector<8x64xbf16>, vector<64x128xbf16>, vector<8x128xf32> -> vector<8x128xf32>
    %70 = arith.addf %65, %69 : vector<8x128xf32>
    %71 = vector.extract_strided_slice %53 {offsets = [24, 0], sizes = [8, 64], strides = [1, 1]} : vector<64x64xf32> to vector<8x64xf32>
    %72 = arith.truncf %71 : vector<8x64xf32> to vector<8x64xbf16>
    %73 = vector.extract_strided_slice %54 {offsets = [192, 0], sizes = [64, 128], strides = [1, 1]} : vector<512x128xbf16> to vector<64x128xbf16>
    %cst_33 = arith.constant dense<0.000000e+00> : vector<8x128xf32>
    %74 = tpu.matmul %72, %73, %cst_33 {dimension_numbers = #tpu.dot_dimension_numbers<[1], [0], [0], [1], [0, 0, 1, 1], [], []>} : vector<8x64xbf16>, vector<64x128xbf16>, vector<8x128xf32> -> vector<8x128xf32>
    %75 = arith.addf %70, %74 : vector<8x128xf32>
    %76 = vector.extract_strided_slice %53 {offsets = [32, 0], sizes = [8, 64], strides = [1, 1]} : vector<64x64xf32> to vector<8x64xf32>
    %77 = arith.truncf %76 : vector<8x64xf32> to vector<8x64xbf16>
    %78 = vector.extract_strided_slice %54 {offsets = [256, 0], sizes = [64, 128], strides = [1, 1]} : vector<512x128xbf16> to vector<64x128xbf16>
    %cst_34 = arith.constant dense<0.000000e+00> : vector<8x128xf32>
    %79 = tpu.matmul %77, %78, %cst_34 {dimension_numbers = #tpu.dot_dimension_numbers<[1], [0], [0], [1], [0, 0, 1, 1], [], []>} : vector<8x64xbf16>, vector<64x128xbf16>, vector<8x128xf32> -> vector<8x128xf32>
    %80 = arith.addf %75, %79 : vector<8x128xf32>
    %81 = vector.extract_strided_slice %53 {offsets = [40, 0], sizes = [8, 64], strides = [1, 1]} : vector<64x64xf32> to vector<8x64xf32>
    %82 = arith.truncf %81 : vector<8x64xf32> to vector<8x64xbf16>
    %83 = vector.extract_strided_slice %54 {offsets = [320, 0], sizes = [64, 128], strides = [1, 1]} : vector<512x128xbf16> to vector<64x128xbf16>
    %cst_35 = arith.constant dense<0.000000e+00> : vector<8x128xf32>
    %84 = tpu.matmul %82, %83, %cst_35 {dimension_numbers = #tpu.dot_dimension_numbers<[1], [0], [0], [1], [0, 0, 1, 1], [], []>} : vector<8x64xbf16>, vector<64x128xbf16>, vector<8x128xf32> -> vector<8x128xf32>
    %85 = arith.addf %80, %84 : vector<8x128xf32>
    %86 = vector.extract_strided_slice %53 {offsets = [48, 0], sizes = [8, 64], strides = [1, 1]} : vector<64x64xf32> to vector<8x64xf32>
    %87 = arith.truncf %86 : vector<8x64xf32> to vector<8x64xbf16>
    %88 = vector.extract_strided_slice %54 {offsets = [384, 0], sizes = [64, 128], strides = [1, 1]} : vector<512x128xbf16> to vector<64x128xbf16>
    %cst_36 = arith.constant dense<0.000000e+00> : vector<8x128xf32>
    %89 = tpu.matmul %87, %88, %cst_36 {dimension_numbers = #tpu.dot_dimension_numbers<[1], [0], [0], [1], [0, 0, 1, 1], [], []>} : vector<8x64xbf16>, vector<64x128xbf16>, vector<8x128xf32> -> vector<8x128xf32>
    %90 = arith.addf %85, %89 : vector<8x128xf32>
    %91 = vector.extract_strided_slice %53 {offsets = [56, 0], sizes = [8, 64], strides = [1, 1]} : vector<64x64xf32> to vector<8x64xf32>
    %92 = arith.truncf %91 : vector<8x64xf32> to vector<8x64xbf16>
    %93 = vector.extract_strided_slice %54 {offsets = [448, 0], sizes = [64, 128], strides = [1, 1]} : vector<512x128xbf16> to vector<64x128xbf16>
    %cst_37 = arith.constant dense<0.000000e+00> : vector<8x128xf32>
    %94 = tpu.matmul %92, %93, %cst_37 {dimension_numbers = #tpu.dot_dimension_numbers<[1], [0], [0], [1], [0, 0, 1, 1], [], []>} : vector<8x64xbf16>, vector<64x128xbf16>, vector<8x128xf32> -> vector<8x128xf32>
    %95 = arith.addf %90, %94 : vector<8x128xf32>
    %c0_38 = arith.constant 0 : index
    %c0_39 = arith.constant 0 : index
    %96 = vector.load %arg11[%c0_38, %c0_39] : memref<1x128xf32, #tpu.memory_space<vmem>>, vector<1x128xf32>
    %97 = vector.broadcast %96 : vector<1x128xf32> to vector<8x128xf32>
    %98 = arith.addf %95, %97 : vector<8x128xf32>
    %cst_40 = arith.constant 0.000000e+00 : f32
    %99 = vector.broadcast %cst_40 : f32 to vector<8x128xf32>
    %100 = arith.maximumf %98, %99 : vector<8x128xf32>
    %c0_41 = arith.constant 0 : index
    %c0_42 = arith.constant 0 : index
    %101 = vector.load %arg13[%c0_41, %c0_42] : memref<32x128xbf16, #tpu.memory_space<vmem>>, vector<32x128xbf16>
    %c0_43 = arith.constant 0 : index
    %c0_44 = arith.constant 0 : index
    %102 = vector.load %arg15[%c0_43, %c0_44] : memref<32x128xbf16, #tpu.memory_space<vmem>>, vector<32x128xbf16>
    %c0_45 = arith.constant 0 : index
    %c0_46 = arith.constant 0 : index
    %103 = vector.load %arg16[%c0_45, %c0_46] : memref<32x128xbf16, #tpu.memory_space<vmem>>, vector<32x128xbf16>
    %c0_47 = arith.constant 0 : index
    %c0_48 = arith.constant 0 : index
    %104 = vector.load %arg17[%c0_47, %c0_48] : memref<1x128xf32, #tpu.memory_space<vmem>>, vector<1x128xf32>
    %105 = arith.truncf %53 : vector<64x64xf32> to vector<64x64xbf16>
    %c0_49 = arith.constant 0 : index
    %c0_50 = arith.constant 0 : index
    %106 = vector.load %arg12[%c0_49, %c0_50] : memref<64x128xbf16, #tpu.memory_space<vmem>>, vector<64x128xbf16>
    %cst_51 = arith.constant dense<0.000000e+00> : vector<64x128xf32>
    %107 = tpu.matmul %105, %106, %cst_51 {dimension_numbers = #tpu.dot_dimension_numbers<[1], [0], [0], [1], [0, 0, 1, 1], [], []>} : vector<64x64xbf16>, vector<64x128xbf16>, vector<64x128xf32> -> vector<64x128xf32>
    %c0_52 = arith.constant 0 : index
    %c0_53 = arith.constant 0 : index
    %108 = vector.load %arg14[%c0_52, %c0_53] : memref<1x128xf32, #tpu.memory_space<vmem>>, vector<1x128xf32>
    %109 = vector.broadcast %108 : vector<1x128xf32> to vector<64x128xf32>
    %110 = arith.addf %107, %109 : vector<64x128xf32>
    %cst_54 = arith.constant 0.000000e+00 : f32
    %111 = vector.broadcast %cst_54 : f32 to vector<8x32xf32>
    %cst_55 = arith.constant 0.000000e+00 : f32
    %112 = vector.broadcast %cst_55 : f32 to vector<8x32xf32>
    %cst_56 = arith.constant 0.000000e+00 : f32
    %113 = vector.broadcast %cst_56 : f32 to vector<8x32xf32>
    %cst_57 = arith.constant 0.000000e+00 : f32
    %114 = vector.broadcast %cst_57 : f32 to vector<8x32xf32>
    %115 = vector.extract_strided_slice %110 {offsets = [0, 0], sizes = [8, 128], strides = [1, 1]} : vector<64x128xf32> to vector<8x128xf32>
    %116 = arith.truncf %111 : vector<8x32xf32> to vector<8x32xbf16>
    %cst_58 = arith.constant dense<0.000000e+00> : vector<8x128xf32>
    %117 = tpu.matmul %116, %101, %cst_58 {dimension_numbers = #tpu.dot_dimension_numbers<[1], [0], [0], [1], [0, 0, 1, 1], [], []>} : vector<8x32xbf16>, vector<32x128xbf16>, vector<8x128xf32> -> vector<8x128xf32>
    %118 = arith.addf %115, %117 : vector<8x128xf32>
    %cst_59 = arith.constant 0.000000e+00 : f32
    %119 = vector.broadcast %cst_59 : f32 to vector<8x128xf32>
    %120 = arith.subf %119, %118 : vector<8x128xf32>
    %121 = math.exp %120 : vector<8x128xf32>
    %cst_60 = arith.constant 1.000000e+00 : f32
    %122 = vector.broadcast %cst_60 : f32 to vector<8x128xf32>
    %123 = arith.addf %122, %121 : vector<8x128xf32>
    %cst_61 = arith.constant 1.000000e+00 : f32
    %124 = vector.broadcast %cst_61 : f32 to vector<8x128xf32>
    %125 = arith.divf %124, %123 : vector<8x128xf32>
    %126 = vector.extract_strided_slice %118 {offsets = [0, 64], sizes = [8, 32], strides = [1, 1]} : vector<8x128xf32> to vector<8x32xf32>
    %127 = math.tanh %126 : vector<8x32xf32>
    %128 = vector.extract_strided_slice %125 {offsets = [0, 0], sizes = [8, 32], strides = [1, 1]} : vector<8x128xf32> to vector<8x32xf32>
    %129 = vector.extract_strided_slice %125 {offsets = [0, 32], sizes = [8, 32], strides = [1, 1]} : vector<8x128xf32> to vector<8x32xf32>
    %130 = vector.extract_strided_slice %125 {offsets = [0, 96], sizes = [8, 32], strides = [1, 1]} : vector<8x128xf32> to vector<8x32xf32>
    %131 = arith.mulf %129, %112 : vector<8x32xf32>
    %132 = arith.mulf %128, %127 : vector<8x32xf32>
    %133 = arith.addf %131, %132 : vector<8x32xf32>
    %134 = math.tanh %133 : vector<8x32xf32>
    %135 = arith.mulf %130, %134 : vector<8x32xf32>
    %136 = arith.truncf %135 : vector<8x32xf32> to vector<8x32xbf16>
    %cst_62 = arith.constant dense<0.000000e+00> : vector<8x128xf32>
    %137 = tpu.matmul %136, %102, %cst_62 {dimension_numbers = #tpu.dot_dimension_numbers<[1], [0], [0], [1], [0, 0, 1, 1], [], []>} : vector<8x32xbf16>, vector<32x128xbf16>, vector<8x128xf32> -> vector<8x128xf32>
    %138 = arith.truncf %113 : vector<8x32xf32> to vector<8x32xbf16>
    %cst_63 = arith.constant dense<0.000000e+00> : vector<8x128xf32>
    %139 = tpu.matmul %138, %103, %cst_63 {dimension_numbers = #tpu.dot_dimension_numbers<[1], [0], [0], [1], [0, 0, 1, 1], [], []>} : vector<8x32xbf16>, vector<32x128xbf16>, vector<8x128xf32> -> vector<8x128xf32>
    %140 = arith.addf %137, %139 : vector<8x128xf32>
    %141 = vector.broadcast %104 : vector<1x128xf32> to vector<8x128xf32>
    %142 = arith.addf %140, %141 : vector<8x128xf32>
    %cst_64 = arith.constant 0.000000e+00 : f32
    %143 = vector.broadcast %cst_64 : f32 to vector<8x128xf32>
    %144 = arith.subf %143, %142 : vector<8x128xf32>
    %145 = math.exp %144 : vector<8x128xf32>
    %cst_65 = arith.constant 1.000000e+00 : f32
    %146 = vector.broadcast %cst_65 : f32 to vector<8x128xf32>
    %147 = arith.addf %146, %145 : vector<8x128xf32>
    %cst_66 = arith.constant 1.000000e+00 : f32
    %148 = vector.broadcast %cst_66 : f32 to vector<8x128xf32>
    %149 = arith.divf %148, %147 : vector<8x128xf32>
    %150 = vector.extract_strided_slice %142 {offsets = [0, 64], sizes = [8, 32], strides = [1, 1]} : vector<8x128xf32> to vector<8x32xf32>
    %151 = math.tanh %150 : vector<8x32xf32>
    %152 = vector.extract_strided_slice %149 {offsets = [0, 0], sizes = [8, 32], strides = [1, 1]} : vector<8x128xf32> to vector<8x32xf32>
    %153 = vector.extract_strided_slice %149 {offsets = [0, 32], sizes = [8, 32], strides = [1, 1]} : vector<8x128xf32> to vector<8x32xf32>
    %154 = vector.extract_strided_slice %149 {offsets = [0, 96], sizes = [8, 32], strides = [1, 1]} : vector<8x128xf32> to vector<8x32xf32>
    %155 = arith.mulf %153, %114 : vector<8x32xf32>
    %156 = arith.mulf %152, %151 : vector<8x32xf32>
    %157 = arith.addf %155, %156 : vector<8x32xf32>
    %158 = math.tanh %157 : vector<8x32xf32>
    %159 = arith.mulf %154, %158 : vector<8x32xf32>
    %160 = vector.extract_strided_slice %110 {offsets = [8, 0], sizes = [8, 128], strides = [1, 1]} : vector<64x128xf32> to vector<8x128xf32>
    %161 = arith.truncf %135 : vector<8x32xf32> to vector<8x32xbf16>
    %cst_67 = arith.constant dense<0.000000e+00> : vector<8x128xf32>
    %162 = tpu.matmul %161, %101, %cst_67 {dimension_numbers = #tpu.dot_dimension_numbers<[1], [0], [0], [1], [0, 0, 1, 1], [], []>} : vector<8x32xbf16>, vector<32x128xbf16>, vector<8x128xf32> -> vector<8x128xf32>
    %163 = arith.addf %160, %162 : vector<8x128xf32>
    %cst_68 = arith.constant 0.000000e+00 : f32
    %164 = vector.broadcast %cst_68 : f32 to vector<8x128xf32>
    %165 = arith.subf %164, %163 : vector<8x128xf32>
    %166 = math.exp %165 : vector<8x128xf32>
    %cst_69 = arith.constant 1.000000e+00 : f32
    %167 = vector.broadcast %cst_69 : f32 to vector<8x128xf32>
    %168 = arith.addf %167, %166 : vector<8x128xf32>
    %cst_70 = arith.constant 1.000000e+00 : f32
    %169 = vector.broadcast %cst_70 : f32 to vector<8x128xf32>
    %170 = arith.divf %169, %168 : vector<8x128xf32>
    %171 = vector.extract_strided_slice %163 {offsets = [0, 64], sizes = [8, 32], strides = [1, 1]} : vector<8x128xf32> to vector<8x32xf32>
    %172 = math.tanh %171 : vector<8x32xf32>
    %173 = vector.extract_strided_slice %170 {offsets = [0, 0], sizes = [8, 32], strides = [1, 1]} : vector<8x128xf32> to vector<8x32xf32>
    %174 = vector.extract_strided_slice %170 {offsets = [0, 32], sizes = [8, 32], strides = [1, 1]} : vector<8x128xf32> to vector<8x32xf32>
    %175 = vector.extract_strided_slice %170 {offsets = [0, 96], sizes = [8, 32], strides = [1, 1]} : vector<8x128xf32> to vector<8x32xf32>
    %176 = arith.mulf %174, %133 : vector<8x32xf32>
    %177 = arith.mulf %173, %172 : vector<8x32xf32>
    %178 = arith.addf %176, %177 : vector<8x32xf32>
    %179 = math.tanh %178 : vector<8x32xf32>
    %180 = arith.mulf %175, %179 : vector<8x32xf32>
    %181 = arith.truncf %180 : vector<8x32xf32> to vector<8x32xbf16>
    %cst_71 = arith.constant dense<0.000000e+00> : vector<8x128xf32>
    %182 = tpu.matmul %181, %102, %cst_71 {dimension_numbers = #tpu.dot_dimension_numbers<[1], [0], [0], [1], [0, 0, 1, 1], [], []>} : vector<8x32xbf16>, vector<32x128xbf16>, vector<8x128xf32> -> vector<8x128xf32>
    %183 = arith.truncf %159 : vector<8x32xf32> to vector<8x32xbf16>
    %cst_72 = arith.constant dense<0.000000e+00> : vector<8x128xf32>
    %184 = tpu.matmul %183, %103, %cst_72 {dimension_numbers = #tpu.dot_dimension_numbers<[1], [0], [0], [1], [0, 0, 1, 1], [], []>} : vector<8x32xbf16>, vector<32x128xbf16>, vector<8x128xf32> -> vector<8x128xf32>
    %185 = arith.addf %182, %184 : vector<8x128xf32>
    %186 = vector.broadcast %104 : vector<1x128xf32> to vector<8x128xf32>
    %187 = arith.addf %185, %186 : vector<8x128xf32>
    %cst_73 = arith.constant 0.000000e+00 : f32
    %188 = vector.broadcast %cst_73 : f32 to vector<8x128xf32>
    %189 = arith.subf %188, %187 : vector<8x128xf32>
    %190 = math.exp %189 : vector<8x128xf32>
    %cst_74 = arith.constant 1.000000e+00 : f32
    %191 = vector.broadcast %cst_74 : f32 to vector<8x128xf32>
    %192 = arith.addf %191, %190 : vector<8x128xf32>
    %cst_75 = arith.constant 1.000000e+00 : f32
    %193 = vector.broadcast %cst_75 : f32 to vector<8x128xf32>
    %194 = arith.divf %193, %192 : vector<8x128xf32>
    %195 = vector.extract_strided_slice %187 {offsets = [0, 64], sizes = [8, 32], strides = [1, 1]} : vector<8x128xf32> to vector<8x32xf32>
    %196 = math.tanh %195 : vector<8x32xf32>
    %197 = vector.extract_strided_slice %194 {offsets = [0, 0], sizes = [8, 32], strides = [1, 1]} : vector<8x128xf32> to vector<8x32xf32>
    %198 = vector.extract_strided_slice %194 {offsets = [0, 32], sizes = [8, 32], strides = [1, 1]} : vector<8x128xf32> to vector<8x32xf32>
    %199 = vector.extract_strided_slice %194 {offsets = [0, 96], sizes = [8, 32], strides = [1, 1]} : vector<8x128xf32> to vector<8x32xf32>
    %200 = arith.mulf %198, %157 : vector<8x32xf32>
    %201 = arith.mulf %197, %196 : vector<8x32xf32>
    %202 = arith.addf %200, %201 : vector<8x32xf32>
    %203 = math.tanh %202 : vector<8x32xf32>
    %204 = arith.mulf %199, %203 : vector<8x32xf32>
    %205 = vector.extract_strided_slice %110 {offsets = [16, 0], sizes = [8, 128], strides = [1, 1]} : vector<64x128xf32> to vector<8x128xf32>
    %206 = arith.truncf %180 : vector<8x32xf32> to vector<8x32xbf16>
    %cst_76 = arith.constant dense<0.000000e+00> : vector<8x128xf32>
    %207 = tpu.matmul %206, %101, %cst_76 {dimension_numbers = #tpu.dot_dimension_numbers<[1], [0], [0], [1], [0, 0, 1, 1], [], []>} : vector<8x32xbf16>, vector<32x128xbf16>, vector<8x128xf32> -> vector<8x128xf32>
    %208 = arith.addf %205, %207 : vector<8x128xf32>
    %cst_77 = arith.constant 0.000000e+00 : f32
    %209 = vector.broadcast %cst_77 : f32 to vector<8x128xf32>
    %210 = arith.subf %209, %208 : vector<8x128xf32>
    %211 = math.exp %210 : vector<8x128xf32>
    %cst_78 = arith.constant 1.000000e+00 : f32
    %212 = vector.broadcast %cst_78 : f32 to vector<8x128xf32>
    %213 = arith.addf %212, %211 : vector<8x128xf32>
    %cst_79 = arith.constant 1.000000e+00 : f32
    %214 = vector.broadcast %cst_79 : f32 to vector<8x128xf32>
    %215 = arith.divf %214, %213 : vector<8x128xf32>
    %216 = vector.extract_strided_slice %208 {offsets = [0, 64], sizes = [8, 32], strides = [1, 1]} : vector<8x128xf32> to vector<8x32xf32>
    %217 = math.tanh %216 : vector<8x32xf32>
    %218 = vector.extract_strided_slice %215 {offsets = [0, 0], sizes = [8, 32], strides = [1, 1]} : vector<8x128xf32> to vector<8x32xf32>
    %219 = vector.extract_strided_slice %215 {offsets = [0, 32], sizes = [8, 32], strides = [1, 1]} : vector<8x128xf32> to vector<8x32xf32>
    %220 = vector.extract_strided_slice %215 {offsets = [0, 96], sizes = [8, 32], strides = [1, 1]} : vector<8x128xf32> to vector<8x32xf32>
    %221 = arith.mulf %219, %178 : vector<8x32xf32>
    %222 = arith.mulf %218, %217 : vector<8x32xf32>
    %223 = arith.addf %221, %222 : vector<8x32xf32>
    %224 = math.tanh %223 : vector<8x32xf32>
    %225 = arith.mulf %220, %224 : vector<8x32xf32>
    %226 = arith.truncf %225 : vector<8x32xf32> to vector<8x32xbf16>
    %cst_80 = arith.constant dense<0.000000e+00> : vector<8x128xf32>
    %227 = tpu.matmul %226, %102, %cst_80 {dimension_numbers = #tpu.dot_dimension_numbers<[1], [0], [0], [1], [0, 0, 1, 1], [], []>} : vector<8x32xbf16>, vector<32x128xbf16>, vector<8x128xf32> -> vector<8x128xf32>
    %228 = arith.truncf %204 : vector<8x32xf32> to vector<8x32xbf16>
    %cst_81 = arith.constant dense<0.000000e+00> : vector<8x128xf32>
    %229 = tpu.matmul %228, %103, %cst_81 {dimension_numbers = #tpu.dot_dimension_numbers<[1], [0], [0], [1], [0, 0, 1, 1], [], []>} : vector<8x32xbf16>, vector<32x128xbf16>, vector<8x128xf32> -> vector<8x128xf32>
    %230 = arith.addf %227, %229 : vector<8x128xf32>
    %231 = vector.broadcast %104 : vector<1x128xf32> to vector<8x128xf32>
    %232 = arith.addf %230, %231 : vector<8x128xf32>
    %cst_82 = arith.constant 0.000000e+00 : f32
    %233 = vector.broadcast %cst_82 : f32 to vector<8x128xf32>
    %234 = arith.subf %233, %232 : vector<8x128xf32>
    %235 = math.exp %234 : vector<8x128xf32>
    %cst_83 = arith.constant 1.000000e+00 : f32
    %236 = vector.broadcast %cst_83 : f32 to vector<8x128xf32>
    %237 = arith.addf %236, %235 : vector<8x128xf32>
    %cst_84 = arith.constant 1.000000e+00 : f32
    %238 = vector.broadcast %cst_84 : f32 to vector<8x128xf32>
    %239 = arith.divf %238, %237 : vector<8x128xf32>
    %240 = vector.extract_strided_slice %232 {offsets = [0, 64], sizes = [8, 32], strides = [1, 1]} : vector<8x128xf32> to vector<8x32xf32>
    %241 = math.tanh %240 : vector<8x32xf32>
    %242 = vector.extract_strided_slice %239 {offsets = [0, 0], sizes = [8, 32], strides = [1, 1]} : vector<8x128xf32> to vector<8x32xf32>
    %243 = vector.extract_strided_slice %239 {offsets = [0, 32], sizes = [8, 32], strides = [1, 1]} : vector<8x128xf32> to vector<8x32xf32>
    %244 = vector.extract_strided_slice %239 {offsets = [0, 96], sizes = [8, 32], strides = [1, 1]} : vector<8x128xf32> to vector<8x32xf32>
    %245 = arith.mulf %243, %202 : vector<8x32xf32>
    %246 = arith.mulf %242, %241 : vector<8x32xf32>
    %247 = arith.addf %245, %246 : vector<8x32xf32>
    %248 = math.tanh %247 : vector<8x32xf32>
    %249 = arith.mulf %244, %248 : vector<8x32xf32>
    %250 = vector.extract_strided_slice %110 {offsets = [24, 0], sizes = [8, 128], strides = [1, 1]} : vector<64x128xf32> to vector<8x128xf32>
    %251 = arith.truncf %225 : vector<8x32xf32> to vector<8x32xbf16>
    %cst_85 = arith.constant dense<0.000000e+00> : vector<8x128xf32>
    %252 = tpu.matmul %251, %101, %cst_85 {dimension_numbers = #tpu.dot_dimension_numbers<[1], [0], [0], [1], [0, 0, 1, 1], [], []>} : vector<8x32xbf16>, vector<32x128xbf16>, vector<8x128xf32> -> vector<8x128xf32>
    %253 = arith.addf %250, %252 : vector<8x128xf32>
    %cst_86 = arith.constant 0.000000e+00 : f32
    %254 = vector.broadcast %cst_86 : f32 to vector<8x128xf32>
    %255 = arith.subf %254, %253 : vector<8x128xf32>
    %256 = math.exp %255 : vector<8x128xf32>
    %cst_87 = arith.constant 1.000000e+00 : f32
    %257 = vector.broadcast %cst_87 : f32 to vector<8x128xf32>
    %258 = arith.addf %257, %256 : vector<8x128xf32>
    %cst_88 = arith.constant 1.000000e+00 : f32
    %259 = vector.broadcast %cst_88 : f32 to vector<8x128xf32>
    %260 = arith.divf %259, %258 : vector<8x128xf32>
    %261 = vector.extract_strided_slice %253 {offsets = [0, 64], sizes = [8, 32], strides = [1, 1]} : vector<8x128xf32> to vector<8x32xf32>
    %262 = math.tanh %261 : vector<8x32xf32>
    %263 = vector.extract_strided_slice %260 {offsets = [0, 0], sizes = [8, 32], strides = [1, 1]} : vector<8x128xf32> to vector<8x32xf32>
    %264 = vector.extract_strided_slice %260 {offsets = [0, 32], sizes = [8, 32], strides = [1, 1]} : vector<8x128xf32> to vector<8x32xf32>
    %265 = vector.extract_strided_slice %260 {offsets = [0, 96], sizes = [8, 32], strides = [1, 1]} : vector<8x128xf32> to vector<8x32xf32>
    %266 = arith.mulf %264, %223 : vector<8x32xf32>
    %267 = arith.mulf %263, %262 : vector<8x32xf32>
    %268 = arith.addf %266, %267 : vector<8x32xf32>
    %269 = math.tanh %268 : vector<8x32xf32>
    %270 = arith.mulf %265, %269 : vector<8x32xf32>
    %271 = arith.truncf %270 : vector<8x32xf32> to vector<8x32xbf16>
    %cst_89 = arith.constant dense<0.000000e+00> : vector<8x128xf32>
    %272 = tpu.matmul %271, %102, %cst_89 {dimension_numbers = #tpu.dot_dimension_numbers<[1], [0], [0], [1], [0, 0, 1, 1], [], []>} : vector<8x32xbf16>, vector<32x128xbf16>, vector<8x128xf32> -> vector<8x128xf32>
    %273 = arith.truncf %249 : vector<8x32xf32> to vector<8x32xbf16>
    %cst_90 = arith.constant dense<0.000000e+00> : vector<8x128xf32>
    %274 = tpu.matmul %273, %103, %cst_90 {dimension_numbers = #tpu.dot_dimension_numbers<[1], [0], [0], [1], [0, 0, 1, 1], [], []>} : vector<8x32xbf16>, vector<32x128xbf16>, vector<8x128xf32> -> vector<8x128xf32>
    %275 = arith.addf %272, %274 : vector<8x128xf32>
    %276 = vector.broadcast %104 : vector<1x128xf32> to vector<8x128xf32>
    %277 = arith.addf %275, %276 : vector<8x128xf32>
    %cst_91 = arith.constant 0.000000e+00 : f32
    %278 = vector.broadcast %cst_91 : f32 to vector<8x128xf32>
    %279 = arith.subf %278, %277 : vector<8x128xf32>
    %280 = math.exp %279 : vector<8x128xf32>
    %cst_92 = arith.constant 1.000000e+00 : f32
    %281 = vector.broadcast %cst_92 : f32 to vector<8x128xf32>
    %282 = arith.addf %281, %280 : vector<8x128xf32>
    %cst_93 = arith.constant 1.000000e+00 : f32
    %283 = vector.broadcast %cst_93 : f32 to vector<8x128xf32>
    %284 = arith.divf %283, %282 : vector<8x128xf32>
    %285 = vector.extract_strided_slice %277 {offsets = [0, 64], sizes = [8, 32], strides = [1, 1]} : vector<8x128xf32> to vector<8x32xf32>
    %286 = math.tanh %285 : vector<8x32xf32>
    %287 = vector.extract_strided_slice %284 {offsets = [0, 0], sizes = [8, 32], strides = [1, 1]} : vector<8x128xf32> to vector<8x32xf32>
    %288 = vector.extract_strided_slice %284 {offsets = [0, 32], sizes = [8, 32], strides = [1, 1]} : vector<8x128xf32> to vector<8x32xf32>
    %289 = vector.extract_strided_slice %284 {offsets = [0, 96], sizes = [8, 32], strides = [1, 1]} : vector<8x128xf32> to vector<8x32xf32>
    %290 = arith.mulf %288, %247 : vector<8x32xf32>
    %291 = arith.mulf %287, %286 : vector<8x32xf32>
    %292 = arith.addf %290, %291 : vector<8x32xf32>
    %293 = math.tanh %292 : vector<8x32xf32>
    %294 = arith.mulf %289, %293 : vector<8x32xf32>
    %295 = vector.extract_strided_slice %110 {offsets = [32, 0], sizes = [8, 128], strides = [1, 1]} : vector<64x128xf32> to vector<8x128xf32>
    %296 = arith.truncf %270 : vector<8x32xf32> to vector<8x32xbf16>
    %cst_94 = arith.constant dense<0.000000e+00> : vector<8x128xf32>
    %297 = tpu.matmul %296, %101, %cst_94 {dimension_numbers = #tpu.dot_dimension_numbers<[1], [0], [0], [1], [0, 0, 1, 1], [], []>} : vector<8x32xbf16>, vector<32x128xbf16>, vector<8x128xf32> -> vector<8x128xf32>
    %298 = arith.addf %295, %297 : vector<8x128xf32>
    %cst_95 = arith.constant 0.000000e+00 : f32
    %299 = vector.broadcast %cst_95 : f32 to vector<8x128xf32>
    %300 = arith.subf %299, %298 : vector<8x128xf32>
    %301 = math.exp %300 : vector<8x128xf32>
    %cst_96 = arith.constant 1.000000e+00 : f32
    %302 = vector.broadcast %cst_96 : f32 to vector<8x128xf32>
    %303 = arith.addf %302, %301 : vector<8x128xf32>
    %cst_97 = arith.constant 1.000000e+00 : f32
    %304 = vector.broadcast %cst_97 : f32 to vector<8x128xf32>
    %305 = arith.divf %304, %303 : vector<8x128xf32>
    %306 = vector.extract_strided_slice %298 {offsets = [0, 64], sizes = [8, 32], strides = [1, 1]} : vector<8x128xf32> to vector<8x32xf32>
    %307 = math.tanh %306 : vector<8x32xf32>
    %308 = vector.extract_strided_slice %305 {offsets = [0, 0], sizes = [8, 32], strides = [1, 1]} : vector<8x128xf32> to vector<8x32xf32>
    %309 = vector.extract_strided_slice %305 {offsets = [0, 32], sizes = [8, 32], strides = [1, 1]} : vector<8x128xf32> to vector<8x32xf32>
    %310 = vector.extract_strided_slice %305 {offsets = [0, 96], sizes = [8, 32], strides = [1, 1]} : vector<8x128xf32> to vector<8x32xf32>
    %311 = arith.mulf %309, %268 : vector<8x32xf32>
    %312 = arith.mulf %308, %307 : vector<8x32xf32>
    %313 = arith.addf %311, %312 : vector<8x32xf32>
    %314 = math.tanh %313 : vector<8x32xf32>
    %315 = arith.mulf %310, %314 : vector<8x32xf32>
    %316 = arith.truncf %315 : vector<8x32xf32> to vector<8x32xbf16>
    %cst_98 = arith.constant dense<0.000000e+00> : vector<8x128xf32>
    %317 = tpu.matmul %316, %102, %cst_98 {dimension_numbers = #tpu.dot_dimension_numbers<[1], [0], [0], [1], [0, 0, 1, 1], [], []>} : vector<8x32xbf16>, vector<32x128xbf16>, vector<8x128xf32> -> vector<8x128xf32>
    %318 = arith.truncf %294 : vector<8x32xf32> to vector<8x32xbf16>
    %cst_99 = arith.constant dense<0.000000e+00> : vector<8x128xf32>
    %319 = tpu.matmul %318, %103, %cst_99 {dimension_numbers = #tpu.dot_dimension_numbers<[1], [0], [0], [1], [0, 0, 1, 1], [], []>} : vector<8x32xbf16>, vector<32x128xbf16>, vector<8x128xf32> -> vector<8x128xf32>
    %320 = arith.addf %317, %319 : vector<8x128xf32>
    %321 = vector.broadcast %104 : vector<1x128xf32> to vector<8x128xf32>
    %322 = arith.addf %320, %321 : vector<8x128xf32>
    %cst_100 = arith.constant 0.000000e+00 : f32
    %323 = vector.broadcast %cst_100 : f32 to vector<8x128xf32>
    %324 = arith.subf %323, %322 : vector<8x128xf32>
    %325 = math.exp %324 : vector<8x128xf32>
    %cst_101 = arith.constant 1.000000e+00 : f32
    %326 = vector.broadcast %cst_101 : f32 to vector<8x128xf32>
    %327 = arith.addf %326, %325 : vector<8x128xf32>
    %cst_102 = arith.constant 1.000000e+00 : f32
    %328 = vector.broadcast %cst_102 : f32 to vector<8x128xf32>
    %329 = arith.divf %328, %327 : vector<8x128xf32>
    %330 = vector.extract_strided_slice %322 {offsets = [0, 64], sizes = [8, 32], strides = [1, 1]} : vector<8x128xf32> to vector<8x32xf32>
    %331 = math.tanh %330 : vector<8x32xf32>
    %332 = vector.extract_strided_slice %329 {offsets = [0, 0], sizes = [8, 32], strides = [1, 1]} : vector<8x128xf32> to vector<8x32xf32>
    %333 = vector.extract_strided_slice %329 {offsets = [0, 32], sizes = [8, 32], strides = [1, 1]} : vector<8x128xf32> to vector<8x32xf32>
    %334 = vector.extract_strided_slice %329 {offsets = [0, 96], sizes = [8, 32], strides = [1, 1]} : vector<8x128xf32> to vector<8x32xf32>
    %335 = arith.mulf %333, %292 : vector<8x32xf32>
    %336 = arith.mulf %332, %331 : vector<8x32xf32>
    %337 = arith.addf %335, %336 : vector<8x32xf32>
    %338 = math.tanh %337 : vector<8x32xf32>
    %339 = arith.mulf %334, %338 : vector<8x32xf32>
    %340 = vector.extract_strided_slice %110 {offsets = [40, 0], sizes = [8, 128], strides = [1, 1]} : vector<64x128xf32> to vector<8x128xf32>
    %341 = arith.truncf %315 : vector<8x32xf32> to vector<8x32xbf16>
    %cst_103 = arith.constant dense<0.000000e+00> : vector<8x128xf32>
    %342 = tpu.matmul %341, %101, %cst_103 {dimension_numbers = #tpu.dot_dimension_numbers<[1], [0], [0], [1], [0, 0, 1, 1], [], []>} : vector<8x32xbf16>, vector<32x128xbf16>, vector<8x128xf32> -> vector<8x128xf32>
    %343 = arith.addf %340, %342 : vector<8x128xf32>
    %cst_104 = arith.constant 0.000000e+00 : f32
    %344 = vector.broadcast %cst_104 : f32 to vector<8x128xf32>
    %345 = arith.subf %344, %343 : vector<8x128xf32>
    %346 = math.exp %345 : vector<8x128xf32>
    %cst_105 = arith.constant 1.000000e+00 : f32
    %347 = vector.broadcast %cst_105 : f32 to vector<8x128xf32>
    %348 = arith.addf %347, %346 : vector<8x128xf32>
    %cst_106 = arith.constant 1.000000e+00 : f32
    %349 = vector.broadcast %cst_106 : f32 to vector<8x128xf32>
    %350 = arith.divf %349, %348 : vector<8x128xf32>
    %351 = vector.extract_strided_slice %343 {offsets = [0, 64], sizes = [8, 32], strides = [1, 1]} : vector<8x128xf32> to vector<8x32xf32>
    %352 = math.tanh %351 : vector<8x32xf32>
    %353 = vector.extract_strided_slice %350 {offsets = [0, 0], sizes = [8, 32], strides = [1, 1]} : vector<8x128xf32> to vector<8x32xf32>
    %354 = vector.extract_strided_slice %350 {offsets = [0, 32], sizes = [8, 32], strides = [1, 1]} : vector<8x128xf32> to vector<8x32xf32>
    %355 = vector.extract_strided_slice %350 {offsets = [0, 96], sizes = [8, 32], strides = [1, 1]} : vector<8x128xf32> to vector<8x32xf32>
    %356 = arith.mulf %354, %313 : vector<8x32xf32>
    %357 = arith.mulf %353, %352 : vector<8x32xf32>
    %358 = arith.addf %356, %357 : vector<8x32xf32>
    %359 = math.tanh %358 : vector<8x32xf32>
    %360 = arith.mulf %355, %359 : vector<8x32xf32>
    %361 = arith.truncf %360 : vector<8x32xf32> to vector<8x32xbf16>
    %cst_107 = arith.constant dense<0.000000e+00> : vector<8x128xf32>
    %362 = tpu.matmul %361, %102, %cst_107 {dimension_numbers = #tpu.dot_dimension_numbers<[1], [0], [0], [1], [0, 0, 1, 1], [], []>} : vector<8x32xbf16>, vector<32x128xbf16>, vector<8x128xf32> -> vector<8x128xf32>
    %363 = arith.truncf %339 : vector<8x32xf32> to vector<8x32xbf16>
    %cst_108 = arith.constant dense<0.000000e+00> : vector<8x128xf32>
    %364 = tpu.matmul %363, %103, %cst_108 {dimension_numbers = #tpu.dot_dimension_numbers<[1], [0], [0], [1], [0, 0, 1, 1], [], []>} : vector<8x32xbf16>, vector<32x128xbf16>, vector<8x128xf32> -> vector<8x128xf32>
    %365 = arith.addf %362, %364 : vector<8x128xf32>
    %366 = vector.broadcast %104 : vector<1x128xf32> to vector<8x128xf32>
    %367 = arith.addf %365, %366 : vector<8x128xf32>
    %cst_109 = arith.constant 0.000000e+00 : f32
    %368 = vector.broadcast %cst_109 : f32 to vector<8x128xf32>
    %369 = arith.subf %368, %367 : vector<8x128xf32>
    %370 = math.exp %369 : vector<8x128xf32>
    %cst_110 = arith.constant 1.000000e+00 : f32
    %371 = vector.broadcast %cst_110 : f32 to vector<8x128xf32>
    %372 = arith.addf %371, %370 : vector<8x128xf32>
    %cst_111 = arith.constant 1.000000e+00 : f32
    %373 = vector.broadcast %cst_111 : f32 to vector<8x128xf32>
    %374 = arith.divf %373, %372 : vector<8x128xf32>
    %375 = vector.extract_strided_slice %367 {offsets = [0, 64], sizes = [8, 32], strides = [1, 1]} : vector<8x128xf32> to vector<8x32xf32>
    %376 = math.tanh %375 : vector<8x32xf32>
    %377 = vector.extract_strided_slice %374 {offsets = [0, 0], sizes = [8, 32], strides = [1, 1]} : vector<8x128xf32> to vector<8x32xf32>
    %378 = vector.extract_strided_slice %374 {offsets = [0, 32], sizes = [8, 32], strides = [1, 1]} : vector<8x128xf32> to vector<8x32xf32>
    %379 = vector.extract_strided_slice %374 {offsets = [0, 96], sizes = [8, 32], strides = [1, 1]} : vector<8x128xf32> to vector<8x32xf32>
    %380 = arith.mulf %378, %337 : vector<8x32xf32>
    %381 = arith.mulf %377, %376 : vector<8x32xf32>
    %382 = arith.addf %380, %381 : vector<8x32xf32>
    %383 = math.tanh %382 : vector<8x32xf32>
    %384 = arith.mulf %379, %383 : vector<8x32xf32>
    %385 = vector.extract_strided_slice %110 {offsets = [48, 0], sizes = [8, 128], strides = [1, 1]} : vector<64x128xf32> to vector<8x128xf32>
    %386 = arith.truncf %360 : vector<8x32xf32> to vector<8x32xbf16>
    %cst_112 = arith.constant dense<0.000000e+00> : vector<8x128xf32>
    %387 = tpu.matmul %386, %101, %cst_112 {dimension_numbers = #tpu.dot_dimension_numbers<[1], [0], [0], [1], [0, 0, 1, 1], [], []>} : vector<8x32xbf16>, vector<32x128xbf16>, vector<8x128xf32> -> vector<8x128xf32>
    %388 = arith.addf %385, %387 : vector<8x128xf32>
    %cst_113 = arith.constant 0.000000e+00 : f32
    %389 = vector.broadcast %cst_113 : f32 to vector<8x128xf32>
    %390 = arith.subf %389, %388 : vector<8x128xf32>
    %391 = math.exp %390 : vector<8x128xf32>
    %cst_114 = arith.constant 1.000000e+00 : f32
    %392 = vector.broadcast %cst_114 : f32 to vector<8x128xf32>
    %393 = arith.addf %392, %391 : vector<8x128xf32>
    %cst_115 = arith.constant 1.000000e+00 : f32
    %394 = vector.broadcast %cst_115 : f32 to vector<8x128xf32>
    %395 = arith.divf %394, %393 : vector<8x128xf32>
    %396 = vector.extract_strided_slice %388 {offsets = [0, 64], sizes = [8, 32], strides = [1, 1]} : vector<8x128xf32> to vector<8x32xf32>
    %397 = math.tanh %396 : vector<8x32xf32>
    %398 = vector.extract_strided_slice %395 {offsets = [0, 0], sizes = [8, 32], strides = [1, 1]} : vector<8x128xf32> to vector<8x32xf32>
    %399 = vector.extract_strided_slice %395 {offsets = [0, 32], sizes = [8, 32], strides = [1, 1]} : vector<8x128xf32> to vector<8x32xf32>
    %400 = vector.extract_strided_slice %395 {offsets = [0, 96], sizes = [8, 32], strides = [1, 1]} : vector<8x128xf32> to vector<8x32xf32>
    %401 = arith.mulf %399, %358 : vector<8x32xf32>
    %402 = arith.mulf %398, %397 : vector<8x32xf32>
    %403 = arith.addf %401, %402 : vector<8x32xf32>
    %404 = math.tanh %403 : vector<8x32xf32>
    %405 = arith.mulf %400, %404 : vector<8x32xf32>
    %406 = arith.truncf %405 : vector<8x32xf32> to vector<8x32xbf16>
    %cst_116 = arith.constant dense<0.000000e+00> : vector<8x128xf32>
    %407 = tpu.matmul %406, %102, %cst_116 {dimension_numbers = #tpu.dot_dimension_numbers<[1], [0], [0], [1], [0, 0, 1, 1], [], []>} : vector<8x32xbf16>, vector<32x128xbf16>, vector<8x128xf32> -> vector<8x128xf32>
    %408 = arith.truncf %384 : vector<8x32xf32> to vector<8x32xbf16>
    %cst_117 = arith.constant dense<0.000000e+00> : vector<8x128xf32>
    %409 = tpu.matmul %408, %103, %cst_117 {dimension_numbers = #tpu.dot_dimension_numbers<[1], [0], [0], [1], [0, 0, 1, 1], [], []>} : vector<8x32xbf16>, vector<32x128xbf16>, vector<8x128xf32> -> vector<8x128xf32>
    %410 = arith.addf %407, %409 : vector<8x128xf32>
    %411 = vector.broadcast %104 : vector<1x128xf32> to vector<8x128xf32>
    %412 = arith.addf %410, %411 : vector<8x128xf32>
    %cst_118 = arith.constant 0.000000e+00 : f32
    %413 = vector.broadcast %cst_118 : f32 to vector<8x128xf32>
    %414 = arith.subf %413, %412 : vector<8x128xf32>
    %415 = math.exp %414 : vector<8x128xf32>
    %cst_119 = arith.constant 1.000000e+00 : f32
    %416 = vector.broadcast %cst_119 : f32 to vector<8x128xf32>
    %417 = arith.addf %416, %415 : vector<8x128xf32>
    %cst_120 = arith.constant 1.000000e+00 : f32
    %418 = vector.broadcast %cst_120 : f32 to vector<8x128xf32>
    %419 = arith.divf %418, %417 : vector<8x128xf32>
    %420 = vector.extract_strided_slice %412 {offsets = [0, 64], sizes = [8, 32], strides = [1, 1]} : vector<8x128xf32> to vector<8x32xf32>
    %421 = math.tanh %420 : vector<8x32xf32>
    %422 = vector.extract_strided_slice %419 {offsets = [0, 0], sizes = [8, 32], strides = [1, 1]} : vector<8x128xf32> to vector<8x32xf32>
    %423 = vector.extract_strided_slice %419 {offsets = [0, 32], sizes = [8, 32], strides = [1, 1]} : vector<8x128xf32> to vector<8x32xf32>
    %424 = vector.extract_strided_slice %419 {offsets = [0, 96], sizes = [8, 32], strides = [1, 1]} : vector<8x128xf32> to vector<8x32xf32>
    %425 = arith.mulf %423, %382 : vector<8x32xf32>
    %426 = arith.mulf %422, %421 : vector<8x32xf32>
    %427 = arith.addf %425, %426 : vector<8x32xf32>
    %428 = math.tanh %427 : vector<8x32xf32>
    %429 = arith.mulf %424, %428 : vector<8x32xf32>
    %430 = vector.extract_strided_slice %110 {offsets = [56, 0], sizes = [8, 128], strides = [1, 1]} : vector<64x128xf32> to vector<8x128xf32>
    %431 = arith.truncf %405 : vector<8x32xf32> to vector<8x32xbf16>
    %cst_121 = arith.constant dense<0.000000e+00> : vector<8x128xf32>
    %432 = tpu.matmul %431, %101, %cst_121 {dimension_numbers = #tpu.dot_dimension_numbers<[1], [0], [0], [1], [0, 0, 1, 1], [], []>} : vector<8x32xbf16>, vector<32x128xbf16>, vector<8x128xf32> -> vector<8x128xf32>
    %433 = arith.addf %430, %432 : vector<8x128xf32>
    %cst_122 = arith.constant 0.000000e+00 : f32
    %434 = vector.broadcast %cst_122 : f32 to vector<8x128xf32>
    %435 = arith.subf %434, %433 : vector<8x128xf32>
    %436 = math.exp %435 : vector<8x128xf32>
    %cst_123 = arith.constant 1.000000e+00 : f32
    %437 = vector.broadcast %cst_123 : f32 to vector<8x128xf32>
    %438 = arith.addf %437, %436 : vector<8x128xf32>
    %cst_124 = arith.constant 1.000000e+00 : f32
    %439 = vector.broadcast %cst_124 : f32 to vector<8x128xf32>
    %440 = arith.divf %439, %438 : vector<8x128xf32>
    %441 = vector.extract_strided_slice %433 {offsets = [0, 64], sizes = [8, 32], strides = [1, 1]} : vector<8x128xf32> to vector<8x32xf32>
    %442 = math.tanh %441 : vector<8x32xf32>
    %443 = vector.extract_strided_slice %440 {offsets = [0, 0], sizes = [8, 32], strides = [1, 1]} : vector<8x128xf32> to vector<8x32xf32>
    %444 = vector.extract_strided_slice %440 {offsets = [0, 32], sizes = [8, 32], strides = [1, 1]} : vector<8x128xf32> to vector<8x32xf32>
    %445 = vector.extract_strided_slice %440 {offsets = [0, 96], sizes = [8, 32], strides = [1, 1]} : vector<8x128xf32> to vector<8x32xf32>
    %446 = arith.mulf %444, %403 : vector<8x32xf32>
    %447 = arith.mulf %443, %442 : vector<8x32xf32>
    %448 = arith.addf %446, %447 : vector<8x32xf32>
    %449 = math.tanh %448 : vector<8x32xf32>
    %450 = arith.mulf %445, %449 : vector<8x32xf32>
    %451 = arith.truncf %450 : vector<8x32xf32> to vector<8x32xbf16>
    %cst_125 = arith.constant dense<0.000000e+00> : vector<8x128xf32>
    %452 = tpu.matmul %451, %102, %cst_125 {dimension_numbers = #tpu.dot_dimension_numbers<[1], [0], [0], [1], [0, 0, 1, 1], [], []>} : vector<8x32xbf16>, vector<32x128xbf16>, vector<8x128xf32> -> vector<8x128xf32>
    %453 = arith.truncf %429 : vector<8x32xf32> to vector<8x32xbf16>
    %cst_126 = arith.constant dense<0.000000e+00> : vector<8x128xf32>
    %454 = tpu.matmul %453, %103, %cst_126 {dimension_numbers = #tpu.dot_dimension_numbers<[1], [0], [0], [1], [0, 0, 1, 1], [], []>} : vector<8x32xbf16>, vector<32x128xbf16>, vector<8x128xf32> -> vector<8x128xf32>
    %455 = arith.addf %452, %454 : vector<8x128xf32>
    %456 = vector.broadcast %104 : vector<1x128xf32> to vector<8x128xf32>
    %457 = arith.addf %455, %456 : vector<8x128xf32>
    %cst_127 = arith.constant 0.000000e+00 : f32
    %458 = vector.broadcast %cst_127 : f32 to vector<8x128xf32>
    %459 = arith.subf %458, %457 : vector<8x128xf32>
    %460 = math.exp %459 : vector<8x128xf32>
    %cst_128 = arith.constant 1.000000e+00 : f32
    %461 = vector.broadcast %cst_128 : f32 to vector<8x128xf32>
    %462 = arith.addf %461, %460 : vector<8x128xf32>
    %cst_129 = arith.constant 1.000000e+00 : f32
    %463 = vector.broadcast %cst_129 : f32 to vector<8x128xf32>
    %464 = arith.divf %463, %462 : vector<8x128xf32>
    %465 = vector.extract_strided_slice %457 {offsets = [0, 64], sizes = [8, 32], strides = [1, 1]} : vector<8x128xf32> to vector<8x32xf32>
    %466 = math.tanh %465 : vector<8x32xf32>
    %467 = vector.extract_strided_slice %464 {offsets = [0, 0], sizes = [8, 32], strides = [1, 1]} : vector<8x128xf32> to vector<8x32xf32>
    %468 = vector.extract_strided_slice %464 {offsets = [0, 32], sizes = [8, 32], strides = [1, 1]} : vector<8x128xf32> to vector<8x32xf32>
    %469 = vector.extract_strided_slice %464 {offsets = [0, 96], sizes = [8, 32], strides = [1, 1]} : vector<8x128xf32> to vector<8x32xf32>
    %470 = arith.mulf %468, %427 : vector<8x32xf32>
    %471 = arith.mulf %467, %466 : vector<8x32xf32>
    %472 = arith.addf %470, %471 : vector<8x32xf32>
    %473 = math.tanh %472 : vector<8x32xf32>
    %474 = arith.mulf %469, %473 : vector<8x32xf32>
    %475 = arith.truncf %100 : vector<8x128xf32> to vector<8x128xbf16>
    %c0_130 = arith.constant 0 : index
    %c0_131 = arith.constant 0 : index
    %476 = vector.load %arg18[%c0_130, %c0_131] : memref<128x128xbf16, #tpu.memory_space<vmem>>, vector<128x128xbf16>
    %cst_132 = arith.constant dense<0.000000e+00> : vector<8x128xf32>
    %477 = tpu.matmul %475, %476, %cst_132 {dimension_numbers = #tpu.dot_dimension_numbers<[1], [0], [0], [1], [0, 0, 1, 1], [], []>} : vector<8x128xbf16>, vector<128x128xbf16>, vector<8x128xf32> -> vector<8x128xf32>
    %478 = arith.truncf %474 : vector<8x32xf32> to vector<8x32xbf16>
    %c0_133 = arith.constant 0 : index
    %c0_134 = arith.constant 0 : index
    %479 = vector.load %arg19[%c0_133, %c0_134] : memref<32x128xbf16, #tpu.memory_space<vmem>>, vector<32x128xbf16>
    %cst_135 = arith.constant dense<0.000000e+00> : vector<8x128xf32>
    %480 = tpu.matmul %478, %479, %cst_135 {dimension_numbers = #tpu.dot_dimension_numbers<[1], [0], [0], [1], [0, 0, 1, 1], [], []>} : vector<8x32xbf16>, vector<32x128xbf16>, vector<8x128xf32> -> vector<8x128xf32>
    %481 = arith.addf %477, %480 : vector<8x128xf32>
    %c0_136 = arith.constant 0 : index
    %c0_137 = arith.constant 0 : index
    %482 = vector.load %arg20[%c0_136, %c0_137] : memref<1x128xf32, #tpu.memory_space<vmem>>, vector<1x128xf32>
    %483 = vector.broadcast %482 : vector<1x128xf32> to vector<8x128xf32>
    %484 = arith.addf %481, %483 : vector<8x128xf32>
    %c0_138 = arith.constant 0 : index
    %c0_139 = arith.constant 0 : index
    %485 = vector.load %arg21[%c0_138, %c0_139] : memref<8x128xf32, #tpu.memory_space<vmem>>, vector<8x128xf32>
    tpu.vector_store %arg21[%c0_138, %c0_139], %484 {strides = array<i32>} : memref<8x128xf32, #tpu.memory_space<vmem>>, vector<8x128xf32>,
    return
  }
  func.func @transform_0(%arg0: i32) -> (i32, i32, i32) {
    %c0_i32 = arith.constant 0 : i32
    %c0_i32_0 = arith.constant 0 : i32
    %c0_i32_1 = arith.constant 0 : i32
    return %c0_i32, %arg0, %c0_i32_0 : i32, i32, i32
  }
  func.func @transform_1(%arg0: i32) -> (i32, i32) {
    %c0_i32 = arith.constant 0 : i32
    %c0_i32_0 = arith.constant 0 : i32
    %c0_i32_1 = arith.constant 0 : i32
    return %c0_i32, %c0_i32_0 : i32, i32
  }
  func.func @transform_2(%arg0: i32) -> (i32, i32) {
    %c0_i32 = arith.constant 0 : i32
    %c0_i32_0 = arith.constant 0 : i32
    %c0_i32_1 = arith.constant 0 : i32
    return %c0_i32, %c0_i32_0 : i32, i32
  }
  func.func @transform_3(%arg0: i32) -> (i32, i32) {
    %c0_i32 = arith.constant 0 : i32
    %c0_i32_0 = arith.constant 0 : i32
    %c0_i32_1 = arith.constant 0 : i32
    return %c0_i32, %c0_i32_0 : i32, i32
  }
  func.func @transform_4(%arg0: i32) -> (i32, i32) {
    %c0_i32 = arith.constant 0 : i32
    %c0_i32_0 = arith.constant 0 : i32
    %c0_i32_1 = arith.constant 0 : i32
    return %c0_i32, %c0_i32_0 : i32, i32
  }
  func.func @transform_5(%arg0: i32) -> (i32, i32) {
    %c0_i32 = arith.constant 0 : i32
    %c0_i32_0 = arith.constant 0 : i32
    %c0_i32_1 = arith.constant 0 : i32
    return %c0_i32, %c0_i32_0 : i32, i32
  }
  func.func @transform_6(%arg0: i32) -> (i32, i32) {
    %c0_i32 = arith.constant 0 : i32
    %c0_i32_0 = arith.constant 0 : i32
    %c0_i32_1 = arith.constant 0 : i32
    return %c0_i32, %c0_i32_0 : i32, i32
  }
  func.func @transform_7(%arg0: i32) -> (i32, i32) {
    %c0_i32 = arith.constant 0 : i32
    %c0_i32_0 = arith.constant 0 : i32
    %c0_i32_1 = arith.constant 0 : i32
    return %c0_i32, %c0_i32_0 : i32, i32
  }
  func.func @transform_8(%arg0: i32) -> (i32, i32) {
    %c0_i32 = arith.constant 0 : i32
    %c0_i32_0 = arith.constant 0 : i32
    %c0_i32_1 = arith.constant 0 : i32
    return %c0_i32, %c0_i32_0 : i32, i32
  }
  func.func @transform_9(%arg0: i32) -> (i32, i32) {
    %c0_i32 = arith.constant 0 : i32
    %c0_i32_0 = arith.constant 0 : i32
    %c0_i32_1 = arith.constant 0 : i32
    return %c0_i32, %c0_i32_0 : i32, i32
  }
  func.func @transform_10(%arg0: i32) -> (i32, i32) {
    %c0_i32 = arith.constant 0 : i32
    %c0_i32_0 = arith.constant 0 : i32
    %c0_i32_1 = arith.constant 0 : i32
    return %c0_i32, %c0_i32_0 : i32, i32
  }
  func.func @transform_11(%arg0: i32) -> (i32, i32) {
    %c0_i32 = arith.constant 0 : i32
    %c0_i32_0 = arith.constant 0 : i32
    %c0_i32_1 = arith.constant 0 : i32
    return %c0_i32, %c0_i32_0 : i32, i32
  }
  func.func @transform_12(%arg0: i32) -> (i32, i32) {
    %c0_i32 = arith.constant 0 : i32
    %c0_i32_0 = arith.constant 0 : i32
    %c0_i32_1 = arith.constant 0 : i32
    return %c0_i32, %c0_i32_0 : i32, i32
  }
  func.func @transform_13(%arg0: i32) -> (i32, i32) {
    %c0_i32 = arith.constant 0 : i32
    %c0_i32_0 = arith.constant 0 : i32
    %c0_i32_1 = arith.constant 0 : i32
    return %c0_i32, %c0_i32_0 : i32, i32
  }
  func.func @transform_14(%arg0: i32) -> (i32, i32) {
    %c0_i32 = arith.constant 0 : i32
    %c0_i32_0 = arith.constant 0 : i32
    %c0_i32_1 = arith.constant 0 : i32
    return %c0_i32, %c0_i32_0 : i32, i32
  }
  func.func @transform_15(%arg0: i32) -> (i32, i32) {
    %c0_i32 = arith.constant 0 : i32
    %c0_i32_0 = arith.constant 0 : i32
    %c0_i32_1 = arith.constant 0 : i32
    return %c0_i32, %c0_i32_0 : i32, i32
  }
  func.func @transform_16(%arg0: i32) -> (i32, i32) {
    %c0_i32 = arith.constant 0 : i32
    %c0_i32_0 = arith.constant 0 : i32
    %c0_i32_1 = arith.constant 0 : i32
    return %c0_i32, %c0_i32_0 : i32, i32
  }
  func.func @transform_17(%arg0: i32) -> (i32, i32) {
    %c0_i32 = arith.constant 0 : i32
    %c0_i32_0 = arith.constant 0 : i32
    %c0_i32_1 = arith.constant 0 : i32
    return %c0_i32, %c0_i32_0 : i32, i32
  }
  func.func @transform_18(%arg0: i32) -> (i32, i32) {
    %c0_i32 = arith.constant 0 : i32
    %c0_i32_0 = arith.constant 0 : i32
    %c0_i32_1 = arith.constant 0 : i32
    return %c0_i32, %c0_i32_0 : i32, i32
  }
  func.func @transform_19(%arg0: i32) -> (i32, i32) {
    %c0_i32 = arith.constant 0 : i32
    %c0_i32_0 = arith.constant 0 : i32
    %c0_i32_1 = arith.constant 0 : i32
    return %c0_i32, %c0_i32_0 : i32, i32
  }
  func.func @transform_20(%arg0: i32) -> (i32, i32) {
    %c0_i32 = arith.constant 0 : i32
    %c0_i32_0 = arith.constant 0 : i32
    return %arg0, %c0_i32 : i32, i32
  }
}

</mosaic_0001>

<bundles_post_ra>
// kernel: neural_network_forward.1
= control target key start
LH: loop header
LB: loop body
LE: loop exit
PB: predicated region body
PF: predicated region fallthrough
CT: control target
= control target key end

     0   :  { %s6901_s0 = inlined_call_operand.hbm [shape: f32[32,8,8], index: 0, kind: input, shape index: {}]   ;;  %s6902_s1 = inlined_call_operand.hbm [shape: bf16[8,64], index: 1, kind: input, shape index: {}]   ;;  %s6903_s2 = inlined_call_operand.hbm [shape: bf16[8,64], index: 2, kind: input, shape index: {}]   ;;  %s6904_s3 = inlined_call_operand.hbm [shape: bf16[8,64], index: 3, kind: input, shape index: {}]   ;;  %s6905_s4 = inlined_call_operand.hbm [shape: f32[1,64], index: 4, kind: input, shape index: {}]   ;;  %s6906_s5 = inlined_call_operand.hbm [shape: bf16[64,64], index: 5, kind: input, shape index: {}]   ;;  %s6907_s6 = inlined_call_operand.hbm [shape: bf16[64,64], index: 6, kind: input, shape index: {}]   ;;  %s6908_s7 = inlined_call_operand.hbm [shape: bf16[64,64], index: 7, kind: input, shape index: {}]   ;;  %s6909_s8 = inlined_call_operand.hbm [shape: f32[1,64], index: 8, kind: input, shape index: {}]   ;;  %s6910_s9 = inlined_call_operand.hbm [shape: bf16[512,128], index: 9, kind: input, shape index: {}]   ;;  %s6911_s10 = inlined_call_operand.hbm [shape: f32[1,128], index: 10, kind: input, shape index: {}]   ;;  %s6912_s11 = inlined_call_operand.hbm [shape: bf16[64,128], index: 11, kind: input, shape index: {}]   ;;  %s6913_s12 = inlined_call_operand.hbm [shape: bf16[32,128], index: 12, kind: input, shape index: {}]   ;;  %s6914_s13 = inlined_call_operand.hbm [shape: f32[1,128], index: 13, kind: input, shape index: {}]   ;;  %s6915_s14 = inlined_call_operand.hbm [shape: bf16[32,128], index: 14, kind: input, shape index: {}]   ;;  %s6916_s15 = inlined_call_operand.hbm [shape: bf16[32,128], index: 15, kind: input, shape index: {}]   ;;  %s6917_s16 = inlined_call_operand.hbm [shape: f32[1,128], index: 16, kind: input, shape index: {}]   ;;  %s6918_s17 = inlined_call_operand.hbm [shape: bf16[128,128], index: 17, kind: input, shape index: {}]   ;;  %s6919_s18 = inlined_call_operand.hbm [shape: bf16[32,128], index: 18, kind: input, shape index: {}]   ;;  %s6920_s19 = inlined_call_operand.hbm [shape: f32[1,128], index: 19, kind: input, shape index: {}]   ;;  %s6921_s20 = inlined_call_operand.hbm [shape: f32[8,128], index: 20, kind: output, shape index: {}]  }
   0x1   :  { %6928 = sst [smem:[#allocation47_spill]] %s6901_s0 }
   0x2   :  { %6929 = sst [smem:[#allocation48_spill]] %s6902_s1 }
   0x3   :  { %6930 = sst [smem:[#allocation49_spill]] %s6903_s2 }
   0x4   :  { %6931 = sst [smem:[#allocation50_spill]] %s6904_s3 }
   0x5   :  { %6932 = sst [smem:[#allocation51_spill]] %s6905_s4 }
   0x6   :  { %6933 = sst [smem:[#allocation52_spill]] %s6921_s20 }
   0x7   :  { %25 = vsyncpa [#allocation3], 0 }
   0x8   :  { %26 = vsyncpa [#allocation6], 0 }
   0x9   :  { %27 = vsyncpa [#allocation9], 0 }
   0xa   :  { %28 = vsyncpa [#allocation12], 0 }
   0xb   :  { %29 = vsyncpa [#allocation15], 0 }
   0xc   :  { %30 = vsyncpa [#allocation18], 0 }
   0xd   :  { %31 = vsyncpa [#allocation21], 0 }
   0xe   :  { %32 = vsyncpa [#allocation24], 0 }
   0xf   :  { %33 = vsyncpa [#allocation27], 0 }
  0x10   :  { %34 = vsyncpa [#allocation30], 0 }
  0x11   :  { %35 = vsyncpa [#allocation33], 0 }
  0x12   :  { %36 = vsyncpa [#allocation4], 0  ;;  %s5811_s1 = smov [#allocation5]   ;;  %s5812_s23 = smov [#allocation8]  }
  0x13   :  { %s55_s22 = sshll.u32 %s5811_s1, 4  ;;  %s75_s24 = sshll.u32 %s5812_s23, 4  ;;  %s56_s22 = int_to_ptr.vmem [resolvable:$true] %s55_s22  ;;  %s76_s24 = int_to_ptr.vmem [resolvable:$true] %s75_s24 }
  0x14   :  { %s6934_s3 = sld [smem:[#allocation48_spill]] }
  0x1a   :  { %s5325_s26 = scalar_lea.hbm %s6934_s3, 64 }
  0x1b   :  { %p5326_p0 = scmp.ne.s32.totalorder %s6934_s3, %s5325_s26  ;;  %p5329_p1 = scmp.lt.u32.totalorder %s5325_s26, %s6934_s3 }
  0x1d   :  { %p5331_p2 = pnand %p5329_p1, %p5326_p0 }
  0x1f   :  { %5334 = shalt.err (!%p5331_p2)
}
  0x20   :  { %s5335_s30 = scalar_lea.vmem %s56_s22, 64  ;;  %p5340_p4 = scmp.lt.s32.totalorder %s56_s22, %s56_s22 }
  0x21   :  { %p5336_p3 = scmp.ne.s32.totalorder %s56_s22, %s5335_s30  ;;  %p5341_p5 = scmp.lt.s32.totalorder %s5335_s30, %s5335_s30 }
  0x23   :  { %p5342_p6 = por %p5341_p5, %p5340_p4 }
  0x25   :  { %p5343_p7 = pnand %p5342_p6, %p5336_p3 }
  0x27   :  { %5346 = shalt.err (!%p5343_p7)
}
  0x28   :  { %58 = dma.hbm_to_vmem [thread:$0]  %s6934_s3, 64, %s56_s22, [#allocation6]  }
  0x29   :  { %s6935_s2 = sld [smem:[#allocation50_spill]] }
  0x2f   :  { %s5347_s25 = scalar_lea.hbm %s6935_s2, 64 }
  0x30   :  { %p5348_p8 = scmp.ne.s32.totalorder %s6935_s2, %s5347_s25  ;;  %p5351_p9 = scmp.lt.u32.totalorder %s5347_s25, %s6935_s2 }
  0x32   :  { %p5353_p10 = pnand %p5351_p9, %p5348_p8 }
  0x34   :  { %5356 = shalt.err (!%p5353_p10)
}
  0x35   :  { %s5357_s29 = scalar_lea.vmem %s76_s24, 64  ;;  %p5362_p12 = scmp.lt.s32.totalorder %s76_s24, %s76_s24 }
  0x36   :  { %p5358_p11 = scmp.ne.s32.totalorder %s76_s24, %s5357_s29  ;;  %p5363_p13 = scmp.lt.s32.totalorder %s5357_s29, %s5357_s29 }
  0x38   :  { %p5364_p0 = por %p5363_p13, %p5362_p12 }
  0x3a   :  { %p5365_p1 = pnand %p5364_p0, %p5358_p11 }
  0x3c   :  { %5368 = shalt.err (!%p5365_p1)
}
  0x3d   :  { %78 = dma.hbm_to_vmem [thread:$0]  %s6935_s2, 64, %s76_s24, [#allocation9]  }
  0x3e   :  { %s5813_s30 = smov [#allocation11]   ;;  %s5369_s23 = scalar_lea.hbm %s6906_s5, 512 }
  0x3f   :  { %s94_s0 = sshll.u32 %s5813_s30, 4  ;;  %p5370_p2 = scmp.ne.s32.totalorder %s6906_s5, %s5369_s23  ;;  %s95_s0 = int_to_ptr.vmem [resolvable:$true] %s94_s0 }
  0x40   :  { %p5373_p3 = scmp.lt.u32.totalorder %s5369_s23, %s6906_s5 }
  0x42   :  { %p5375_p4 = pnand %p5373_p3, %p5370_p2 }
  0x44   :  { %5378 = shalt.err (!%p5375_p4)
}
  0x45   :  { %s5379_s4 = scalar_lea.vmem %s95_s0, 512  ;;  %p5384_p6 = scmp.lt.s32.totalorder %s95_s0, %s95_s0 }
  0x46   :  { %p5380_p5 = scmp.ne.s32.totalorder %s95_s0, %s5379_s4  ;;  %p5385_p7 = scmp.lt.s32.totalorder %s5379_s4, %s5379_s4 }
  0x48   :  { %p5386_p8 = por %p5385_p7, %p5384_p6 }
  0x4a   :  { %p5387_p9 = pnand %p5386_p8, %p5380_p5 }
  0x4c   :  { %5390 = shalt.err (!%p5387_p9)
}
  0x4d   :  { %s5814_s24 = smov 64   ;;  %s5815_s2 = smov 4  }
  0x4e   :  { %100 = dma.hbm_to_vmem [thread:$0]  %s6906_s5, 512, %s95_s0, [#allocation12], %s5814_s24, %s5814_s24, %s5815_s2  }
  0x4f   :  { %s5816_s3 = smov [#allocation14]   ;;  %s5817_s21 = smov [#allocation17]  }
  0x50   :  { %s118_s30 = sshll.u32 %s5816_s3, 4  ;;  %s140_s1 = sshll.u32 %s5817_s21, 4  ;;  %s119_s30 = int_to_ptr.vmem [resolvable:$true] %s118_s30  ;;  %s141_s1 = int_to_ptr.vmem [resolvable:$true] %s140_s1 }
  0x51   :  { %s5391_s27 = scalar_lea.hbm %s6908_s7, 512 }
  0x52   :  { %p5392_p10 = scmp.ne.s32.totalorder %s6908_s7, %s5391_s27  ;;  %p5395_p11 = scmp.lt.u32.totalorder %s5391_s27, %s6908_s7 }
  0x54   :  { %p5397_p12 = pnand %p5395_p11, %p5392_p10 }
  0x56   :  { %5400 = shalt.err (!%p5397_p12)
}
  0x57   :  { %s5401_s5 = scalar_lea.vmem %s119_s30, 512  ;;  %p5406_p0 = scmp.lt.s32.totalorder %s119_s30, %s119_s30 }
  0x58   :  { %p5402_p13 = scmp.ne.s32.totalorder %s119_s30, %s5401_s5  ;;  %p5407_p1 = scmp.lt.s32.totalorder %s5401_s5, %s5401_s5 }
  0x5a   :  { %p5408_p2 = por %p5407_p1, %p5406_p0 }
  0x5c   :  { %p5409_p3 = pnand %p5408_p2, %p5402_p13 }
  0x5e   :  { %5412 = shalt.err (!%p5409_p3)
}
  0x5f   :  { %124 = dma.hbm_to_vmem [thread:$0]  %s6908_s7, 512, %s119_s30, [#allocation15], %s5814_s24, %s5814_s24, %s5815_s2  }
  0x60   :  { %s5413_s3 = scalar_lea.hbm %s6910_s9, 4096 }
  0x61   :  { %p5414_p4 = scmp.ne.s32.totalorder %s6910_s9, %s5413_s3  ;;  %p5417_p5 = scmp.lt.u32.totalorder %s5413_s3, %s6910_s9 }
  0x63   :  { %p5419_p6 = pnand %p5417_p5, %p5414_p4 }
  0x65   :  { %5422 = shalt.err (!%p5419_p6)
}
  0x66   :  { %s5423_s28 = scalar_lea.vmem %s141_s1, 4096  ;;  %p5428_p8 = scmp.lt.s32.totalorder %s141_s1, %s141_s1 }
  0x67   :  { %p5424_p7 = scmp.ne.s32.totalorder %s141_s1, %s5423_s28  ;;  %p5429_p9 = scmp.lt.s32.totalorder %s5423_s28, %s5423_s28 }
  0x69   :  { %p5430_p10 = por %p5429_p9, %p5428_p8 }
  0x6b   :  { %p5431_p11 = pnand %p5430_p10, %p5424_p7 }
  0x6d   :  { %5434 = shalt.err (!%p5431_p11)
}
  0x6e   :  { %146 = dma.hbm_to_vmem [thread:$0]  %s6910_s9, 4096, %s141_s1, [#allocation18], %s5814_s24, %s5814_s24, %s5815_s2  }
  0x6f   :  { %s5818_s26 = smov [#allocation20]   ;;  %s5819_s5 = smov [#allocation23]  }
  0x70   :  { %s162_s4 = sshll.u32 %s5818_s26, 4  ;;  %s187_s0 = sshll.u32 %s5819_s5, 4  ;;  %s163_s4 = int_to_ptr.vmem [resolvable:$true] %s162_s4  ;;  %s188_s0 = int_to_ptr.vmem [resolvable:$true] %s187_s0 }
  0x71   :  { %s5435_s20 = scalar_lea.hbm %s6912_s11, 512 }
  0x72   :  { %p5436_p12 = scmp.ne.s32.totalorder %s6912_s11, %s5435_s20  ;;  %p5439_p13 = scmp.lt.u32.totalorder %s5435_s20, %s6912_s11 }
  0x74   :  { %p5441_p0 = pnand %p5439_p13, %p5436_p12 }
  0x76   :  { %5444 = shalt.err (!%p5441_p0)
}
  0x77   :  { %s5445_s9 = scalar_lea.vmem %s163_s4, 512  ;;  %p5450_p2 = scmp.lt.s32.totalorder %s163_s4, %s163_s4 }
  0x78   :  { %p5446_p1 = scmp.ne.s32.totalorder %s163_s4, %s5445_s9  ;;  %p5451_p3 = scmp.lt.s32.totalorder %s5445_s9, %s5445_s9 }
  0x7a   :  { %p5452_p4 = por %p5451_p3, %p5450_p2 }
  0x7c   :  { %p5453_p5 = pnand %p5452_p4, %p5446_p1 }
  0x7e   :  { %5456 = shalt.err (!%p5453_p5)
}
  0x7f   :  { %168 = dma.hbm_to_vmem [thread:$0]  %s6912_s11, 512, %s163_s4, [#allocation21], %s5814_s24, %s5814_s24, %s5815_s2  }
  0x80   :  { %s5457_s30 = scalar_lea.hbm %s6914_s13, 16 }
  0x81   :  { %p5458_p6 = scmp.ne.s32.totalorder %s6914_s13, %s5457_s30  ;;  %p5461_p7 = scmp.lt.u32.totalorder %s5457_s30, %s6914_s13 }
  0x83   :  { %p5463_p8 = pnand %p5461_p7, %p5458_p6 }
  0x85   :  { %5466 = shalt.err (!%p5463_p8)
}
  0x86   :  { %s5467_s20 = scalar_lea.vmem %s188_s0, 16  ;;  %s5471_s3 = scalar_lea.vmem %s188_s0, 32 }
  0x87   :  { %p5468_p9 = scmp.ne.s32.totalorder %s188_s0, %s5467_s20  ;;  %p5472_p10 = scmp.lt.s32.totalorder %s188_s0, %s188_s0 }
  0x88   :  { %p5473_p11 = scmp.lt.s32.totalorder %s5471_s3, %s5467_s20 }
  0x8a   :  { %p5474_p12 = por %p5473_p11, %p5472_p10 }
  0x8c   :  { %p5475_p13 = pnand %p5474_p12, %p5468_p9 }
  0x8e   :  { %5478 = shalt.err (!%p5475_p13)
}
  0x8f   :  { %190 = dma.hbm_to_vmem [thread:$0]  %s6914_s13, 16, %s188_s0, [#allocation24]  }
  0x90   :  { %s5820_s21 = smov [#allocation26]   ;;  %s5821_s25 = smov [#allocation29]  }
  0x91   :  { %s208_s23 = sshll.u32 %s5820_s21, 4  ;;  %s230_s9 = sshll.u32 %s5821_s25, 4  ;;  %s209_s23 = int_to_ptr.vmem [resolvable:$true] %s208_s23  ;;  %s231_s9 = int_to_ptr.vmem [resolvable:$true] %s230_s9 }
  0x92   :  { %s5479_s28 = scalar_lea.hbm %s6916_s15, 256 }
  0x93   :  { %p5480_p0 = scmp.ne.s32.totalorder %s6916_s15, %s5479_s28  ;;  %p5483_p1 = scmp.lt.u32.totalorder %s5479_s28, %s6916_s15 }
  0x95   :  { %p5485_p2 = pnand %p5483_p1, %p5480_p0 }
  0x97   :  { %5488 = shalt.err (!%p5485_p2)
}
  0x98   :  { %s5489_s13 = scalar_lea.vmem %s209_s23, 256  ;;  %p5494_p4 = scmp.lt.s32.totalorder %s209_s23, %s209_s23 }
  0x99   :  { %p5490_p3 = scmp.ne.s32.totalorder %s209_s23, %s5489_s13  ;;  %p5495_p5 = scmp.lt.s32.totalorder %s5489_s13, %s5489_s13 }
  0x9b   :  { %p5496_p6 = por %p5495_p5, %p5494_p4 }
  0x9d   :  { %p5497_p7 = pnand %p5496_p6, %p5490_p3 }
  0x9f   :  { %5500 = shalt.err (!%p5497_p7)
}
  0xa0   :  { %214 = dma.hbm_to_vmem [thread:$0]  %s6916_s15, 256, %s209_s23, [#allocation27], %s5814_s24, %s5814_s24, %s5815_s2  }
  0xa1   :  { %s5501_s3 = scalar_lea.hbm %s6918_s17, 1024 }
  0xa2   :  { %p5502_p8 = scmp.ne.s32.totalorder %s6918_s17, %s5501_s3  ;;  %p5505_p9 = scmp.lt.u32.totalorder %s5501_s3, %s6918_s17 }
  0xa4   :  { %p5507_p10 = pnand %p5505_p9, %p5502_p8 }
  0xa6   :  { %5510 = shalt.err (!%p5507_p10)
}
  0xa7   :  { %s5511_s1 = scalar_lea.vmem %s231_s9, 1024  ;;  %p5516_p12 = scmp.lt.s32.totalorder %s231_s9, %s231_s9 }
  0xa8   :  { %p5512_p11 = scmp.ne.s32.totalorder %s231_s9, %s5511_s1  ;;  %p5517_p13 = scmp.lt.s32.totalorder %s5511_s1, %s5511_s1 }
  0xaa   :  { %p5518_p0 = por %p5517_p13, %p5516_p12 }
  0xac   :  { %p5519_p1 = pnand %p5518_p0, %p5512_p11 }
  0xae   :  { %5522 = shalt.err (!%p5519_p1)
}
  0xaf   :  { %236 = dma.hbm_to_vmem [thread:$0]  %s6918_s17, 1024, %s231_s9, [#allocation30], %s5814_s24, %s5814_s24, %s5815_s2  }
  0xb0   :  { %s5822_s27 = smov [#allocation2]   ;;  %s6936_s26 = sld [smem:[#allocation47_spill]] }
  0xb1   :  { %s42_s28 = sshll.u32 %s5822_s27, 4  ;;  %s43_s28 = int_to_ptr.vmem [resolvable:$true] %s42_s28 }
  0xb6   :  { %s5523_s5 = scalar_lea.hbm %s6936_s26, 4096 }
  0xb7   :  { %p5524_p2 = scmp.ne.s32.totalorder %s6936_s26, %s5523_s5  ;;  %p5527_p3 = scmp.lt.u32.totalorder %s5523_s5, %s6936_s26 }
  0xb9   :  { %p5529_p4 = pnand %p5527_p3, %p5524_p2 }
  0xbb   :  { %5532 = shalt.err (!%p5529_p4)
}
  0xbc   :  { %s5533_s20 = scalar_lea.vmem %s43_s28, 4096  ;;  %p5538_p6 = scmp.lt.s32.totalorder %s43_s28, %s43_s28 }
  0xbd   :  { %p5534_p5 = scmp.ne.s32.totalorder %s43_s28, %s5533_s20  ;;  %p5539_p7 = scmp.lt.s32.totalorder %s5533_s20, %s5533_s20 }
  0xbf   :  { %p5540_p8 = por %p5539_p7, %p5538_p6 }
  0xc1   :  { %p5541_p9 = pnand %p5540_p8, %p5534_p5 }
  0xc3   :  { %5544 = shalt.err (!%p5541_p9)
}
  0xc4   :  { %s5823_s17 = smov 128   ;;  %s5824_s9 = smov 8  }
  0xc5   :  { %48 = dma.hbm_to_vmem [thread:$0]  %s6936_s26, 4096, %s43_s28, [#allocation3], %s5823_s17, %s5823_s17, %s5824_s9  }
  0xc6   :  { %s5825_s4 = smov [#allocation7]   ;;  %s5826_s25 = smov [#allocation10]  }
  0xc7   :  { %s65_s21 = sshll.u32 %s5825_s4, 4  ;;  %s85_s1 = sshll.u32 %s5826_s25, 4  ;;  %s66_s21 = int_to_ptr.vmem [resolvable:$true] %s65_s21  ;;  %s86_s1 = int_to_ptr.vmem [resolvable:$true] %s85_s1 }
  0xc8   :  { %s6937_s27 = sld [smem:[#allocation49_spill]] }
  0xce   :  { %s5545_s7 = scalar_lea.hbm %s6937_s27, 64 }
  0xcf   :  { %p5546_p10 = scmp.ne.s32.totalorder %s6937_s27, %s5545_s7  ;;  %p5549_p11 = scmp.lt.u32.totalorder %s5545_s7, %s6937_s27 }
  0xd1   :  { %p5551_p12 = pnand %p5549_p11, %p5546_p10 }
  0xd3   :  { %5554 = shalt.err (!%p5551_p12)
}
  0xd4   :  { %s5555_s28 = scalar_lea.vmem %s66_s21, 64  ;;  %p5560_p0 = scmp.lt.s32.totalorder %s66_s21, %s66_s21 }
  0xd5   :  { %p5556_p13 = scmp.ne.s32.totalorder %s66_s21, %s5555_s28  ;;  %p5561_p1 = scmp.lt.s32.totalorder %s5555_s28, %s5555_s28 }
  0xd7   :  { %p5562_p2 = por %p5561_p1, %p5560_p0 }
  0xd9   :  { %p5563_p3 = pnand %p5562_p2, %p5556_p13 }
  0xdb   :  { %5566 = shalt.err (!%p5563_p3)
}
  0xdc   :  { %68 = dma.hbm_to_vmem [thread:$0]  %s6937_s27, 64, %s66_s21, [#allocation6]  }
  0xdd   :  { %s6938_s17 = sld [smem:[#allocation51_spill]] }
  0xe3   :  { %s5567_s9 = scalar_lea.hbm %s6938_s17, 16 }
  0xe4   :  { %p5568_p4 = scmp.ne.s32.totalorder %s6938_s17, %s5567_s9  ;;  %p5571_p5 = scmp.lt.u32.totalorder %s5567_s9, %s6938_s17 }
  0xe6   :  { %p5573_p6 = pnand %p5571_p5, %p5568_p4 }
  0xe8   :  { %5576 = shalt.err (!%p5573_p6)
}
  0xe9   :  { %s5577_s15 = scalar_lea.vmem %s86_s1, 16  ;;  %s5581_s23 = scalar_lea.vmem %s86_s1, 32 }
  0xea   :  { %p5578_p7 = scmp.ne.s32.totalorder %s86_s1, %s5577_s15  ;;  %p5582_p8 = scmp.lt.s32.totalorder %s86_s1, %s86_s1 }
  0xeb   :  { %p5583_p9 = scmp.lt.s32.totalorder %s5581_s23, %s5577_s15 }
  0xed   :  { %p5584_p10 = por %p5583_p9, %p5582_p8 }
  0xef   :  { %p5585_p11 = pnand %p5584_p10, %p5578_p7 }
  0xf1   :  { %5588 = shalt.err (!%p5585_p11)
}
  0xf2   :  { %88 = dma.hbm_to_vmem [thread:$0]  %s6938_s17, 16, %s86_s1, [#allocation9]  }
  0xf3   :  { %s5827_s7 = smov [#allocation13]   ;;  %s5828_s5 = smov [#allocation16]  }
  0xf4   :  { %s106_s30 = sshll.u32 %s5827_s7, 4  ;;  %s131_s13 = sshll.u32 %s5828_s5, 4  ;;  %s107_s30 = int_to_ptr.vmem [resolvable:$true] %s106_s30  ;;  %s132_s13 = int_to_ptr.vmem [resolvable:$true] %s131_s13 }
  0xf5   :  { %s5589_s26 = scalar_lea.hbm %s6907_s6, 512 }
  0xf6   :  { %p5590_p12 = scmp.ne.s32.totalorder %s6907_s6, %s5589_s26  ;;  %p5593_p13 = scmp.lt.u32.totalorder %s5589_s26, %s6907_s6 }
  0xf8   :  { %p5595_p0 = pnand %p5593_p13, %p5590_p12 }
  0xfa   :  { %5598 = shalt.err (!%p5595_p0)
}
  0xfb   :  { %s5599_s1 = scalar_lea.vmem %s107_s30, 512  ;;  %p5604_p2 = scmp.lt.s32.totalorder %s107_s30, %s107_s30 }
  0xfc   :  { %p5600_p1 = scmp.ne.s32.totalorder %s107_s30, %s5599_s1  ;;  %p5605_p3 = scmp.lt.s32.totalorder %s5599_s1, %s5599_s1 }
  0xfe   :  { %p5606_p4 = por %p5605_p3, %p5604_p2 }
 0x100   :  { %p5607_p5 = pnand %p5606_p4, %p5600_p1 }
 0x102   :  { %5610 = shalt.err (!%p5607_p5)
}
 0x103   :  { %112 = dma.hbm_to_vmem [thread:$0]  %s6907_s6, 512, %s107_s30, [#allocation12], %s5814_s24, %s5814_s24, %s5815_s2  }
 0x104   :  { %s5611_s25 = scalar_lea.hbm %s6909_s8, 16 }
 0x105   :  { %p5612_p6 = scmp.ne.s32.totalorder %s6909_s8, %s5611_s25  ;;  %p5615_p7 = scmp.lt.u32.totalorder %s5611_s25, %s6909_s8 }
 0x107   :  { %p5617_p8 = pnand %p5615_p7, %p5612_p6 }
 0x109   :  { %5620 = shalt.err (!%p5617_p8)
}
 0x10a   :  { %s5621_s7 = scalar_lea.vmem %s132_s13, 16  ;;  %s5625_s5 = scalar_lea.vmem %s132_s13, 32 }
 0x10b   :  { %p5622_p9 = scmp.ne.s32.totalorder %s132_s13, %s5621_s7  ;;  %p5626_p10 = scmp.lt.s32.totalorder %s132_s13, %s132_s13 }
 0x10c   :  { %p5627_p11 = scmp.lt.s32.totalorder %s5625_s5, %s5621_s7 }
 0x10e   :  { %p5628_p12 = por %p5627_p11, %p5626_p10 }
 0x110   :  { %p5629_p13 = pnand %p5628_p12, %p5622_p9 }
 0x112   :  { %5632 = shalt.err (!%p5629_p13)
}
 0x113   :  { %134 = dma.hbm_to_vmem [thread:$0]  %s6909_s8, 16, %s132_s13, [#allocation15]  }
 0x114   :  { %s5829_s0 = smov [#allocation19]   ;;  %s5830_s26 = smov [#allocation22]  }
 0x115   :  { %s153_s28 = sshll.u32 %s5829_s0, 4  ;;  %s174_s29 = sshll.u32 %s5830_s26, 4  ;;  %s154_s28 = int_to_ptr.vmem [resolvable:$true] %s153_s28  ;;  %s6134_s29 = int_to_ptr.vmem [resolvable:$true] %s174_s29 }
 0x116   :  { %s5633_s9 = scalar_lea.hbm %s6911_s10, 16 }
 0x117   :  { %p5634_p0 = scmp.ne.s32.totalorder %s6911_s10, %s5633_s9  ;;  %p5637_p1 = scmp.lt.u32.totalorder %s5633_s9, %s6911_s10 }
 0x119   :  { %p5639_p2 = pnand %p5637_p1, %p5634_p0 }
 0x11b   :  { %5642 = shalt.err (!%p5639_p2)
}
 0x11c   :  { %s5643_s8 = scalar_lea.vmem %s154_s28, 16  ;;  %s5647_s13 = scalar_lea.vmem %s154_s28, 32 }
 0x11d   :  { %p5644_p3 = scmp.ne.s32.totalorder %s154_s28, %s5643_s8  ;;  %p5648_p4 = scmp.lt.s32.totalorder %s154_s28, %s154_s28 }
 0x11e   :  { %p5649_p5 = scmp.lt.s32.totalorder %s5647_s13, %s5643_s8 }
 0x120   :  { %p5650_p6 = por %p5649_p5, %p5648_p4 }
 0x122   :  { %p5651_p7 = pnand %p5650_p6, %p5644_p3 }
 0x124   :  { %5654 = shalt.err (!%p5651_p7)
}
 0x125   :  { %156 = dma.hbm_to_vmem [thread:$0]  %s6911_s10, 16, %s154_s28, [#allocation18]  }
 0x126   :  { %s5655_s21 = scalar_lea.hbm %s6913_s12, 256 }
 0x127   :  { %p5656_p8 = scmp.ne.s32.totalorder %s6913_s12, %s5655_s21  ;;  %p5659_p9 = scmp.lt.u32.totalorder %s5655_s21, %s6913_s12 }
 0x129   :  { %p5661_p10 = pnand %p5659_p9, %p5656_p8 }
 0x12b   :  { %5664 = shalt.err (!%p5661_p10)
}
 0x12c   :  { %s5665_s30 = scalar_lea.vmem %s6134_s29, 256  ;;  %p5670_p12 = scmp.lt.s32.totalorder %s6134_s29, %s6134_s29 }
 0x12d   :  { %p5666_p11 = scmp.ne.s32.totalorder %s6134_s29, %s5665_s30  ;;  %p5671_p13 = scmp.lt.s32.totalorder %s5665_s30, %s5665_s30 }
 0x12f   :  { %p5672_p0 = por %p5671_p13, %p5670_p12 }
 0x131   :  { %p5673_p1 = pnand %p5672_p0, %p5666_p11 }
 0x133   :  { %5676 = shalt.err (!%p5673_p1)
}
 0x134   :  { %180 = dma.hbm_to_vmem [thread:$0]  %s6913_s12, 256, %s6134_s29, [#allocation21], %s5814_s24, %s5814_s24, %s5815_s2  }
 0x135   :  { %s5831_s28 = smov [#allocation25]   ;;  %s5832_s22 = smov [#allocation28]  }
 0x136   :  { %s196_s26 = sshll.u32 %s5831_s28, 4  ;;  %s221_s20 = sshll.u32 %s5832_s22, 4  ;;  %s197_s26 = int_to_ptr.vmem [resolvable:$true] %s196_s26  ;;  %s222_s20 = int_to_ptr.vmem [resolvable:$true] %s221_s20 }
 0x137   :  { %s5677_s17 = scalar_lea.hbm %s6915_s14, 256 }
 0x138   :  { %p5678_p2 = scmp.ne.s32.totalorder %s6915_s14, %s5677_s17  ;;  %p5681_p3 = scmp.lt.u32.totalorder %s5677_s17, %s6915_s14 }
 0x13a   :  { %p5683_p4 = pnand %p5681_p3, %p5678_p2 }
 0x13c   :  { %5686 = shalt.err (!%p5683_p4)
}
 0x13d   :  { %s5687_s12 = scalar_lea.vmem %s197_s26, 256  ;;  %p5692_p6 = scmp.lt.s32.totalorder %s197_s26, %s197_s26 }
 0x13e   :  { %p5688_p5 = scmp.ne.s32.totalorder %s197_s26, %s5687_s12  ;;  %p5693_p7 = scmp.lt.s32.totalorder %s5687_s12, %s5687_s12 }
 0x140   :  { %p5694_p8 = por %p5693_p7, %p5692_p6 }
 0x142   :  { %p5695_p9 = pnand %p5694_p8, %p5688_p5 }
 0x144   :  { %5698 = shalt.err (!%p5695_p9)
}
 0x145   :  { %202 = dma.hbm_to_vmem [thread:$0]  %s6915_s14, 256, %s197_s26, [#allocation24], %s5814_s24, %s5814_s24, %s5815_s2  }
 0x146   :  { %s5699_s23 = scalar_lea.hbm %s6917_s16, 16 }
 0x147   :  { %p5700_p10 = scmp.ne.s32.totalorder %s6917_s16, %s5699_s23  ;;  %p5703_p11 = scmp.lt.u32.totalorder %s5699_s23, %s6917_s16 }
 0x149   :  { %p5705_p12 = pnand %p5703_p11, %p5700_p10 }
 0x14b   :  { %5708 = shalt.err (!%p5705_p12)
}
 0x14c   :  { %s5709_s6 = scalar_lea.vmem %s222_s20, 16  ;;  %s5713_s30 = scalar_lea.vmem %s222_s20, 32 }
 0x14d   :  { %p5710_p13 = scmp.ne.s32.totalorder %s222_s20, %s5709_s6  ;;  %p5714_p0 = scmp.lt.s32.totalorder %s222_s20, %s222_s20 }
 0x14e   :  { %p5715_p1 = scmp.lt.s32.totalorder %s5713_s30, %s5709_s6 }
 0x150   :  { %p5716_p2 = por %p5715_p1, %p5714_p0 }
 0x152   :  { %p5717_p3 = pnand %p5716_p2, %p5710_p13 }
 0x154   :  { %5720 = shalt.err (!%p5717_p3)
}
 0x155   :  { %224 = dma.hbm_to_vmem [thread:$0]  %s6917_s16, 16, %s222_s20, [#allocation27]  }
 0x156   :  { %s5833_s0 = smov [#allocation31]   ;;  %s5834_s26 = smov [#allocation32]  }
 0x157   :  { %s242_s28 = sshll.u32 %s5833_s0, 4  ;;  %s255_s22 = sshll.u32 %s5834_s26, 4  ;;  %s243_s28 = int_to_ptr.vmem [resolvable:$true] %s242_s28  ;;  %s256_s22 = int_to_ptr.vmem [resolvable:$true] %s255_s22 }
 0x158   :  { %s5721_s17 = scalar_lea.hbm %s6919_s18, 256 }
 0x159   :  { %p5722_p4 = scmp.ne.s32.totalorder %s6919_s18, %s5721_s17  ;;  %p5725_p5 = scmp.lt.u32.totalorder %s5721_s17, %s6919_s18 }
 0x15b   :  { %p5727_p6 = pnand %p5725_p5, %p5722_p4 }
 0x15d   :  { %5730 = shalt.err (!%p5727_p6)
}
 0x15e   :  { %s5731_s16 = scalar_lea.vmem %s243_s28, 256  ;;  %p5736_p8 = scmp.lt.s32.totalorder %s243_s28, %s243_s28 }
 0x15f   :  { %p5732_p7 = scmp.ne.s32.totalorder %s243_s28, %s5731_s16  ;;  %p5737_p9 = scmp.lt.s32.totalorder %s5731_s16, %s5731_s16 }
 0x161   :  { %p5738_p10 = por %p5737_p9, %p5736_p8 }
 0x163   :  { %p5739_p11 = pnand %p5738_p10, %p5732_p7 }
 0x165   :  { %5742 = shalt.err (!%p5739_p11)
}
 0x166   :  { %248 = dma.hbm_to_vmem [thread:$0]  %s6919_s18, 256, %s243_s28, [#allocation30], %s5814_s24, %s5814_s24, %s5815_s2  }
 0x167   :  { %s5743_s25 = scalar_lea.hbm %s6920_s19, 16 }
 0x168   :  { %p5744_p12 = scmp.ne.s32.totalorder %s6920_s19, %s5743_s25  ;;  %p5747_p13 = scmp.lt.u32.totalorder %s5743_s25, %s6920_s19 }
 0x16a   :  { %p5749_p0 = pnand %p5747_p13, %p5744_p12 }
 0x16c   :  { %5752 = shalt.err (!%p5749_p0)
}
 0x16d   :  { %s5753_s7 = scalar_lea.vmem %s256_s22, 16  ;;  %s5757_s5 = scalar_lea.vmem %s256_s22, 32 }
 0x16e   :  { %p5754_p1 = scmp.ne.s32.totalorder %s256_s22, %s5753_s7  ;;  %p5758_p2 = scmp.lt.s32.totalorder %s256_s22, %s256_s22 }
 0x16f   :  { %p5759_p3 = scmp.lt.s32.totalorder %s5757_s5, %s5753_s7 }
 0x171   :  { %p5760_p4 = por %p5759_p3, %p5758_p2 }
 0x173   :  { %p5761_p5 = pnand %p5760_p4, %p5754_p1 }
 0x175   :  { %5764 = shalt.err (!%p5761_p5)
}
 0x176   :  { %258 = dma.hbm_to_vmem [thread:$0]  %s6920_s19, 16, %s256_s22, [#allocation33]  }
 0x177   :  { %5787 = dma.done.wait [#allocation3], 4096  }
 0x178   :  { %5788 = vsyncadd [#allocation3], 4294963200 }
 0x179   :  { %5789 = dma.done.wait [#allocation6], 128  }
 0x17a   :  { %5790 = vsyncadd [#allocation6], 4294967168 }
 0x17b   :  { %5791 = dma.done.wait [#allocation9], 80  }
 0x17c   :  { %5792 = vsyncadd [#allocation9], 4294967216 }
 0x17d   :  { %5793 = dma.done.wait [#allocation12], 1024  }
 0x17e   :  { %5794 = vsyncadd [#allocation12], 4294966272 }
 0x17f   :  { %5795 = dma.done.wait [#allocation15], 528  }
 0x180   :  { %5796 = vsyncadd [#allocation15], 4294966768 }
 0x181   :  { %5797 = dma.done.wait [#allocation18], 4112  }
 0x182   :  { %5798 = vsyncadd [#allocation18], 4294963184 }
 0x183   :  { %5799 = dma.done.wait [#allocation21], 768  }
 0x184   :  { %5800 = vsyncadd [#allocation21], 4294966528 }
 0x185   :  { %5801 = dma.done.wait [#allocation24], 272  }
 0x186   :  { %5802 = vsyncadd [#allocation24], 4294967024 }
 0x187   :  { %5803 = dma.done.wait [#allocation27], 272  }
 0x188   :  { %5804 = vsyncadd [#allocation27], 4294967024 }
 0x189   :  { %5805 = dma.done.wait [#allocation30], 1280  }
 0x18a   :  { %5806 = vsyncadd [#allocation30], 4294966016 }
 0x18b   :  { %5807 = dma.done.wait [#allocation33], 16  }
 0x18c   :  { %5808 = vsyncadd [#allocation33], 4294967280  ;;  %vm435_vm0 = vcmask 1043456   ;;  %v385_v0 = vld [vmem:[#allocation7] sm:$0xf]  ;;  %v321_v2 = vld [vmem:[#allocation2 + $0x8] sm:$0xff] }
 0x18d   :  { %v6222_v1 = vld [vmem:[#allocation2] sm:$0xff]  ;;  %vm386_vm1 = vcmask 64512   ;;  %5094 = vmatprep.subr.msk.bf16.mxu0 %vm435_vm0, %v385_v0  ;;  %v437_v3 = vsel %vm435_vm0, %v385_v0, 0  ;;  %v322_v4 = vld [vmem:[#allocation2 + $0x10] sm:$0xff]  ;;  %v323_v5 = vld [vmem:[#allocation2 + $0x18] sm:$0xff]  ;;  %vm1156_vm2 = vcmask 523264  }
 0x18e   :  { %v369_v6 = vpack.c.bf16 %v321_v2, %v6222_v1  ;;  %v368_v7 = vld [vmem:[#allocation5] sm:$0xf]  ;;  %4485 = vmatpush3.bf16.msra.mxu0 %v437_v3  ;;  %v6227_v8 = vpack.c.bf16 %v322_v4, %v321_v2  ;;  %v370_v9 = vpack.c.bf16 %v323_v5, %v322_v4  ;;  %v325_v11 = vld [vmem:[#allocation2 + $0x28] sm:$0xff]  ;;  %v326_v12 = vld [vmem:[#allocation2 + $0x30] sm:$0xff]  ;;  %vm5836_vm3 = vmmov 0   ;;  %s5838_s19 = smov 32  }
 0x18f   :  { %v324_v10 = vld [vmem:[#allocation2 + $0x20] sm:$0xff]  ;;  %5095 = vmatprep.subr.msk.bf16.mxu0 %vm435_vm0, %v368_v7  ;;  %v649_v13 = vsel %vm435_vm0, %v368_v7, 0  ;;  %v327_v15 = vld [vmem:[#allocation2 + $0x38] sm:$0xff]  ;;  %v329_v17 = vld [vmem:[#allocation2 + $0x48] sm:$0xff]  ;;  %v6234_v19 = vpack.c.bf16 %v326_v12, %v325_v11  ;;  %vm2387_vm4 = vcmask 261120   ;;  %s5839_s6 = smov [#allocation34]  }
 0x190   :  { %4486 = vmatprep.mubr.msk.bf16.mxu0 %vm386_vm1, %v369_v6  ;;  %v371_v14 = vpack.c.bf16 %v325_v11, %v324_v10  ;;  %v328_v16 = vld [vmem:[#allocation2 + $0x40] sm:$0xff]  ;;  %v6232_v18 = vpack.c.bf16 %v324_v10, %v323_v5  ;;  %v330_v20 = vld [vmem:[#allocation2 + $0x50] sm:$0xff]  ;;  %v331_v21 = vld [vmem:[#allocation2 + $0x58] sm:$0xff]  ;;  %v372_v42 = vpack.c.bf16 %v327_v15, %v326_v12  ;;  %v5835_v5 = vmov 0.0   ;;  %s4069_s30 = sshll.u32 %s5839_s6, 4  ;;  %s4070_s30 = int_to_ptr.vmem [resolvable:$true] %s4069_s30 }
 0x191   :  { %v332_v22 = vld [vmem:[#allocation2 + $0x60] sm:$0xff]  ;;  %v6236_v23 = vpack.c.bf16 %v328_v16, %v327_v15  ;;  %4487 = vmatmul.mubr.msk.bf16.vlgmr.msra.gmra.mrb[0].mxu0 %vm386_vm1, %v370_v9  ;;  %v333_v24 = vld [vmem:[#allocation2 + $0x68] sm:$0xff]  ;;  %v334_v25 = vld [vmem:[#allocation2 + $0x70] sm:$0xff]  ;;  %v6239_v27 = vpack.c.bf16 %v330_v20, %v329_v17  ;;  %v373_v48 = vpack.c.bf16 %v329_v17, %v328_v16  ;;  %v374_v56 = vpack.c.bf16 %v331_v21, %v330_v20  ;;  %p5770_p7 = scmp.lt.s32.totalorder %s4070_s30, %s4070_s30 }
 0x192   :  { %v335_v26 = vld [vmem:[#allocation2 + $0x78] sm:$0xff]  ;;  %v6241_v28 = vpack.c.bf16 %v332_v22, %v331_v21  ;;  %4519 = vmatpush3.bf16.msra.mxu0 %v649_v13  ;;  %4490 = vmatprep.mubr.msk.bf16.mxu0 %vm386_vm1, %v371_v14  ;;  %v336_v29 = vld [vmem:[#allocation2 + $0x80] sm:$0xff]  ;;  %v337_v30 = vld [vmem:[#allocation2 + $0x88] sm:$0xff]  ;;  %v6244_v32 = vpack.c.bf16 %v334_v25, %v333_v24  ;;  %v375_v57 = vpack.c.bf16 %v333_v24, %v332_v22 }
 0x193   :  { %v338_v31 = vld [vmem:[#allocation2 + $0x90] sm:$0xff]  ;;  %v339_v33 = vld [vmem:[#allocation2 + $0x98] sm:$0xff]  ;;  %v340_v34 = vld [vmem:[#allocation2 + $0xa0] sm:$0xff]  ;;  %v6246_v36 = vpack.c.bf16 %v336_v29, %v335_v26  ;;  %v376_v58 = vpack.c.bf16 %v335_v26, %v334_v25  ;;  %v377_v59 = vpack.c.bf16 %v337_v30, %v336_v29  ;;  %v352_v6 = vpack.c.bf16 %v6222_v1, %v5835_v5 }
 0x194   :  { %v341_v35 = vld [vmem:[#allocation2 + $0xa8] sm:$0xff]  ;;  %v6248_v37 = vpack.c.bf16 %v338_v31, %v337_v30  ;;  %v342_v38 = vld [vmem:[#allocation2 + $0xb0] sm:$0xff]  ;;  %v343_v39 = vld [vmem:[#allocation2 + $0xb8] sm:$0xff]  ;;  %v6250_v41 = vpack.c.bf16 %v340_v34, %v339_v33  ;;  %v378_v60 = vpack.c.bf16 %v339_v33, %v338_v31 }
 0x195   :  { %v344_v40 = vld [vmem:[#allocation2 + $0xc0] sm:$0xff]  ;;  %v345_v43 = vld [vmem:[#allocation2 + $0xc8] sm:$0xff]  ;;  %v346_v44 = vld [vmem:[#allocation2 + $0xd0] sm:$0xff]  ;;  %v6252_v46 = vpack.c.bf16 %v342_v38, %v341_v35  ;;  %v379_v61 = vpack.c.bf16 %v341_v35, %v340_v34  ;;  %v380_v62 = vpack.c.bf16 %v343_v39, %v342_v38 }
 0x196   :  { %v347_v45 = vld [vmem:[#allocation2 + $0xd8] sm:$0xff]  ;;  %v6254_v47 = vpack.c.bf16 %v344_v40, %v343_v39  ;;  %v348_v49 = vld [vmem:[#allocation2 + $0xe0] sm:$0xff]  ;;  %v349_v50 = vld [vmem:[#allocation2 + $0xe8] sm:$0xff]  ;;  %v365_v52 = vpack.c.bf16 %v346_v44, %v345_v43  ;;  %v381_v63 = vpack.c.bf16 %v345_v43, %v344_v40 }
 0x197   :  { %v350_v51 = vld [vmem:[#allocation2 + $0xf0] sm:$0xff]  ;;  %v813_v53 = vld [vmem:[#allocation8] sm:$0xf]  ;;  %v366_v54 = vpack.c.bf16 %v348_v49, %v347_v45  ;;  %v382_v0 = vpack.c.bf16 %v347_v45, %v346_v44  ;;  %v383_v2 = vpack.c.bf16 %v349_v50, %v348_v49  ;;  %v351_v3 = vld [vmem:[#allocation2 + $0xf8] sm:$0xff] }
 0x198   :  { %v367_v55 = vpack.c.bf16 %v350_v51, %v349_v50  ;;  %5096 = vmatprep.subr.msk.bf16.mxu0 %vm435_vm0, %v813_v53  ;;  %v384_v4 = vpack.c.bf16 %v351_v3, %v350_v51  ;;  %v818_v7 = vsel %vm435_vm0, %v813_v53, 0  ;;  %v812_v1 = vpack.c.bf16 %v5835_v5, %v351_v3  ;;  %v5127_v9 = vld [vmem:[#allocation13 + $0x8] sm:$0xff]   ;;  %v5128_v10 = vld [vmem:[#allocation13 + $0x10] sm:$0xff]   ;;  %v5129_v11 = vld [vmem:[#allocation13 + $0x18] sm:$0xff]  }
 0x199   :  { %4491 = vmatmul.mubr.msk.bf16.gmra.mrb[4].mxu0 %vm386_vm1, %v372_v42  ;;  %v6331_v12 = vld [vmem:[#allocation11] sm:$0xff]   ;;  %v6334_v13 = vld [vmem:[#allocation10] ss:$0 sm:$0xff] }
 0x19a   :  { %4494 = vmatprep.mubr.msk.bf16.mxu0 %vm386_vm1, %v373_v48 }
 0x1a1   :  { %4495 = vmatmul.mubr.msk.bf16.gmra.mrb[8].mxu0 %vm386_vm1, %v374_v56 }
 0x1a2   :  { %4498 = vmatprep.mubr.msk.bf16.mxu0 %vm386_vm1, %v375_v57 }
 0x1a9   :  { %4499 = vmatmul.mubr.msk.bf16.gmra.mrb[12].mxu0 %vm386_vm1, %v376_v58 }
 0x1aa   :  { %4502 = vmatprep.mubr.msk.bf16.mxu0 %vm386_vm1, %v377_v59 }
 0x1b1   :  { %4503 = vmatmul.mubr.msk.bf16.gmra.mrb[16].mxu0 %vm386_vm1, %v378_v60 }
 0x1b2   :  { %4506 = vmatprep.mubr.msk.bf16.mxu0 %vm386_vm1, %v379_v61 }
 0x1b9   :  { %4507 = vmatmul.mubr.msk.bf16.gmra.mrb[20].mxu0 %vm386_vm1, %v380_v62 }
 0x1ba   :  { %4510 = vmatprep.mubr.msk.bf16.mxu0 %vm386_vm1, %v381_v63 }
 0x1c1   :  { %4511 = vmatmul.mubr.msk.bf16.gmra.mrb[24].mxu0 %vm386_vm1, %v382_v0 }
 0x1c2   :  { %4514 = vmatprep.mubr.msk.bf16.mxu0 %vm386_vm1, %v383_v2 }
 0x1c9   :  { %4515 = vmatmul.mubr.msk.bf16.gmra.mrb[28].mxu0 %vm386_vm1, %v384_v4 }
 0x1ca   :  { %4520 = vmatprep.mubr.msk.bf16.mxu0 %vm386_vm1, %v352_v6 }
 0x1d1   :  { %4521 = vmatmul.mubr.msk.bf16.vlgmr.msra.gmra.mrb[0].mxu0 %vm386_vm1, %v6227_v8 }
 0x1d2   :  { %4553 = vmatpush3.bf16.msra.mxu0 %v818_v7  ;;  %4524 = vmatprep.mubr.msk.bf16.mxu0 %vm386_vm1, %v6232_v18 }
 0x1d9   :  { %4525 = vmatmul.mubr.msk.bf16.gmra.mrb[4].mxu0 %vm386_vm1, %v6234_v19 }
 0x1da   :  { %4528 = vmatprep.mubr.msk.bf16.mxu0 %vm386_vm1, %v6236_v23 }
 0x1e1   :  { %4529 = vmatmul.mubr.msk.bf16.gmra.mrb[8].mxu0 %vm386_vm1, %v6239_v27 }
 0x1e2   :  { %4532 = vmatprep.mubr.msk.bf16.mxu0 %vm386_vm1, %v6241_v28 }
 0x1e9   :  { %4533 = vmatmul.mubr.msk.bf16.gmra.mrb[12].mxu0 %vm386_vm1, %v6244_v32 }
 0x1ea   :  { %4536 = vmatprep.mubr.msk.bf16.mxu0 %vm386_vm1, %v6246_v36 }
 0x1f1   :  { %4537 = vmatmul.mubr.msk.bf16.gmra.mrb[16].mxu0 %vm386_vm1, %v6248_v37 }
 0x1f2   :  { %4540 = vmatprep.mubr.msk.bf16.mxu0 %vm386_vm1, %v6250_v41 }
 0x1f9   :  { %4541 = vmatmul.mubr.msk.bf16.gmra.mrb[20].mxu0 %vm386_vm1, %v6252_v46 }
 0x1fa   :  { %4544 = vmatprep.mubr.msk.bf16.mxu0 %vm386_vm1, %v6254_v47 }
 0x201   :  { %4545 = vmatmul.mubr.msk.bf16.gmra.mrb[24].mxu0 %vm386_vm1, %v365_v52 }
 0x202   :  { %4548 = vmatprep.mubr.msk.bf16.mxu0 %vm386_vm1, %v366_v54 }
 0x209   :  { %4549 = vmatmul.mubr.msk.bf16.gmra.mrb[28].mxu0 %vm386_vm1, %v367_v55 }
 0x20a   :  { %4554 = vmatprep.mubr.msk.bf16.mxu0 %vm386_vm1, %v6227_v8  ;;  %v5126_v8 = vld [vmem:[#allocation13] sm:$0xff]  }
 0x20b   :  { %4586 = vmatprep.subr.bf16.mxu0 %v5126_v8  ;;  %4990 = vmatprep.subr.bf16.mxu1 %v5126_v8 }
 0x20c   :  { %4994 = vmatpush3.bf16.msra.mxu1 %v5126_v8 }
 0x20d   :  { %4991 = vmatprep.subr.bf16.mxu1 %v5127_v9 }
 0x210   :  { %4995 = vmatpush3.bf16.msra.mxu1 %v5127_v9 }
 0x211   :  { %4555 = vmatmul.mubr.msk.bf16.vlgmr.msra.gmra.mrb[0].mxu0 %vm386_vm1, %v6232_v18  ;;  %4992 = vmatprep.subr.bf16.mxu1 %v5128_v10 }
 0x212   :  { %4558 = vmatprep.mubr.msk.bf16.mxu0 %vm386_vm1, %v6234_v19  ;;  %4587 = vmatpush3.bf16.msra.mxu0 %v5126_v8 }
 0x213   :  { %4588 = vmatprep.subr.bf16.mxu0 %v5127_v9 }
 0x214   :  { %4996 = vmatpush3.bf16.msra.mxu1 %v5128_v10 }
 0x215   :  { %4993 = vmatprep.subr.bf16.mxu1 %v5129_v11 }
 0x216   :  { %4589 = vmatpush3.bf16.msra.mxu0 %v5127_v9 }
 0x217   :  { %4590 = vmatprep.subr.bf16.mxu0 %v5128_v10 }
 0x218   :  { %4997 = vmatpush3.bf16.msra.mxu1 %v5129_v11 }
 0x219   :  { %4559 = vmatmul.mubr.msk.bf16.gmra.mrb[4].mxu0 %vm386_vm1, %v6236_v23  ;;  %4610 = vmatprep.subr.bf16.mxu1 %v6331_v12 }
 0x21a   :  { %4562 = vmatprep.mubr.msk.bf16.mxu0 %vm386_vm1, %v6239_v27  ;;  %4591 = vmatpush3.bf16.msra.mxu0 %v5128_v10 }
 0x21b   :  { %4592 = vmatprep.subr.bf16.mxu0 %v5129_v11 }
 0x21e   :  { %4593 = vmatpush3.bf16.msra.mxu0 %v5129_v11 }
 0x21f   :  { %4730 = vmatprep.subr.bf16.mxu0 %v5835_v5 }
 0x221   :  { %4563 = vmatmul.mubr.msk.bf16.gmra.mrb[8].mxu0 %vm386_vm1, %v6241_v28 }
 0x222   :  { %4566 = vmatprep.mubr.msk.bf16.mxu0 %vm386_vm1, %v6244_v32 }
 0x229   :  { %4567 = vmatmul.mubr.msk.bf16.gmra.mrb[12].mxu0 %vm386_vm1, %v6246_v36 }
 0x22a   :  { %4570 = vmatprep.mubr.msk.bf16.mxu0 %vm386_vm1, %v6248_v37 }
 0x231   :  { %4571 = vmatmul.mubr.msk.bf16.gmra.mrb[16].mxu0 %vm386_vm1, %v6250_v41 }
 0x232   :  { %4574 = vmatprep.mubr.msk.bf16.mxu0 %vm386_vm1, %v6252_v46 }
 0x239   :  { %4575 = vmatmul.mubr.msk.bf16.gmra.mrb[20].mxu0 %vm386_vm1, %v6254_v47 }
 0x23a   :  { %4578 = vmatprep.mubr.msk.bf16.mxu0 %vm386_vm1, %v365_v52 }
 0x241   :  { %4579 = vmatmul.mubr.msk.bf16.gmra.mrb[24].mxu0 %vm386_vm1, %v366_v54 }
 0x242   :  { %4582 = vmatprep.mubr.msk.bf16.mxu0 %vm386_vm1, %v367_v55 }
 0x249   :  { %4583 = vmatmul.mubr.msk.bf16.gmra.mrb[28].mxu0 %vm386_vm1, %v812_v1 }
 0x2e4   :  { %v4556_v14 = vpop.f32.mrb[0].mxu0 }
 0x2e5   :  { %v1022_v15 = vadd.f32 %v4556_v14, %v6334_v13  ;;  %v854_v16 = vpop.f32.mrb[1].mxu0 }
 0x2e6   :  { %v1020_v17 = vadd.f32 %v6334_v13, %v854_v16  ;;  %v4557_v18 = vpop.f32.mrb[2].mxu0 }
 0x2e7   :  { %v1023_v19 = vadd.f32 %v4557_v18, %v6334_v13  ;;  %v857_v20 = vpop.f32.mrb[3].mxu0  ;;  %v1054_v22 = vmax.f32 %v1022_v15, 0.0 }
 0x2e8   :  { %v1021_v21 = vadd.f32 %v6334_v13, %v857_v20  ;;  %v1052_v24 = vmax.f32 %v1020_v17, 0.0 }
 0x2e9   :  { %v1055_v23 = vmax.f32 %v1023_v19, 0.0 }
 0x2ea   :  { %v1053_v25 = vmax.f32 %v1021_v21, 0.0 }
 0x2eb   :  { %v1085_v26 = vmax.f32 %v1054_v22, %v1055_v23 }
 0x2ec   :  { %v6340_v27 = vmax.f32 %v1052_v24, %v1053_v25  ;;  %v4560_v28 = vpop.f32.mrb[4].mxu0 }
 0x2ed   :  { %v1026_v29 = vadd.f32 %v4560_v28, %v6334_v13  ;;  %v870_v30 = vpop.f32.mrb[5].mxu0 }
 0x2ee   :  { %v1116_v31 = vpack.c.bf16 %v1085_v26, %v6340_v27  ;;  %v1024_v32 = vadd.f32 %v6334_v13, %v870_v30  ;;  %v4561_v33 = vpop.f32.mrb[6].mxu0 }
 0x2ef   :  { %v1027_v34 = vadd.f32 %v4561_v33, %v6334_v13  ;;  %v873_v35 = vpop.f32.mrb[7].mxu0  ;;  %v1058_v37 = vmax.f32 %v1026_v29, 0.0 }
 0x2f0   :  { %v1025_v36 = vadd.f32 %v6334_v13, %v873_v35  ;;  %4594 = vmatprep.mubr.msk.bf16.mxu0 %vm1156_vm2, %v1116_v31  ;;  %v1056_v39 = vmax.f32 %v1024_v32, 0.0 }
 0x2f1   :  { %v1059_v38 = vmax.f32 %v1027_v34, 0.0 }
 0x2f2   :  { %v1057_v40 = vmax.f32 %v1025_v36, 0.0 }
 0x2f3   :  { %v1087_v41 = vmax.f32 %v1058_v37, %v1059_v38 }
 0x2f4   :  { %v1086_v42 = vmax.f32 %v1056_v39, %v1057_v40  ;;  %v4564_v43 = vpop.f32.mrb[8].mxu0 }
 0x2f5   :  { %v1030_v44 = vadd.f32 %v4564_v43, %v6334_v13  ;;  %v886_v45 = vpop.f32.mrb[9].mxu0 }
 0x2f6   :  { %v6349_v46 = vpack.c.bf16 %v1086_v42, %v1085_v26  ;;  %v1117_v47 = vpack.c.bf16 %v1087_v41, %v1086_v42  ;;  %v1028_v48 = vadd.f32 %v6334_v13, %v886_v45  ;;  %v4565_v49 = vpop.f32.mrb[10].mxu0 }
 0x2f7   :  { %v1031_v50 = vadd.f32 %v4565_v49, %v6334_v13  ;;  %v889_v51 = vpop.f32.mrb[11].mxu0  ;;  %v1062_v53 = vmax.f32 %v1030_v44, 0.0 }
 0x2f8   :  { %v1029_v52 = vadd.f32 %v6334_v13, %v889_v51  ;;  %4595 = vmatmul.mubr.msk.bf16.vlgmr.msra.gmra.mrb[32].mxu0 %vm1156_vm2, %v1117_v47  ;;  %v1060_v55 = vmax.f32 %v1028_v48, 0.0 }
 0x2f9   :  { %v1063_v54 = vmax.f32 %v1031_v50, 0.0 }
 0x2fa   :  { %v1061_v56 = vmax.f32 %v1029_v52, 0.0 }
 0x2fb   :  { %v1089_v57 = vmax.f32 %v1062_v53, %v1063_v54 }
 0x2fc   :  { %v1088_v58 = vmax.f32 %v1060_v55, %v1061_v56  ;;  %v4568_v59 = vpop.f32.mrb[12].mxu0  ;;  %v5131_v55 = vld [vmem:[#allocation11 + $0x8] sm:$0xff]  }
 0x2fd   :  { %v1034_v60 = vadd.f32 %v4568_v59, %v6334_v13  ;;  %v902_v61 = vpop.f32.mrb[13].mxu0 }
 0x2fe   :  { %v6356_v62 = vpack.c.bf16 %v1088_v58, %v1087_v41  ;;  %v1118_v63 = vpack.c.bf16 %v1089_v57, %v1088_v58  ;;  %v1032_v0 = vadd.f32 %v6334_v13, %v902_v61  ;;  %v4569_v2 = vpop.f32.mrb[14].mxu0 }
 0x2ff   :  { %v1035_v3 = vadd.f32 %v4569_v2, %v6334_v13  ;;  %v905_v4 = vpop.f32.mrb[15].mxu0  ;;  %v1066_v7 = vmax.f32 %v1034_v60, 0.0 }
 0x300   :  { %v1033_v6 = vadd.f32 %v6334_v13, %v905_v4  ;;  %4598 = vmatprep.mubr.msk.bf16.mxu0 %vm1156_vm2, %v1118_v63  ;;  %v1064_v8 = vmax.f32 %v1032_v0, 0.0  ;;  %v5132_v0 = vld [vmem:[#allocation11 + $0x10] sm:$0xff]  }
 0x301   :  { %v1067_v1 = vmax.f32 %v1035_v3, 0.0 }
 0x302   :  { %v1065_v9 = vmax.f32 %v1033_v6, 0.0 }
 0x303   :  { %v1091_v10 = vmax.f32 %v1066_v7, %v1067_v1 }
 0x304   :  { %v1090_v11 = vmax.f32 %v1064_v8, %v1065_v9  ;;  %v4572_v14 = vpop.f32.mrb[16].mxu0 }
 0x305   :  { %v1038_v15 = vadd.f32 %v4572_v14, %v6334_v13  ;;  %v918_v16 = vpop.f32.mrb[17].mxu0 }
 0x306   :  { %v6363_v17 = vpack.c.bf16 %v1090_v11, %v1089_v57  ;;  %v1119_v18 = vpack.c.bf16 %v1091_v10, %v1090_v11  ;;  %v1036_v19 = vadd.f32 %v6334_v13, %v918_v16  ;;  %v4573_v20 = vpop.f32.mrb[18].mxu0  ;;  %v5133_v11 = vld [vmem:[#allocation11 + $0x18] sm:$0xff]  }
 0x307   :  { %v1039_v21 = vadd.f32 %v4573_v20, %v6334_v13  ;;  %v921_v22 = vpop.f32.mrb[19].mxu0  ;;  %v1070_v24 = vmax.f32 %v1038_v15, 0.0 }
 0x308   :  { %v1037_v23 = vadd.f32 %v6334_v13, %v921_v22  ;;  %4599 = vmatmul.mubr.msk.bf16.gmra.mrb[36].mxu0 %vm1156_vm2, %v1119_v18  ;;  %v1068_v26 = vmax.f32 %v1036_v19, 0.0 }
 0x309   :  { %v1071_v25 = vmax.f32 %v1039_v21, 0.0  ;;  %v5134_v21 = vld [vmem:[#allocation14] sm:$0xff]   ;;  %4738 = vmatprep.mubr.msk.bf16.mxu0 %vm5836_vm3, %v5835_v5 }
 0x30a   :  { %v1069_v28 = vmax.f32 %v1037_v23, 0.0 }
 0x30b   :  { %v1093_v29 = vmax.f32 %v1070_v24, %v1071_v25 }
 0x30c   :  { %v1092_v30 = vmax.f32 %v1068_v26, %v1069_v28  ;;  %v4576_v31 = vpop.f32.mrb[20].mxu0  ;;  %v1100_v26 = vpack.c.bf16 %v6340_v27, %v5835_v5  ;;  %v5136_v28 = vld [vmem:[#allocation14 + $0x10] sm:$0xff]   ;;  %v5138_v27 = vld [vmem:[#allocation17 + $0x20] sm:$0xff]  }
 0x30d   :  { %v1042_v32 = vadd.f32 %v4576_v31, %v6334_v13  ;;  %v934_v33 = vpop.f32.mrb[21].mxu0  ;;  %v5144_v31 = vld [vmem:[#allocation17 + $0xc0] sm:$0xff]  }
 0x30e   :  { %v6370_v34 = vpack.c.bf16 %v1092_v30, %v1091_v10  ;;  %v1040_v35 = vadd.f32 %v6334_v13, %v934_v33  ;;  %v4577_v36 = vpop.f32.mrb[22].mxu0  ;;  %v1120_v37 = vpack.c.bf16 %v1093_v29, %v1092_v30  ;;  %v5139_v30 = vld [vmem:[#allocation17 + $0x28] sm:$0xff]   ;;  %4731 = vmatpush3.bf16.msra.mxu0 %v5144_v31  ;;  %v5148_v33 = vld [vmem:[#allocation17 + $0xd0] sm:$0xff]  }
 0x30f   :  { %v1043_v38 = vadd.f32 %v4577_v36, %v6334_v13  ;;  %v937_v39 = vpop.f32.mrb[23].mxu0  ;;  %v1074_v41 = vmax.f32 %v1042_v32, 0.0  ;;  %4732 = vmatprep.subr.bf16.mxu0 %v5835_v5  ;;  %v5146_v32 = vld [vmem:[#allocation17 + $0xc8] sm:$0xff]  }
 0x310   :  { %v1041_v40 = vadd.f32 %v6334_v13, %v937_v39  ;;  %4602 = vmatprep.mubr.msk.bf16.mxu1 %vm1156_vm2, %v1120_v37  ;;  %v1072_v43 = vmax.f32 %v1040_v35, 0.0  ;;  %v6431_v35 = vld [vmem:[#allocation20] sm:$0xff]  }
 0x311   :  { %v1075_v42 = vmax.f32 %v1043_v38, 0.0 }
 0x312   :  { %v1073_v44 = vmax.f32 %v1041_v40, 0.0  ;;  %4733 = vmatpush3.bf16.msra.mxu0 %v5146_v32 }
 0x313   :  { %v1095_v45 = vmax.f32 %v1074_v41, %v1075_v42  ;;  %4734 = vmatprep.subr.bf16.mxu0 %v5835_v5 }
 0x314   :  { %v1094_v47 = vmax.f32 %v1072_v43, %v1073_v44  ;;  %v4580_v48 = vpop.f32.mrb[24].mxu0 }
 0x315   :  { %v1046_v49 = vadd.f32 %v4580_v48, %v6334_v13  ;;  %v950_v50 = vpop.f32.mrb[25].mxu0 }
 0x316   :  { %v6377_v51 = vpack.c.bf16 %v1094_v47, %v1093_v29  ;;  %v1121_v52 = vpack.c.bf16 %v1095_v45, %v1094_v47  ;;  %v1044_v53 = vadd.f32 %v6334_v13, %v950_v50  ;;  %v4581_v54 = vpop.f32.mrb[26].mxu0  ;;  %v5137_v29 = vld [vmem:[#allocation14 + $0x18] sm:$0xff]   ;;  %4735 = vmatpush3.bf16.msra.mxu0 %v5148_v33 }
 0x317   :  { %v1047_v56 = vadd.f32 %v4581_v54, %v6334_v13  ;;  %v953_v57 = vpop.f32.mrb[27].mxu0  ;;  %v1078_v59 = vmax.f32 %v1046_v49, 0.0  ;;  %4736 = vmatprep.subr.bf16.mxu0 %v5835_v5 }
 0x318   :  { %v1045_v58 = vadd.f32 %v6334_v13, %v953_v57  ;;  %4603 = vmatmul.mubr.msk.bf16.vlgmr.msra.gmra.mrb[0].mxu1 %vm1156_vm2, %v1121_v52  ;;  %v1076_v61 = vmax.f32 %v1044_v53, 0.0 }
 0x319   :  { %v1079_v60 = vmax.f32 %v1047_v56, 0.0  ;;  %4611 = vmatpush3.bf16.msra.mxu1 %v6331_v12 }
 0x31a   :  { %v1077_v63 = vmax.f32 %v1045_v58, 0.0  ;;  %4612 = vmatprep.subr.bf16.mxu1 %v5131_v55 }
 0x31b   :  { %v1097_v2 = vmax.f32 %v1078_v59, %v1079_v60 }
 0x31c   :  { %v1096_v3 = vmax.f32 %v1076_v61, %v1077_v63  ;;  %v4584_v4 = vpop.f32.mrb[28].mxu0 }
 0x31d   :  { %v1050_v6 = vadd.f32 %v4584_v4, %v6334_v13  ;;  %v966_v7 = vpop.f32.mrb[29].mxu0  ;;  %4613 = vmatpush3.bf16.msra.mxu1 %v5131_v55 }
 0x31e   :  { %v1106_v1 = vpack.c.bf16 %v1096_v3, %v1095_v45  ;;  %v1122_v8 = vpack.c.bf16 %v1097_v2, %v1096_v3  ;;  %v1048_v9 = vadd.f32 %v6334_v13, %v966_v7  ;;  %v4585_v10 = vpop.f32.mrb[30].mxu0  ;;  %4614 = vmatprep.subr.bf16.mxu1 %v5132_v0  ;;  %v6434_v45 = vld [vmem:[#allocation16] ss:$0 sm:$0xff] }
 0x31f   :  { %v1051_v12 = vadd.f32 %v4585_v10, %v6334_v13  ;;  %v969_v14 = vpop.f32.mrb[31].mxu0  ;;  %v1082_v16 = vmax.f32 %v1050_v6, 0.0 }
 0x320   :  { %v1049_v15 = vadd.f32 %v6334_v13, %v969_v14  ;;  %4606 = vmatprep.mubr.msk.bf16.mxu1 %vm1156_vm2, %v1122_v8  ;;  %v1080_v19 = vmax.f32 %v1048_v9, 0.0  ;;  %v5135_v13 = vld [vmem:[#allocation14 + $0x8] sm:$0xff]  }
 0x321   :  { %v1083_v18 = vmax.f32 %v1051_v12, 0.0  ;;  %4615 = vmatpush3.bf16.msra.mxu1 %v5132_v0 }
 0x322   :  { %v1081_v20 = vmax.f32 %v1049_v15, 0.0  ;;  %4616 = vmatprep.subr.bf16.mxu1 %v5133_v11 }
 0x323   :  { %v1099_v22 = vmax.f32 %v1082_v16, %v1083_v18 }
 0x324   :  { %v1098_v23 = vmax.f32 %v1080_v19, %v1081_v20  ;;  %v5143_v19 = vld [vmem:[#allocation17 + $0x8] sm:$0xff]  }
 0x325   :  { %4617 = vmatpush3.bf16.msra.mxu1 %v5133_v11 }
 0x326   :  { %v1107_v24 = vpack.c.bf16 %v1098_v23, %v1097_v2  ;;  %v1123_v25 = vpack.c.bf16 %v1099_v22, %v1098_v23  ;;  %4634 = vmatprep.subr.bf16.mxu1 %v5134_v21 }
 0x328   :  { %4607 = vmatmul.mubr.msk.bf16.gmra.mrb[4].mxu1 %vm1156_vm2, %v1123_v25 }
 0x329   :  { %4618 = vmatprep.mubr.msk.bf16.mxu1 %vm1156_vm2, %v1100_v26 }
 0x330   :  { %4619 = vmatmul.mubr.msk.bf16.vlgmr.msra.gmra.mrb[8].mxu1 %vm1156_vm2, %v6349_v46 }
 0x331   :  { %4622 = vmatprep.mubr.msk.bf16.mxu1 %vm1156_vm2, %v6356_v62  ;;  %4635 = vmatpush3.bf16.msra.mxu1 %v5134_v21 }
 0x332   :  { %4636 = vmatprep.subr.bf16.mxu1 %v5135_v13 }
 0x335   :  { %4637 = vmatpush3.bf16.msra.mxu1 %v5135_v13 }
 0x336   :  { %4638 = vmatprep.subr.bf16.mxu1 %v5136_v28 }
 0x338   :  { %4623 = vmatmul.mubr.msk.bf16.gmra.mrb[12].mxu1 %vm1156_vm2, %v6363_v17 }
 0x339   :  { %4626 = vmatprep.mubr.msk.bf16.mxu1 %vm1156_vm2, %v6370_v34  ;;  %4639 = vmatpush3.bf16.msra.mxu1 %v5136_v28 }
 0x33a   :  { %4640 = vmatprep.subr.bf16.mxu1 %v5137_v29 }
 0x33d   :  { %4641 = vmatpush3.bf16.msra.mxu1 %v5137_v29 }
 0x33e   :  { %4658 = vmatprep.subr.bf16.mxu1 %v5835_v5 }
 0x340   :  { %4627 = vmatmul.mubr.msk.bf16.gmra.mrb[0].mxu1 %vm1156_vm2, %v6377_v51 }
 0x341   :  { %4630 = vmatprep.mubr.msk.bf16.mxu1 %vm1156_vm2, %v1106_v1 }
 0x348   :  { %4631 = vmatmul.mubr.msk.bf16.gmra.mrb[4].mxu1 %vm1156_vm2, %v1107_v24 }
 0x349   :  { %4642 = vmatprep.mubr.msk.bf16.mxu1 %vm1156_vm2, %v6349_v46  ;;  %v5140_v46 = vld [vmem:[#allocation17 + $0x30] sm:$0xff]  }
 0x350   :  { %4643 = vmatmul.mubr.msk.bf16.vlgmr.msra.gmra.mrb[8].mxu1 %vm1156_vm2, %v6356_v62  ;;  %v1423_v62 = vpack.c.bf16 %v5835_v5, %v1099_v22 }
 0x351   :  { %4646 = vmatprep.mubr.msk.bf16.mxu1 %vm1156_vm2, %v6363_v17  ;;  %4659 = vmatpush3.bf16.msra.mxu1 %v5138_v27  ;;  %v5141_v17 = vld [vmem:[#allocation17 + $0x38] sm:$0xff]  }
 0x352   :  { %4660 = vmatprep.subr.bf16.mxu1 %v5835_v5 }
 0x355   :  { %4661 = vmatpush3.bf16.msra.mxu1 %v5139_v30  ;;  %v5145_v30 = vld [vmem:[#allocation17 + $0x10] sm:$0xff]  }
 0x356   :  { %4662 = vmatprep.subr.bf16.mxu1 %v5835_v5 }
 0x358   :  { %4647 = vmatmul.mubr.msk.bf16.gmra.mrb[12].mxu1 %vm1156_vm2, %v6370_v34  ;;  %v5150_v34 = vld [vmem:[#allocation17 + $0xd8] sm:$0xff]  }
 0x359   :  { %4650 = vmatprep.mubr.msk.bf16.mxu1 %vm1156_vm2, %v6377_v51  ;;  %4663 = vmatpush3.bf16.msra.mxu1 %v5140_v46 }
 0x35a   :  { %4664 = vmatprep.subr.bf16.mxu1 %v5835_v5  ;;  %4737 = vmatpush3.bf16.msra.mxu0 %v5150_v34 }
 0x35b   :  { %4754 = vmatprep.subr.bf16.mxu0 %v6431_v35 }
 0x35d   :  { %4665 = vmatpush3.bf16.msra.mxu1 %v5141_v17 }
 0x35e   :  { %4670 = vmatprep.subr.bf16.mxu1 %v5835_v5 }
 0x360   :  { %4651 = vmatmul.mubr.msk.bf16.gmra.mrb[0].mxu1 %vm1156_vm2, %v1106_v1  ;;  %v5142_v1 = vld [vmem:[#allocation17] sm:$0xff]  }
 0x361   :  { %4654 = vmatprep.mubr.msk.bf16.mxu1 %vm1156_vm2, %v1107_v24 }
 0x368   :  { %4655 = vmatmul.mubr.msk.bf16.gmra.mrb[4].mxu1 %vm1156_vm2, %v1423_v62 }
 0x369   :  { %4666 = vmatprep.mubr.msk.bf16.mxu1 %vm5836_vm3, %v5835_v5 }
 0x3cb   :  { %v4596_v36 = vpop.f32.mrb[32].mxu0 }
 0x3cc   :  { %v1215_v37 = vpop.f32.mrb[33].mxu0 }
 0x3cd   :  { %v4597_v38 = vpop.f32.mrb[34].mxu0 }
 0x3ce   :  { %v1218_v39 = vpop.f32.mrb[35].mxu0 }
 0x3db   :  { %v4600_v40 = vpop.f32.mrb[36].mxu0 }
 0x3dc   :  { %v1231_v41 = vpop.f32.mrb[37].mxu0 }
 0x3dd   :  { %v4601_v42 = vpop.f32.mrb[38].mxu0 }
 0x3de   :  { %v1234_v43 = vpop.f32.mrb[39].mxu0 }
 0x423   :  { %v4644_v44 = vpop.f32.mrb[8].mxu1 }
 0x424   :  { %v4998_v47 = vadd.f32 %v4644_v44, %v4596_v36  ;;  %v1493_v48 = vpop.f32.mrb[9].mxu1 }
 0x425   :  { %v4999_v49 = vadd.f32 %v1493_v48, %v1215_v37  ;;  %v4645_v50 = vpop.f32.mrb[10].mxu1  ;;  %v5147_v37 = vld [vmem:[#allocation17 + $0x18] sm:$0xff]   ;;  %v5149_v48 = vld [vmem:[#allocation17 + $0x40] sm:$0xff]  }
 0x426   :  { %v1581_v51 = vadd.f32 %v4998_v47, %v6434_v45  ;;  %v5000_v52 = vadd.f32 %v4645_v50, %v4597_v38  ;;  %v1496_v53 = vpop.f32.mrb[11].mxu1 }
 0x427   :  { %v1579_v54 = vadd.f32 %v4999_v49, %v6434_v45  ;;  %v5001_v55 = vadd.f32 %v1496_v53, %v1218_v39 }
 0x428   :  { %v1582_v56 = vadd.f32 %v5000_v52, %v6434_v45  ;;  %v1597_v58 = vmax.f32 %v1581_v51, 0.0 }
 0x429   :  { %v1580_v57 = vadd.f32 %v5001_v55, %v6434_v45  ;;  %v1595_v60 = vmax.f32 %v1579_v54, 0.0 }
 0x42a   :  { %v1598_v59 = vmax.f32 %v1582_v56, 0.0 }
 0x42b   :  { %v1596_v61 = vmax.f32 %v1580_v57, 0.0  ;;  %v4648_v63 = vpop.f32.mrb[12].mxu1  ;;  %v5151_v57 = vld [vmem:[#allocation17 + $0x48] sm:$0xff]  }
 0x42c   :  { %v6440_v0 = vmax.f32 %v1597_v58, %v1598_v59  ;;  %v5002_v2 = vadd.f32 %v4648_v63, %v4600_v40  ;;  %v1509_v3 = vpop.f32.mrb[13].mxu1  ;;  %v5154_v63 = vld [vmem:[#allocation20 + $0x8] sm:$0xff]  }
 0x42d   :  { %v6442_v4 = vmax.f32 %v1595_v60, %v1596_v61  ;;  %v5003_v6 = vadd.f32 %v1509_v3, %v1231_v41  ;;  %v4649_v7 = vpop.f32.mrb[14].mxu1  ;;  %v5156_v3 = vld [vmem:[#allocation20 + $0x10] sm:$0xff]  }
 0x42e   :  { %v1684_v8 = vpack.c.bf16 %v6440_v0, %v6440_v0  ;;  %v1585_v9 = vadd.f32 %v5002_v2, %v6434_v45  ;;  %v5004_v10 = vadd.f32 %v4649_v7, %v4601_v42  ;;  %v1512_v11 = vpop.f32.mrb[15].mxu1  ;;  %v5155_v2 = vld [vmem:[#allocation17 + $0x58] sm:$0xff]  }
 0x42f   :  { %v2255_v12 = vpack.c.bf16 %v6440_v0, %v6442_v4  ;;  %v1583_v14 = vadd.f32 %v5003_v6, %v6434_v45  ;;  %v5005_v15 = vadd.f32 %v1512_v11, %v1234_v43  ;;  %v1683_v49 = vpack.c.bf16 %v6442_v4, %v6442_v4  ;;  %v5157_v6 = vld [vmem:[#allocation17 + $0x60] sm:$0xff]   ;;  %v5160_v0 = vld [vmem:[#allocation17 + $0x70] sm:$0xff]   ;;  %v5161_v4 = vld [vmem:[#allocation17 + $0x78] sm:$0xff]  }
 0x430   :  { %v1586_v16 = vadd.f32 %v5004_v10, %v6434_v45  ;;  %4667 = vmatmul.mubr.msk.bf16.vlgmr.msra.gmra.mrb[16].mxu1 %vm1156_vm2, %v1684_v8  ;;  %v1601_v20 = vmax.f32 %v1585_v9, 0.0  ;;  %v5158_v7 = vld [vmem:[#allocation20 + $0x18] sm:$0xff]   ;;  %v5163_v10 = vld [vmem:[#allocation17 + $0x88] sm:$0xff]   ;;  %v5164_v11 = vld [vmem:[#allocation17 + $0x90] sm:$0xff]  }
 0x431   :  { %v1584_v18 = vadd.f32 %v5005_v15, %v6434_v45  ;;  %4671 = vmatpush3.bf16.msra.mxu1 %v5142_v1  ;;  %4678 = vmatprep.mubr.msk.bf16.mxu1 %vm5836_vm3, %v5835_v5  ;;  %v1599_v22 = vmax.f32 %v1583_v14, 0.0  ;;  %v5162_v8 = vld [vmem:[#allocation17 + $0x80] sm:$0xff]  }
 0x432   :  { %v1602_v21 = vmax.f32 %v1586_v16, 0.0  ;;  %4672 = vmatprep.subr.bf16.mxu1 %v5835_v5  ;;  %v5166_v14 = vld [vmem:[#allocation17 + $0xa0] sm:$0xff]   ;;  %v5167_v16 = vld [vmem:[#allocation17 + $0xa8] sm:$0xff]  }
 0x433   :  { %v1600_v23 = vmax.f32 %v1584_v18, 0.0  ;;  %v4652_v24 = vpop.f32.mrb[0].mxu1  ;;  %v5168_v18 = vld [vmem:[#allocation17 + $0xb0] sm:$0xff]  }
 0x434   :  { %v6456_v25 = vmax.f32 %v1601_v20, %v1602_v21  ;;  %v1589_v26 = vadd.f32 %v4652_v24, %v6434_v45  ;;  %v1525_v13 = vpop.f32.mrb[1].mxu1  ;;  %v5170_v20 = vld [vmem:[#allocation17 + $0xe0] sm:$0xff]   ;;  %v5173_v24 = vld [vmem:[#allocation17 + $0xf8] sm:$0xff]  }
 0x435   :  { %v6459_v28 = vmax.f32 %v1599_v22, %v1600_v23  ;;  %v1587_v29 = vadd.f32 %v6434_v45, %v1525_v13  ;;  %4673 = vmatpush3.bf16.msra.mxu1 %v5143_v19  ;;  %v4653_v27 = vpop.f32.mrb[2].mxu1  ;;  %v5169_v19 = vld [vmem:[#allocation17 + $0xb8] sm:$0xff]   ;;  %v5171_v22 = vld [vmem:[#allocation17 + $0xe8] sm:$0xff]   ;;  %v5172_v23 = vld [vmem:[#allocation17 + $0xf0] sm:$0xff]  }
 0x436   :  { %v1590_v46 = vadd.f32 %v4653_v27, %v6434_v45  ;;  %v1528_v62 = vpop.f32.mrb[3].mxu1  ;;  %4674 = vmatprep.subr.bf16.mxu1 %v5835_v5  ;;  %v1605_v32 = vmax.f32 %v1589_v26, 0.0  ;;  %v1888_v9 = vpack.c.bf16 %v6456_v25, %v6456_v25  ;;  %v6548_v13 = vld [vmem:[#allocation22 + $0x8] sm:$0xff]  }
 0x437   :  { %v2256_v17 = vpack.c.bf16 %v6456_v25, %v6459_v28  ;;  %v1588_v31 = vadd.f32 %v6434_v45, %v1528_v62  ;;  %v1603_v34 = vmax.f32 %v1587_v29, 0.0  ;;  %v1819_v1 = vpack.c.bf16 %v6459_v28, %v6459_v28  ;;  %v6541_v25 = vld [vmem:[#allocation22] sm:$0xff]  }
 0x438   :  { %v1606_v33 = vmax.f32 %v1590_v46, 0.0  ;;  %v5837_v28 = vmov 0  }
 0x439   :  { %v1604_v36 = vmax.f32 %v1588_v31, 0.0  ;;  %4675 = vmatpush3.bf16.msra.mxu1 %v5145_v30 }
 0x43a   :  { %v6467_v38 = vmax.f32 %v1605_v32, %v1606_v33  ;;  %4676 = vmatprep.subr.bf16.mxu1 %v5835_v5 }
 0x43b   :  { %v6470_v39 = vmax.f32 %v1603_v34, %v1604_v36  ;;  %v4656_v40 = vpop.f32.mrb[4].mxu1 }
 0x43c   :  { %v1593_v41 = vadd.f32 %v4656_v40, %v6434_v45  ;;  %v1541_v42 = vpop.f32.mrb[5].mxu1  ;;  %v2026_v21 = vpack.c.bf16 %v6467_v38, %v6467_v38 }
 0x43d   :  { %v2257_v43 = vpack.c.bf16 %v6467_v38, %v6470_v39  ;;  %v1591_v44 = vadd.f32 %v6434_v45, %v1541_v42  ;;  %4677 = vmatpush3.bf16.msra.mxu1 %v5147_v37  ;;  %v4657_v47 = vpop.f32.mrb[6].mxu1  ;;  %v1957_v15 = vpack.c.bf16 %v6470_v39, %v6470_v39 }
 0x43e   :  { %v1594_v50 = vadd.f32 %v4657_v47, %v6434_v45  ;;  %v1544_v51 = vpop.f32.mrb[7].mxu1  ;;  %4682 = vmatprep.subr.bf16.mxu1 %v5835_v5  ;;  %v1609_v53 = vmax.f32 %v1593_v41, 0.0 }
 0x43f   :  { %v1592_v52 = vadd.f32 %v6434_v45, %v1544_v51  ;;  %v1607_v55 = vmax.f32 %v1591_v44, 0.0  ;;  %v5153_v45 = vld [vmem:[#allocation17 + $0x50] sm:$0xff]  }
 0x440   :  { %v1610_v54 = vmax.f32 %v1594_v50, 0.0  ;;  %4679 = vmatmul.mubr.msk.bf16.vlgmr.msra.gmra.mrb[20].mxu1 %vm1156_vm2, %v1683_v49  ;;  %v4215_v44 = vld [vmem:[#allocation23] ss:$0 sm:$0xff] }
 0x441   :  { %v1608_v56 = vmax.f32 %v1592_v52, 0.0  ;;  %4683 = vmatpush3.bf16.msra.mxu1 %v5149_v48  ;;  %4690 = vmatprep.mubr.msk.bf16.mxu1 %vm5836_vm3, %v5835_v5 }
 0x442   :  { %v6484_v58 = vmax.f32 %v1609_v53, %v1610_v54  ;;  %4684 = vmatprep.subr.bf16.mxu1 %v5835_v5 }
 0x443   :  { %v1617_v59 = vmax.f32 %v1607_v55, %v1608_v56 }
 0x444   :  { %v2164_v26 = vpack.c.bf16 %v6484_v58, %v6484_v58 }
 0x445   :  { %v2095_v60 = vpack.c.bf16 %v1617_v59, %v1617_v59  ;;  %v2258_v61 = vpack.c.bf16 %v6484_v58, %v1617_v59  ;;  %4685 = vmatpush3.bf16.msra.mxu1 %v5151_v57 }
 0x446   :  { %4686 = vmatprep.subr.bf16.mxu1 %v5835_v5 }
 0x447   :  { %4739 = vmatmul.mubr.msk.bf16.vlgmr.msra.gmra.mrb[40].mxu0 %vm1156_vm2, %v2095_v60 }
 0x448   :  { %4755 = vmatpush3.bf16.msra.mxu0 %v6431_v35  ;;  %4762 = vmatprep.mubr.msk.bf16.mxu0 %vm1156_vm2, %v2255_v12  ;;  %v5159_v35 = vld [vmem:[#allocation17 + $0x68] sm:$0xff]   ;;  %v5165_v12 = vld [vmem:[#allocation17 + $0x98] sm:$0xff]  }
 0x449   :  { %4687 = vmatpush3.bf16.msra.mxu1 %v5153_v45  ;;  %4756 = vmatprep.subr.bf16.mxu0 %v5154_v63 }
 0x44a   :  { %4688 = vmatprep.subr.bf16.mxu1 %v5835_v5 }
 0x44c   :  { %4757 = vmatpush3.bf16.msra.mxu0 %v5154_v63 }
 0x44d   :  { %4689 = vmatpush3.bf16.msra.mxu1 %v5155_v2  ;;  %4758 = vmatprep.subr.bf16.mxu0 %v5156_v3 }
 0x44e   :  { %4694 = vmatprep.subr.bf16.mxu1 %v5835_v5 }
 0x450   :  { %4691 = vmatmul.mubr.msk.bf16.vlgmr.msra.gmra.mrb[24].mxu1 %vm1156_vm2, %v1819_v1  ;;  %4759 = vmatpush3.bf16.msra.mxu0 %v5156_v3 }
 0x451   :  { %4695 = vmatpush3.bf16.msra.mxu1 %v5157_v6  ;;  %4760 = vmatprep.subr.bf16.mxu0 %v5158_v7 }
 0x452   :  { %4696 = vmatprep.subr.bf16.mxu1 %v5835_v5  ;;  %4702 = vmatprep.mubr.msk.bf16.mxu1 %vm5836_vm3, %v5835_v5 }
 0x454   :  { %4761 = vmatpush3.bf16.msra.mxu0 %v5158_v7 }
 0x455   :  { %4697 = vmatpush3.bf16.msra.mxu1 %v5159_v35  ;;  %4786 = vmatprep.subr.bf16.mxu0 %v5835_v5 }
 0x456   :  { %4698 = vmatprep.subr.bf16.mxu1 %v5835_v5 }
 0x457   :  { %4763 = vmatmul.mubr.msk.bf16.vlgmr.msra.gmra.mrb[44].mxu0 %vm1156_vm2, %v2256_v17 }
 0x458   :  { %4766 = vmatprep.mubr.msk.bf16.mxu0 %vm1156_vm2, %v2257_v43 }
 0x459   :  { %4699 = vmatpush3.bf16.msra.mxu1 %v5160_v0 }
 0x45a   :  { %4700 = vmatprep.subr.bf16.mxu1 %v5835_v5 }
 0x45d   :  { %4701 = vmatpush3.bf16.msra.mxu1 %v5161_v4 }
 0x45e   :  { %4706 = vmatprep.subr.bf16.mxu1 %v5835_v5 }
 0x45f   :  { %4767 = vmatmul.mubr.msk.bf16.gmra.mrb[48].mxu0 %vm1156_vm2, %v2258_v61 }
 0x460   :  { %4703 = vmatmul.mubr.msk.bf16.vlgmr.msra.gmra.mrb[28].mxu1 %vm1156_vm2, %v1888_v9  ;;  %4790 = vmatprep.mubr.msk.bf16.mxu0 %vm5836_vm3, %v5835_v5 }
 0x461   :  { %4707 = vmatpush3.bf16.msra.mxu1 %v5162_v8  ;;  %4714 = vmatprep.mubr.msk.bf16.mxu1 %vm5836_vm3, %v5835_v5 }
 0x462   :  { %4708 = vmatprep.subr.bf16.mxu1 %v5835_v5 }
 0x465   :  { %4709 = vmatpush3.bf16.msra.mxu1 %v5163_v10 }
 0x466   :  { %4710 = vmatprep.subr.bf16.mxu1 %v5835_v5 }
 0x469   :  { %4711 = vmatpush3.bf16.msra.mxu1 %v5164_v11 }
 0x46a   :  { %4712 = vmatprep.subr.bf16.mxu1 %v5835_v5 }
 0x46d   :  { %4713 = vmatpush3.bf16.msra.mxu1 %v5165_v12 }
 0x46e   :  { %4718 = vmatprep.subr.bf16.mxu1 %v5835_v5 }
 0x470   :  { %4715 = vmatmul.mubr.msk.bf16.vlgmr.msra.gmra.mrb[32].mxu1 %vm1156_vm2, %v1957_v15 }
 0x471   :  { %4719 = vmatpush3.bf16.msra.mxu1 %v5166_v14  ;;  %4726 = vmatprep.mubr.msk.bf16.mxu1 %vm5836_vm3, %v5835_v5 }
 0x472   :  { %4720 = vmatprep.subr.bf16.mxu1 %v5835_v5 }
 0x475   :  { %4721 = vmatpush3.bf16.msra.mxu1 %v5167_v16 }
 0x476   :  { %4722 = vmatprep.subr.bf16.mxu1 %v5835_v5 }
 0x479   :  { %4723 = vmatpush3.bf16.msra.mxu1 %v5168_v18 }
 0x47a   :  { %4724 = vmatprep.subr.bf16.mxu1 %v5835_v5 }
 0x47d   :  { %4725 = vmatpush3.bf16.msra.mxu1 %v5169_v19 }
 0x47e   :  { %4742 = vmatprep.subr.bf16.mxu1 %v5835_v5 }
 0x480   :  { %4727 = vmatmul.mubr.msk.bf16.vlgmr.msra.gmra.mrb[36].mxu1 %vm1156_vm2, %v2026_v21 }
 0x481   :  { %4743 = vmatpush3.bf16.msra.mxu1 %v5170_v20  ;;  %4750 = vmatprep.mubr.msk.bf16.mxu1 %vm5836_vm3, %v5835_v5 }
 0x482   :  { %4744 = vmatprep.subr.bf16.mxu1 %v5835_v5 }
 0x485   :  { %4745 = vmatpush3.bf16.msra.mxu1 %v5171_v22 }
 0x486   :  { %4746 = vmatprep.subr.bf16.mxu1 %v5835_v5 }
 0x489   :  { %4747 = vmatpush3.bf16.msra.mxu1 %v5172_v23 }
 0x48a   :  { %4748 = vmatprep.subr.bf16.mxu1 %v5835_v5 }
 0x48d   :  { %4749 = vmatpush3.bf16.msra.mxu1 %v5173_v24 }
 0x48e   :  { %4770 = vmatprep.subr.bf16.mxu1 %v5835_v5 }
 0x490   :  { %4751 = vmatmul.mubr.msk.bf16.vlgmr.msra.gmra.mrb[40].mxu1 %vm1156_vm2, %v2164_v26 }
 0x491   :  { %4771 = vmatpush3.bf16.msra.mxu1 %v6541_v25  ;;  %4774 = vmatprep.mubr.msk.bf16.mxu1 %vm5836_vm3, %v5835_v5 }
 0x492   :  { %4772 = vmatprep.subr.bf16.mxu1 %v5835_v5 }
 0x495   :  { %4773 = vmatpush3.bf16.msra.mxu1 %v6548_v13 }
 0x496   :  { %4778 = vmatprep.subr.bf16.mxu1 %v5835_v5 }
 0x498   :  { %4775 = vmatmul.mubr.bf16.vlgmr.msra.gmra.mrb[44].mxu1 %v5837_v28 }
 0x499   :  { %4782 = vmatprep.mubr.msk.bf16.mxu1 %vm5836_vm3, %v5835_v5 }
 0x503   :  { %v1746_v29 = vpop.f32.mrb[16].mxu1 }
 0x504   :  { %v4668_v27 = vpop.f32.mrb[17].mxu1 }
 0x505   :  { %v1749_v30 = vpop.f32.mrb[18].mxu1 }
 0x506   :  { %v4669_v46 = vpop.f32.mrb[19].mxu1 }
 0x513   :  { %v1813_v62 = vpop.f32.mrb[20].mxu1 }
 0x514   :  { %v1814_v17 = vadd.f32 %v1813_v62, %v1746_v29  ;;  %v4680_v31 = vpop.f32.mrb[21].mxu1 }
 0x515   :  { %v1816_v32 = vpop.f32.mrb[22].mxu1 }
 0x516   :  { %v4681_v33 = vpop.f32.mrb[23].mxu1 }
 0x51a   :  { %v2157_v34 = vpop.f32.mrb[40].mxu0 }
 0x51b   :  { %v4740_v36 = vpop.f32.mrb[41].mxu0 }
 0x51c   :  { %v2160_v37 = vpop.f32.mrb[42].mxu0 }
 0x51d   :  { %v4741_v38 = vpop.f32.mrb[43].mxu0 }
 0x51e   :  { %v6579_v38 = vld [vmem:[#allocation26] sm:$0xff]  }
 0x51f   :  { %4779 = vmatpush3.bf16.msra.mxu1 %v6579_v38 }
 0x520   :  { %4780 = vmatprep.subr.bf16.mxu1 %v5835_v5 }
 0x523   :  { %v1881_v39 = vpop.f32.mrb[24].mxu1 }
 0x524   :  { %v1887_v40 = vadd.f32 %v1881_v39, %v1814_v17  ;;  %v4692_v41 = vpop.f32.mrb[25].mxu1  ;;  %v6581_v39 = vld [vmem:[#allocation25] sm:$0xff]  }
 0x525   :  { %v1884_v42 = vpop.f32.mrb[26].mxu1  ;;  %4787 = vmatpush3.bf16.msra.mxu0 %v6581_v39  ;;  %v6587_v41 = vld [vmem:[#allocation25 + $0x8] sm:$0xff]  }
 0x526   :  { %v4693_v43 = vpop.f32.mrb[27].mxu1  ;;  %4788 = vmatprep.subr.bf16.mxu0 %v5835_v5 }
 0x529   :  { %4789 = vmatpush3.bf16.msra.mxu0 %v6587_v41 }
 0x52a   :  { %v4764_v47 = vpop.f32.mrb[44].mxu0  ;;  %4802 = vmatprep.subr.bf16.mxu0 %v5835_v5 }
 0x52b   :  { %v6558_v48 = vadd.f32 %v4764_v47, %v4215_v44  ;;  %v2344_v49 = vpop.f32.mrb[45].mxu0 }
 0x52c   :  { %v4765_v50 = vpop.f32.mrb[46].mxu0  ;;  %v2345_v21 = vadd.f32 %v4215_v44, %v2344_v49 }
 0x52d   :  { %v6560_v51 = vadd.f32 %v4765_v50, %v4215_v44  ;;  %v2347_v52 = vpop.f32.mrb[47].mxu0 }
 0x52e   :  { %v6562_v53 = vadd.f32 %v4215_v44, %v2347_v52 }
 0x532   :  { %v4768_v54 = vpop.f32.mrb[48].mxu0 }
 0x533   :  { %v6564_v55 = vadd.f32 %v4768_v54, %v4215_v44  ;;  %v1950_v56 = vpop.f32.mrb[28].mxu1  ;;  %v2360_v57 = vpop.f32.mrb[49].mxu0 }
 0x534   :  { %v1956_v58 = vadd.f32 %v1950_v56, %v1887_v40  ;;  %v6566_v59 = vadd.f32 %v4215_v44, %v2360_v57  ;;  %v4704_v60 = vpop.f32.mrb[29].mxu1  ;;  %v4769_v61 = vpop.f32.mrb[50].mxu0  ;;  %v6585_v40 = vld [vmem:[#allocation26 + $0x8] sm:$0xff]   ;;  %v6618_v56 = vld [vmem:[#allocation28] ss:$0 sm:$0xff] }
 0x535   :  { %v6568_v45 = vadd.f32 %v4769_v61, %v4215_v44  ;;  %v1953_v63 = vpop.f32.mrb[30].mxu1  ;;  %v2363_v2 = vpop.f32.mrb[51].mxu0  ;;  %4781 = vmatpush3.bf16.msra.mxu1 %v6585_v40 }
 0x536   :  { %v6570_v3 = vadd.f32 %v4215_v44, %v2363_v2  ;;  %v4705_v6 = vpop.f32.mrb[31].mxu1  ;;  %4794 = vmatprep.subr.bf16.mxu1 %v5835_v5 }
 0x538   :  { %4783 = vmatmul.mubr.bf16.vlgmr.msra.gmra.mrb[48].mxu1 %v5837_v28 }
 0x539   :  { %4795 = vmatpush3.bf16.msra.mxu1 %v6541_v25  ;;  %4798 = vmatprep.mubr.msk.bf16.mxu1 %vm5836_vm3, %v5835_v5 }
 0x53a   :  { %4796 = vmatprep.subr.bf16.mxu1 %v5835_v5 }
 0x53d   :  { %4797 = vmatpush3.bf16.msra.mxu1 %v6548_v13 }
 0x53e   :  { %4810 = vmatprep.subr.bf16.mxu1 %v5835_v5 }
 0x543   :  { %v2019_v7 = vpop.f32.mrb[32].mxu1 }
 0x544   :  { %v2025_v1 = vadd.f32 %v2019_v7, %v1956_v58  ;;  %v4716_v35 = vpop.f32.mrb[33].mxu1 }
 0x545   :  { %v2022_v0 = vpop.f32.mrb[34].mxu1 }
 0x546   :  { %v4717_v4 = vpop.f32.mrb[35].mxu1 }
 0x553   :  { %v2088_v8 = vpop.f32.mrb[36].mxu1 }
 0x554   :  { %v2094_v9 = vadd.f32 %v2088_v8, %v2025_v1  ;;  %v4728_v10 = vpop.f32.mrb[37].mxu1 }
 0x555   :  { %v2091_v11 = vpop.f32.mrb[38].mxu1 }
 0x556   :  { %v4729_v12 = vpop.f32.mrb[39].mxu1  ;;  %v2163_v14 = vadd.f32 %v2157_v34, %v2094_v9 }
 0x563   :  { %v2226_v15 = vpop.f32.mrb[40].mxu1 }
 0x564   :  { %v6572_v16 = vadd.f32 %v2226_v15, %v2163_v14  ;;  %v4752_v18 = vpop.f32.mrb[41].mxu1 }
 0x565   :  { %v2229_v19 = vpop.f32.mrb[42].mxu1 }
 0x566   :  { %v4753_v20 = vpop.f32.mrb[43].mxu1 }
 0x56b   :  { %v2425_v22 = vpop.f32.mrb[44].mxu1 }
 0x56c   :  { %v2431_v23 = vadd.f32 %v2425_v22, %v2345_v21  ;;  %v4776_v24 = vpop.f32.mrb[45].mxu1 }
 0x56d   :  { %v2428_v26 = vpop.f32.mrb[46].mxu1 }
 0x56e   :  { %v4777_v29 = vpop.f32.mrb[47].mxu1  ;;  %5190 = vtanh.f32 %v2431_v23  ;;  %v2432_v30 = vsub.f32 0.0, %v2431_v23 }
 0x570   :  { %v2433_v46 = vmul.f32 1.442695, %v2432_v30 }
 0x572   :  { %5192 = vpow2.f32 %v2433_v46 }
 0x578   :  { %v5191_v27 = vpop.eup %5190 }
 0x579   :  { %2441 = vrot.lane.b32.xlu0 %v5191_v27, %s5814_s24 }
 0x57c   :  { %v5193_v62 = vpop.eup %5192 }
 0x57d   :  { %v2435_v17 = vadd.f32 1.0, %v5193_v62 }
 0x57f   :  { %5194 = vrcp.f32 %v2435_v17 }
 0x589   :  { %v5195_v31 = vpop.eup %5194 }
 0x58a   :  { %v2439_v34 = vmul.f32 0.0, %v5195_v31 }
 0x5eb   :  { %v2442_v32 = vpop.permute.xlu0 %2441 }
 0x5ec   :  { %v2444_v33 = vmul.f32 %v5195_v31, %v2442_v32 }
 0x5ee   :  { %2446 = vrot.lane.b32.xlu0 %v2444_v33, %s5838_s19 }
 0x60b   :  { %v2503_v49 = vpop.f32.mrb[48].mxu1 }
 0x60c   :  { %v4784_v50 = vpop.f32.mrb[49].mxu1 }
 0x60d   :  { %v2506_v52 = vpop.f32.mrb[50].mxu1 }
 0x60e   :  { %v4785_v28 = vpop.f32.mrb[51].mxu1 }
 0x660   :  { %v2447_v36 = vpop.permute.xlu0 %2446 }
 0x661   :  { %v6576_v37 = vadd.f32 %v2447_v36, %v2439_v34 }
 0x663   :  { %5196 = vtanh.f32 %v6576_v37 }
 0x66d   :  { %v5197_v42 = vpop.eup %5196 }
 0x66e   :  { %2452 = vrot.lane.b32.xlu1 %v5197_v42, %s5814_s24 }
 0x6e0   :  { %v2453_v43 = vpop.permute.xlu1 %2452 }
 0x6e1   :  { %v2455_v44 = vmul.f32 %v5195_v31, %v2453_v43 }
 0x6e3   :  { %v2456_v47 = vpack.c.bf16 %v2455_v44, %v2455_v44 }
 0x6e5   :  { %2510 = vrot.lane.b32.xlu1 %v2456_v47, %s5838_s19 }
 0x757   :  { %v2511_v54 = vpop.permute.xlu1 %2510 }
 0x758   :  { %4791 = vmatmul.mubr.msk.bf16.vlgmr.msra.gmra.mrb[52].mxu0 %vm2387_vm4, %v2511_v54  ;;  %4799 = vmatmul.mubr.msk.bf16.vlgmr.msra.gmra.mrb[52].mxu1 %vm2387_vm4, %v2511_v54 }
 0x759   :  { %4811 = vmatpush3.bf16.msra.mxu1 %v6581_v39  ;;  %4803 = vmatpush3.bf16.msra.mxu0 %v6579_v38 }
 0x75a   :  { %4812 = vmatprep.subr.bf16.mxu1 %v5835_v5  ;;  %4804 = vmatprep.subr.bf16.mxu0 %v5835_v5 }
 0x75b   :  { %4814 = vmatprep.mubr.msk.bf16.mxu1 %vm5836_vm3, %v5835_v5  ;;  %4806 = vmatprep.mubr.msk.bf16.mxu0 %vm5836_vm3, %v5835_v5 }
 0x75d   :  { %4813 = vmatpush3.bf16.msra.mxu1 %v6587_v41  ;;  %4805 = vmatpush3.bf16.msra.mxu0 %v6585_v40 }
 0x75e   :  { %4818 = vmatprep.subr.bf16.mxu0 %v5835_v5  ;;  %4826 = vmatprep.subr.bf16.mxu1 %v5835_v5 }
 0x82b   :  { %v2561_v57 = vpop.f32.mrb[52].mxu0  ;;  %v2632_v58 = vpop.f32.mrb[52].mxu1 }
 0x82c   :  { %v2562_v60 = vadd.f32 %v2561_v57, %v2503_v49  ;;  %v2638_v61 = vadd.f32 %v2632_v58, %v6562_v53  ;;  %v4792_v63 = vpop.f32.mrb[53].mxu0  ;;  %v4800_v2 = vpop.f32.mrb[53].mxu1 }
 0x82d   :  { %v2564_v6 = vpop.f32.mrb[54].mxu0  ;;  %v2635_v7 = vpop.f32.mrb[54].mxu1 }
 0x82e   :  { %v2573_v1 = vadd.f32 %v6618_v56, %v2562_v60  ;;  %5198 = vtanh.f32 %v2638_v61  ;;  %v4793_v35 = vpop.f32.mrb[55].mxu0  ;;  %v4801_v0 = vpop.f32.mrb[55].mxu1  ;;  %v2639_v9 = vsub.f32 0.0, %v2638_v61 }
 0x830   :  { %5200 = vtanh.f32 %v2573_v1  ;;  %v2574_v10 = vsub.f32 0.0, %v2573_v1  ;;  %v2640_v11 = vmul.f32 1.442695, %v2639_v9 }
 0x832   :  { %v2575_v53 = vmul.f32 1.442695, %v2574_v10  ;;  %5202 = vpow2.f32 %v2640_v11 }
 0x834   :  { %5204 = vpow2.f32 %v2575_v53 }
 0x838   :  { %v5199_v4 = vpop.eup %5198 }
 0x839   :  { %2648 = vrot.lane.b32.xlu1 %v5199_v4, %s5814_s24 }
 0x83a   :  { %v5201_v8 = vpop.eup %5200 }
 0x83b   :  { %2583 = vrot.lane.b32.xlu0 %v5201_v8, %s5814_s24 }
 0x83c   :  { %v5203_v12 = vpop.eup %5202 }
 0x83d   :  { %v2642_v15 = vadd.f32 1.0, %v5203_v12 }
 0x83e   :  { %v5205_v14 = vpop.eup %5204 }
 0x83f   :  { %v2577_v18 = vadd.f32 1.0, %v5205_v14  ;;  %5206 = vrcp.f32 %v2642_v15 }
 0x841   :  { %5208 = vrcp.f32 %v2577_v18 }
 0x849   :  { %v5207_v19 = vpop.eup %5206 }
 0x84a   :  { %v2646_v26 = vmul.f32 %v5207_v19, %v6576_v37 }
 0x84b   :  { %v5209_v22 = vpop.eup %5208 }
 0x84c   :  { %v2581_v30 = vmul.f32 0.0, %v5209_v22 }
 0x8ab   :  { %v2649_v20 = vpop.permute.xlu1 %2648 }
 0x8ac   :  { %v2651_v21 = vmul.f32 %v5207_v19, %v2649_v20 }
 0x8ad   :  { %v2584_v23 = vpop.permute.xlu0 %2583 }
 0x8ae   :  { %v2586_v24 = vmul.f32 %v5209_v22, %v2584_v23  ;;  %2653 = vrot.lane.b32.xlu1 %v2651_v21, %s5838_s19 }
 0x8b0   :  { %2588 = vrot.lane.b32.xlu0 %v2586_v24, %s5838_s19 }
 0x920   :  { %v2654_v29 = vpop.permute.xlu1 %2653 }
 0x921   :  { %v6627_v27 = vadd.f32 %v2654_v29, %v2646_v26 }
 0x922   :  { %v2589_v46 = vpop.permute.xlu0 %2588 }
 0x923   :  { %5210 = vtanh.f32 %v6627_v27  ;;  %v6630_v62 = vadd.f32 %v2589_v46, %v2581_v30 }
 0x925   :  { %5212 = vtanh.f32 %v6630_v62 }
 0x92d   :  { %v5211_v17 = vpop.eup %5210 }
 0x92e   :  { %2659 = vrot.lane.b32.xlu1 %v5211_v17, %s5814_s24 }
 0x92f   :  { %v5213_v31 = vpop.eup %5212 }
 0x930   :  { %2594 = vrot.lane.b32.xlu0 %v5213_v31, %s5814_s24 }
 0x9a0   :  { %v2660_v32 = vpop.permute.xlu1 %2659 }
 0x9a1   :  { %v2662_v33 = vmul.f32 %v5207_v19, %v2660_v32 }
 0x9a2   :  { %v2595_v34 = vpop.permute.xlu0 %2594 }
 0x9a3   :  { %v2663_v36 = vpack.c.bf16 %v2662_v33, %v2662_v33  ;;  %v2597_v37 = vmul.f32 %v5209_v22, %v2595_v34 }
 0x9a5   :  { %v2664_v42 = vpack.c.bf16 %v2597_v37, %v2597_v37  ;;  %2712 = vrot.lane.b32.xlu1 %v2663_v36, %s5838_s19 }
 0x9a7   :  { %2666 = vrot.lane.b32.xlu0 %v2664_v42, %s5838_s19 }
 0xa17   :  { %v2713_v43 = vpop.permute.xlu1 %2712 }
 0xa18   :  { %4815 = vmatmul.mubr.msk.bf16.vlgmr.msra.gmra.mrb[56].mxu1 %vm2387_vm4, %v2713_v43 }
 0xa19   :  { %v2667_v44 = vpop.permute.xlu0 %2666  ;;  %4827 = vmatpush3.bf16.msra.mxu1 %v6579_v38  ;;  %4830 = vmatprep.mubr.msk.bf16.mxu1 %vm5836_vm3, %v5835_v5 }
 0xa1a   :  { %4807 = vmatmul.mubr.msk.bf16.vlgmr.msra.gmra.mrb[56].mxu0 %vm2387_vm4, %v2667_v44  ;;  %4828 = vmatprep.subr.bf16.mxu1 %v5835_v5 }
 0xa1b   :  { %4819 = vmatpush3.bf16.msra.mxu0 %v6541_v25  ;;  %4822 = vmatprep.mubr.msk.bf16.mxu0 %vm5836_vm3, %v5835_v5 }
 0xa1c   :  { %4820 = vmatprep.subr.bf16.mxu0 %v5835_v5 }
 0xa1d   :  { %4829 = vmatpush3.bf16.msra.mxu1 %v6585_v40 }
 0xa1e   :  { %4842 = vmatprep.subr.bf16.mxu1 %v5835_v5 }
 0xa1f   :  { %4821 = vmatpush3.bf16.msra.mxu0 %v6548_v13 }
 0xa20   :  { %4834 = vmatprep.subr.bf16.mxu0 %v5835_v5 }
 0xa22   :  { %4823 = vmatmul.mubr.msk.bf16.vlgmr.msra.gmra.mrb[60].mxu0 %vm2387_vm4, %v2713_v43 }
 0xa23   :  { %4835 = vmatpush3.bf16.msra.mxu0 %v6581_v39  ;;  %4838 = vmatprep.mubr.msk.bf16.mxu0 %vm5836_vm3, %v5835_v5 }
 0xa24   :  { %4836 = vmatprep.subr.bf16.mxu0 %v5835_v5 }
 0xa27   :  { %4837 = vmatpush3.bf16.msra.mxu0 %v6587_v41 }
 0xa28   :  { %4850 = vmatprep.subr.bf16.mxu0 %v5835_v5 }
 0xaeb   :  { %v2751_v47 = vpop.f32.mrb[56].mxu1 }
 0xaec   :  { %v4816_v49 = vpop.f32.mrb[57].mxu1 }
 0xaed   :  { %v2705_v50 = vpop.f32.mrb[56].mxu0  ;;  %v2754_v52 = vpop.f32.mrb[58].mxu1 }
 0xaee   :  { %v2752_v28 = vadd.f32 %v2751_v47, %v2705_v50  ;;  %v4808_v54 = vpop.f32.mrb[57].mxu0  ;;  %v4817_v57 = vpop.f32.mrb[59].mxu1 }
 0xaef   :  { %v2708_v58 = vpop.f32.mrb[58].mxu0 }
 0xaf0   :  { %v2757_v60 = vadd.f32 %v6618_v56, %v2752_v28  ;;  %v4809_v61 = vpop.f32.mrb[59].mxu0 }
 0xaf2   :  { %5214 = vtanh.f32 %v2757_v60  ;;  %v2758_v4 = vsub.f32 0.0, %v2757_v60 }
 0xaf4   :  { %v2759_v8 = vmul.f32 1.442695, %v2758_v4 }
 0xaf5   :  { %v2816_v63 = vpop.f32.mrb[60].mxu0 }
 0xaf6   :  { %v2822_v2 = vadd.f32 %v2816_v63, %v6558_v48  ;;  %v4824_v6 = vpop.f32.mrb[61].mxu0 }
 0xaf7   :  { %v2819_v7 = vpop.f32.mrb[62].mxu0 }
 0xaf8   :  { %5216 = vtanh.f32 %v2822_v2  ;;  %v4825_v1 = vpop.f32.mrb[63].mxu0  ;;  %v2823_v9 = vsub.f32 0.0, %v2822_v2 }
 0xaf9   :  { %5218 = vpow2.f32 %v2759_v8 }
 0xafa   :  { %v2824_v10 = vmul.f32 1.442695, %v2823_v9 }
 0xafc   :  { %v5215_v35 = vpop.eup %5214  ;;  %5220 = vpow2.f32 %v2824_v10 }
 0xafd   :  { %2767 = vrot.lane.b32.xlu0 %v5215_v35, %s5814_s24 }
 0xb02   :  { %v5217_v0 = vpop.eup %5216 }
 0xb03   :  { %2832 = vrot.lane.b32.xlu1 %v5217_v0, %s5814_s24  ;;  %v5219_v11 = vpop.eup %5218 }
 0xb04   :  { %v2761_v53 = vadd.f32 1.0, %v5219_v11 }
 0xb06   :  { %v5221_v12 = vpop.eup %5220  ;;  %5222 = vrcp.f32 %v2761_v53 }
 0xb07   :  { %v2826_v48 = vadd.f32 1.0, %v5221_v12 }
 0xb09   :  { %5224 = vrcp.f32 %v2826_v48 }
 0xb10   :  { %v5223_v14 = vpop.eup %5222 }
 0xb11   :  { %v2765_v22 = vmul.f32 %v5223_v14, %v6630_v62 }
 0xb13   :  { %v5225_v19 = vpop.eup %5224 }
 0xb14   :  { %v2830_v26 = vmul.f32 %v5225_v19, %v6627_v27 }
 0xb6f   :  { %v2768_v15 = vpop.permute.xlu0 %2767 }
 0xb70   :  { %v2770_v18 = vmul.f32 %v5223_v14, %v2768_v15 }
 0xb72   :  { %2772 = vrot.lane.b32.xlu0 %v2770_v18, %s5838_s19 }
 0xb75   :  { %v2833_v20 = vpop.permute.xlu1 %2832 }
 0xb76   :  { %v2835_v21 = vmul.f32 %v5225_v19, %v2833_v20 }
 0xb78   :  { %2837 = vrot.lane.b32.xlu1 %v2835_v21, %s5838_s19 }
 0xbe4   :  { %v2773_v23 = vpop.permute.xlu0 %2772 }
 0xbe5   :  { %v6665_v24 = vadd.f32 %v2773_v23, %v2765_v22 }
 0xbe7   :  { %5226 = vtanh.f32 %v6665_v24 }
 0xbea   :  { %v2838_v29 = vpop.permute.xlu1 %2837 }
 0xbeb   :  { %v6669_v30 = vadd.f32 %v2838_v29, %v2830_v26 }
 0xbed   :  { %5228 = vtanh.f32 %v6669_v30 }
 0xbf1   :  { %v5227_v46 = vpop.eup %5226 }
 0xbf2   :  { %2778 = vrot.lane.b32.xlu0 %v5227_v46, %s5814_s24 }
 0xbf7   :  { %v5229_v17 = vpop.eup %5228 }
 0xbf8   :  { %2843 = vrot.lane.b32.xlu1 %v5229_v17, %s5814_s24 }
 0xc64   :  { %v2779_v31 = vpop.permute.xlu0 %2778 }
 0xc65   :  { %v2781_v62 = vmul.f32 %v5223_v14, %v2779_v31 }
 0xc67   :  { %v2848_v32 = vpack.c.bf16 %v2781_v62, %v2781_v62 }
 0xc69   :  { %2850 = vrot.lane.b32.xlu0 %v2848_v32, %s5838_s19 }
 0xc6a   :  { %v2844_v33 = vpop.permute.xlu1 %2843 }
 0xc6b   :  { %v2846_v34 = vmul.f32 %v5225_v19, %v2844_v33 }
 0xc6d   :  { %v2847_v36 = vpack.c.bf16 %v2846_v34, %v2846_v34 }
 0xc6f   :  { %2896 = vrot.lane.b32.xlu1 %v2847_v36, %s5838_s19 }
 0xcdb   :  { %v2851_v27 = vpop.permute.xlu0 %2850 }
 0xcdc   :  { %4831 = vmatmul.mubr.msk.bf16.vlgmr.msra.gmra.mrb[60].mxu1 %vm2387_vm4, %v2851_v27 }
 0xcdd   :  { %4843 = vmatpush3.bf16.msra.mxu1 %v6541_v25  ;;  %4846 = vmatprep.mubr.msk.bf16.mxu1 %vm5836_vm3, %v5835_v5 }
 0xcde   :  { %4844 = vmatprep.subr.bf16.mxu1 %v5835_v5 }
 0xce1   :  { %4845 = vmatpush3.bf16.msra.mxu1 %v6548_v13  ;;  %v2897_v37 = vpop.permute.xlu1 %2896 }
 0xce2   :  { %4839 = vmatmul.mubr.msk.bf16.vlgmr.msra.gmra.mrb[64].mxu0 %vm2387_vm4, %v2897_v37  ;;  %4858 = vmatprep.subr.bf16.mxu1 %v5835_v5 }
 0xce3   :  { %4851 = vmatpush3.bf16.msra.mxu0 %v6579_v38  ;;  %4854 = vmatprep.mubr.msk.bf16.mxu0 %vm5836_vm3, %v5835_v5 }
 0xce4   :  { %4847 = vmatmul.mubr.msk.bf16.vlgmr.msra.gmra.mrb[64].mxu1 %vm2387_vm4, %v2897_v37  ;;  %4852 = vmatprep.subr.bf16.mxu0 %v5835_v5 }
 0xce5   :  { %4859 = vmatpush3.bf16.msra.mxu1 %v6581_v39  ;;  %4862 = vmatprep.mubr.msk.bf16.mxu1 %vm5836_vm3, %v5835_v5 }
 0xce6   :  { %4860 = vmatprep.subr.bf16.mxu1 %v5835_v5 }
 0xce7   :  { %4853 = vmatpush3.bf16.msra.mxu0 %v6585_v40 }
 0xce8   :  { %4866 = vmatprep.subr.bf16.mxu0 %v5835_v5 }
 0xce9   :  { %4861 = vmatpush3.bf16.msra.mxu1 %v6587_v41 }
 0xcea   :  { %4874 = vmatprep.subr.bf16.mxu1 %v5835_v5 }
 0xdaf   :  { %v2889_v42 = vpop.f32.mrb[60].mxu1 }
 0xdb0   :  { %v4832_v43 = vpop.f32.mrb[61].mxu1 }
 0xdb1   :  { %v2892_v44 = vpop.f32.mrb[62].mxu1 }
 0xdb2   :  { %v4833_v47 = vpop.f32.mrb[63].mxu1 }
 0xdb5   :  { %v2935_v49 = vpop.f32.mrb[64].mxu0 }
 0xdb6   :  { %v2936_v50 = vadd.f32 %v2935_v49, %v2889_v42  ;;  %v4840_v52 = vpop.f32.mrb[65].mxu0 }
 0xdb7   :  { %v2938_v28 = vpop.f32.mrb[66].mxu0  ;;  %v3000_v54 = vpop.f32.mrb[64].mxu1 }
 0xdb8   :  { %v2941_v57 = vadd.f32 %v6618_v56, %v2936_v50  ;;  %v3006_v58 = vadd.f32 %v3000_v54, %v6560_v51  ;;  %v4841_v60 = vpop.f32.mrb[67].mxu0  ;;  %v4848_v61 = vpop.f32.mrb[65].mxu1 }
 0xdb9   :  { %v3003_v63 = vpop.f32.mrb[66].mxu1 }
 0xdba   :  { %5230 = vtanh.f32 %v2941_v57  ;;  %v4849_v2 = vpop.f32.mrb[67].mxu1  ;;  %v2942_v1 = vsub.f32 0.0, %v2941_v57  ;;  %v3007_v35 = vsub.f32 0.0, %v3006_v58 }
 0xdbb   :  { %5232 = vtanh.f32 %v3006_v58 }
 0xdbc   :  { %v2943_v0 = vmul.f32 1.442695, %v2942_v1  ;;  %v3008_v4 = vmul.f32 1.442695, %v3007_v35 }
 0xdbe   :  { %5234 = vpow2.f32 %v2943_v0 }
 0xdbf   :  { %5236 = vpow2.f32 %v3008_v4 }
 0xdc4   :  { %v5231_v6 = vpop.eup %5230 }
 0xdc5   :  { %v5233_v7 = vpop.eup %5232  ;;  %2951 = vrot.lane.b32.xlu0 %v5231_v6, %s5814_s24 }
 0xdc6   :  { %3016 = vrot.lane.b32.xlu1 %v5233_v7, %s5814_s24 }
 0xdc8   :  { %v5235_v8 = vpop.eup %5234 }
 0xdc9   :  { %v5237_v51 = vpop.eup %5236  ;;  %v2945_v9 = vadd.f32 1.0, %v5235_v8 }
 0xdca   :  { %v3010_v10 = vadd.f32 1.0, %v5237_v51 }
 0xdcb   :  { %5238 = vrcp.f32 %v2945_v9 }
 0xdcc   :  { %5240 = vrcp.f32 %v3010_v10 }
 0xdd5   :  { %v5239_v11 = vpop.eup %5238 }
 0xdd6   :  { %v5241_v12 = vpop.eup %5240  ;;  %v2949_v18 = vmul.f32 %v5239_v11, %v6665_v24 }
 0xdd7   :  { %v3014_v19 = vmul.f32 %v5241_v12, %v6669_v30 }
 0xe37   :  { %v2952_v53 = vpop.permute.xlu0 %2951 }
 0xe38   :  { %v3017_v48 = vpop.permute.xlu1 %3016  ;;  %v2954_v14 = vmul.f32 %v5239_v11, %v2952_v53 }
 0xe39   :  { %v3019_v15 = vmul.f32 %v5241_v12, %v3017_v48 }
 0xe3a   :  { %2956 = vrot.lane.b32.xlu0 %v2954_v14, %s5838_s19 }
 0xe3b   :  { %3021 = vrot.lane.b32.xlu1 %v3019_v15, %s5838_s19 }
 0xeac   :  { %v2957_v20 = vpop.permute.xlu0 %2956 }
 0xead   :  { %v3022_v21 = vpop.permute.xlu1 %3021  ;;  %v6705_v22 = vadd.f32 %v2957_v20, %v2949_v18 }
 0xeae   :  { %v6707_v23 = vadd.f32 %v3022_v21, %v3014_v19 }
 0xeaf   :  { %5242 = vtanh.f32 %v6705_v22 }
 0xeb0   :  { %5244 = vtanh.f32 %v6707_v23 }
 0xeb9   :  { %v5243_v26 = vpop.eup %5242 }
 0xeba   :  { %v5245_v29 = vpop.eup %5244  ;;  %2962 = vrot.lane.b32.xlu0 %v5243_v26, %s5814_s24 }
 0xebb   :  { %3027 = vrot.lane.b32.xlu1 %v5245_v29, %s5814_s24 }
 0xf2c   :  { %v2963_v46 = vpop.permute.xlu0 %2962 }
 0xf2d   :  { %v3028_v24 = vpop.permute.xlu1 %3027  ;;  %v2965_v17 = vmul.f32 %v5239_v11, %v2963_v46 }
 0xf2e   :  { %v3030_v30 = vmul.f32 %v5241_v12, %v3028_v24 }
 0xf2f   :  { %v3032_v31 = vpack.c.bf16 %v2965_v17, %v2965_v17 }
 0xf30   :  { %v3031_v62 = vpack.c.bf16 %v3030_v30, %v3030_v30 }
 0xf31   :  { %3034 = vrot.lane.b32.xlu0 %v3032_v31, %s5838_s19 }
 0xf32   :  { %3080 = vrot.lane.b32.xlu1 %v3031_v62, %s5838_s19 }
 0xfa3   :  { %v3035_v32 = vpop.permute.xlu0 %3034 }
 0xfa4   :  { %v3081_v33 = vpop.permute.xlu1 %3080  ;;  %4855 = vmatmul.mubr.msk.bf16.vlgmr.msra.gmra.mrb[68].mxu0 %vm2387_vm4, %v3035_v32 }
 0xfa5   :  { %4863 = vmatmul.mubr.msk.bf16.vlgmr.msra.gmra.mrb[68].mxu1 %vm2387_vm4, %v3081_v33  ;;  %4867 = vmatpush3.bf16.msra.mxu0 %v6541_v25 }
 0xfa6   :  { %4868 = vmatprep.subr.bf16.mxu0 %v5835_v5  ;;  %4870 = vmatprep.mubr.msk.bf16.mxu0 %vm5836_vm3, %v5835_v5 }
 0xfa7   :  { %4875 = vmatpush3.bf16.msra.mxu1 %v6579_v38  ;;  %4878 = vmatprep.mubr.msk.bf16.mxu1 %vm5836_vm3, %v5835_v5 }
 0xfa8   :  { %4876 = vmatprep.subr.bf16.mxu1 %v5835_v5 }
 0xfa9   :  { %4869 = vmatpush3.bf16.msra.mxu0 %v6548_v13 }
 0xfaa   :  { %4882 = vmatprep.subr.bf16.mxu0 %v5835_v5 }
 0xfab   :  { %4877 = vmatpush3.bf16.msra.mxu1 %v6585_v40 }
 0xfac   :  { %4871 = vmatmul.mubr.msk.bf16.vlgmr.msra.gmra.mrb[72].mxu0 %vm2387_vm4, %v3081_v33  ;;  %4890 = vmatprep.subr.bf16.mxu1 %v5835_v5 }
 0xfad   :  { %4883 = vmatpush3.bf16.msra.mxu0 %v6581_v39  ;;  %4886 = vmatprep.mubr.msk.bf16.mxu0 %vm5836_vm3, %v5835_v5 }
 0xfae   :  { %4884 = vmatprep.subr.bf16.mxu0 %v5835_v5 }
 0xfb1   :  { %4885 = vmatpush3.bf16.msra.mxu0 %v6587_v41 }
 0xfb2   :  { %4898 = vmatprep.subr.bf16.mxu0 %v5835_v5 }
0x1077   :  { %v3073_v34 = vpop.f32.mrb[68].mxu0 }
0x1078   :  { %v3119_v36 = vpop.f32.mrb[68].mxu1  ;;  %v4856_v27 = vpop.f32.mrb[69].mxu0 }
0x1079   :  { %v3120_v37 = vadd.f32 %v3119_v36, %v3073_v34  ;;  %v4864_v42 = vpop.f32.mrb[69].mxu1  ;;  %v3076_v43 = vpop.f32.mrb[70].mxu0 }
0x107a   :  { %v3122_v44 = vpop.f32.mrb[70].mxu1  ;;  %v4857_v47 = vpop.f32.mrb[71].mxu0 }
0x107b   :  { %v3125_v49 = vadd.f32 %v6618_v56, %v3120_v37  ;;  %v4865_v50 = vpop.f32.mrb[71].mxu1 }
0x107d   :  { %5246 = vtanh.f32 %v3125_v49  ;;  %v3126_v63 = vsub.f32 0.0, %v3125_v49 }
0x107f   :  { %v3184_v52 = vpop.f32.mrb[72].mxu0  ;;  %v3127_v2 = vmul.f32 1.442695, %v3126_v63 }
0x1080   :  { %v3190_v28 = vadd.f32 %v3184_v52, %v6566_v59  ;;  %v4872_v54 = vpop.f32.mrb[73].mxu0 }
0x1081   :  { %v3187_v57 = vpop.f32.mrb[74].mxu0 }
0x1082   :  { %5248 = vtanh.f32 %v3190_v28  ;;  %v4873_v58 = vpop.f32.mrb[75].mxu0  ;;  %v3191_v6 = vsub.f32 0.0, %v3190_v28 }
0x1083   :  { %5250 = vpow2.f32 %v3127_v2 }
0x1084   :  { %v3192_v7 = vmul.f32 1.442695, %v3191_v6 }
0x1086   :  { %5252 = vpow2.f32 %v3192_v7 }
0x1087   :  { %v5247_v60 = vpop.eup %5246 }
0x1088   :  { %3135 = vrot.lane.b32.xlu0 %v5247_v60, %s5814_s24 }
0x108c   :  { %v5249_v61 = vpop.eup %5248 }
0x108d   :  { %3200 = vrot.lane.b32.xlu1 %v5249_v61, %s5814_s24  ;;  %v5251_v1 = vpop.eup %5250 }
0x108e   :  { %v3129_v35 = vadd.f32 1.0, %v5251_v1 }
0x1090   :  { %v5253_v0 = vpop.eup %5252  ;;  %5254 = vrcp.f32 %v3129_v35 }
0x1091   :  { %v3194_v59 = vadd.f32 1.0, %v5253_v0 }
0x1093   :  { %5256 = vrcp.f32 %v3194_v59 }
0x109a   :  { %v5255_v4 = vpop.eup %5254 }
0x109b   :  { %v3133_v53 = vmul.f32 %v5255_v4, %v6705_v22 }
0x109d   :  { %v5257_v9 = vpop.eup %5256 }
0x109e   :  { %v3198_v14 = vmul.f32 %v5257_v9, %v6707_v23 }
0x10fa   :  { %v3136_v8 = vpop.permute.xlu0 %3135 }
0x10fb   :  { %v3138_v51 = vmul.f32 %v5255_v4, %v3136_v8 }
0x10fd   :  { %3140 = vrot.lane.b32.xlu0 %v3138_v51, %s5838_s19 }
0x10ff   :  { %v3201_v10 = vpop.permute.xlu1 %3200 }
0x1100   :  { %v3203_v11 = vmul.f32 %v5257_v9, %v3201_v10 }
0x1102   :  { %3205 = vrot.lane.b32.xlu1 %v3203_v11, %s5838_s19 }
0x116f   :  { %v3141_v12 = vpop.permute.xlu0 %3140 }
0x1170   :  { %v6743_v48 = vadd.f32 %v3141_v12, %v3133_v53 }
0x1172   :  { %5258 = vtanh.f32 %v6743_v48 }
0x1174   :  { %v3206_v15 = vpop.permute.xlu1 %3205 }
0x1175   :  { %v6747_v18 = vadd.f32 %v3206_v15, %v3198_v14 }
0x1177   :  { %5260 = vtanh.f32 %v6747_v18 }
0x117c   :  { %v5259_v19 = vpop.eup %5258 }
0x117d   :  { %3146 = vrot.lane.b32.xlu0 %v5259_v19, %s5814_s24 }
0x1181   :  { %v5261_v20 = vpop.eup %5260 }
0x1182   :  { %3211 = vrot.lane.b32.xlu1 %v5261_v20, %s5814_s24 }
0x11ef   :  { %v3147_v21 = vpop.permute.xlu0 %3146 }
0x11f0   :  { %v3149_v22 = vmul.f32 %v5255_v4, %v3147_v21  ;;  %v6795_v21 = vld [vmem:[#allocation22] sm:$0xff]  }
0x11f2   :  { %v3216_v26 = vpack.c.bf16 %v3149_v22, %v3149_v22  ;;  %v6805_v22 = vld [vmem:[#allocation22 + $0x8] sm:$0xff]  }
0x11f4   :  { %3218 = vrot.lane.b32.xlu0 %v3216_v26, %s5838_s19  ;;  %v3212_v29 = vpop.permute.xlu1 %3211 }
0x11f5   :  { %v3214_v46 = vmul.f32 %v5257_v9, %v3212_v29 }
0x11f7   :  { %v3215_v24 = vpack.c.bf16 %v3214_v46, %v3214_v46 }
0x11f9   :  { %3264 = vrot.lane.b32.xlu1 %v3215_v24, %s5838_s19 }
0x1266   :  { %v3219_v23 = vpop.permute.xlu0 %3218 }
0x1267   :  { %4879 = vmatmul.mubr.msk.bf16.vlgmr.msra.gmra.mrb[72].mxu1 %vm2387_vm4, %v3219_v23 }
0x1268   :  { %4891 = vmatpush3.bf16.msra.mxu1 %v6541_v25  ;;  %4894 = vmatprep.mubr.msk.bf16.mxu1 %vm5836_vm3, %v5835_v5 }
0x1269   :  { %4892 = vmatprep.subr.bf16.mxu1 %v5835_v5 }
0x126b   :  { %v3265_v17 = vpop.permute.xlu1 %3264 }
0x126c   :  { %4893 = vmatpush3.bf16.msra.mxu1 %v6548_v13  ;;  %4887 = vmatmul.mubr.msk.bf16.vlgmr.msra.gmra.mrb[76].mxu0 %vm2387_vm4, %v3265_v17 }
0x126d   :  { %4906 = vmatprep.subr.bf16.mxu1 %v5835_v5  ;;  %4899 = vmatpush3.bf16.msra.mxu0 %v6579_v38 }
0x126e   :  { %4900 = vmatprep.subr.bf16.mxu0 %v5835_v5  ;;  %4902 = vmatprep.mubr.msk.bf16.mxu0 %vm5836_vm3, %v5835_v5 }
0x126f   :  { %4895 = vmatmul.mubr.msk.bf16.vlgmr.msra.gmra.mrb[76].mxu1 %vm2387_vm4, %v3265_v17 }
0x1270   :  { %4907 = vmatpush3.bf16.msra.mxu1 %v6581_v39  ;;  %4910 = vmatprep.mubr.msk.bf16.mxu1 %vm5836_vm3, %v5835_v5 }
0x1271   :  { %4908 = vmatprep.subr.bf16.mxu1 %v5835_v5  ;;  %4901 = vmatpush3.bf16.msra.mxu0 %v6585_v40 }
0x1272   :  { %4914 = vmatprep.subr.bf16.mxu0 %v5835_v5 }
0x1274   :  { %4909 = vmatpush3.bf16.msra.mxu1 %v6587_v41 }
0x1275   :  { %4922 = vmatprep.subr.bf16.mxu1 %v5835_v5 }
0x133a   :  { %v3257_v25 = vpop.f32.mrb[72].mxu1 }
0x133b   :  { %v4880_v13 = vpop.f32.mrb[73].mxu1 }
0x133c   :  { %v3260_v30 = vpop.f32.mrb[74].mxu1 }
0x133d   :  { %v4881_v31 = vpop.f32.mrb[75].mxu1 }
0x133f   :  { %v3303_v62 = vpop.f32.mrb[76].mxu0 }
0x1340   :  { %v3304_v32 = vadd.f32 %v3303_v62, %v3257_v25  ;;  %v4888_v33 = vpop.f32.mrb[77].mxu0 }
0x1341   :  { %v3306_v34 = vpop.f32.mrb[78].mxu0 }
0x1342   :  { %v3309_v36 = vadd.f32 %v6618_v56, %v3304_v32  ;;  %v3368_v27 = vpop.f32.mrb[76].mxu1  ;;  %v4889_v37 = vpop.f32.mrb[79].mxu0 }
0x1343   :  { %v3374_v42 = vadd.f32 %v3368_v27, %v6570_v3  ;;  %v4896_v43 = vpop.f32.mrb[77].mxu1 }
0x1344   :  { %5262 = vtanh.f32 %v3309_v36  ;;  %v3371_v44 = vpop.f32.mrb[78].mxu1  ;;  %v3310_v52 = vsub.f32 0.0, %v3309_v36 }
0x1345   :  { %5264 = vtanh.f32 %v3374_v42  ;;  %v4897_v47 = vpop.f32.mrb[79].mxu1  ;;  %v3375_v28 = vsub.f32 0.0, %v3374_v42 }
0x1346   :  { %v3311_v54 = vmul.f32 1.442695, %v3310_v52 }
0x1347   :  { %v3376_v57 = vmul.f32 1.442695, %v3375_v28 }
0x1348   :  { %5266 = vpow2.f32 %v3311_v54 }
0x1349   :  { %5268 = vpow2.f32 %v3376_v57 }
0x134e   :  { %v5263_v49 = vpop.eup %5262 }
0x134f   :  { %v5265_v50 = vpop.eup %5264  ;;  %3319 = vrot.lane.b32.xlu0 %v5263_v49, %s5814_s24 }
0x1350   :  { %3384 = vrot.lane.b32.xlu1 %v5265_v50, %s5814_s24 }
0x1352   :  { %v5267_v58 = vpop.eup %5266 }
0x1353   :  { %v5269_v60 = vpop.eup %5268  ;;  %v3313_v3 = vadd.f32 1.0, %v5267_v58 }
0x1354   :  { %v3378_v61 = vadd.f32 1.0, %v5269_v60 }
0x1355   :  { %5270 = vrcp.f32 %v3313_v3 }
0x1356   :  { %5272 = vrcp.f32 %v3378_v61 }
0x135f   :  { %v5271_v63 = vpop.eup %5270 }
0x1360   :  { %v5273_v6 = vpop.eup %5272  ;;  %v3317_v0 = vmul.f32 %v5271_v63, %v6743_v48 }
0x1361   :  { %v3382_v59 = vmul.f32 %v5273_v6, %v6747_v18 }
0x13c1   :  { %v3320_v2 = vpop.permute.xlu0 %3319 }
0x13c2   :  { %v3385_v7 = vpop.permute.xlu1 %3384  ;;  %v3322_v1 = vmul.f32 %v5271_v63, %v3320_v2 }
0x13c3   :  { %v3387_v35 = vmul.f32 %v5273_v6, %v3385_v7 }
0x13c4   :  { %3324 = vrot.lane.b32.xlu0 %v3322_v1, %s5838_s19 }
0x13c5   :  { %3389 = vrot.lane.b32.xlu1 %v3387_v35, %s5838_s19 }
0x1436   :  { %v3325_v4 = vpop.permute.xlu0 %3324 }
0x1437   :  { %v3390_v8 = vpop.permute.xlu1 %3389  ;;  %v6783_v51 = vadd.f32 %v3325_v4, %v3317_v0 }
0x1438   :  { %v6785_v9 = vadd.f32 %v3390_v8, %v3382_v59 }
0x1439   :  { %5274 = vtanh.f32 %v6783_v51 }
0x143a   :  { %5276 = vtanh.f32 %v6785_v9 }
0x1443   :  { %v5275_v10 = vpop.eup %5274 }
0x1444   :  { %v5277_v11 = vpop.eup %5276  ;;  %3330 = vrot.lane.b32.xlu0 %v5275_v10, %s5814_s24  ;;  %v5321_v10 = vld [vmem:[#allocation25] sm:$0xff]  }
0x1445   :  { %3395 = vrot.lane.b32.xlu1 %v5277_v11, %s5814_s24  ;;  %v5322_v11 = vld [vmem:[#allocation26 + $0x8] sm:$0xff]  }
0x14b6   :  { %v3331_v53 = vpop.permute.xlu0 %3330 }
0x14b7   :  { %v3396_v12 = vpop.permute.xlu1 %3395  ;;  %v3333_v48 = vmul.f32 %v5271_v63, %v3331_v53  ;;  %v5323_v53 = vld [vmem:[#allocation25 + $0x8] sm:$0xff]  }
0x14b8   :  { %v3398_v14 = vmul.f32 %v5273_v6, %v3396_v12 }
0x14b9   :  { %v3400_v15 = vpack.c.bf16 %v3333_v48, %v3333_v48 }
0x14ba   :  { %v3399_v18 = vpack.c.bf16 %v3398_v14, %v3398_v14 }
0x14bb   :  { %3402 = vrot.lane.b32.xlu0 %v3400_v15, %s5838_s19 }
0x14bc   :  { %3448 = vrot.lane.b32.xlu1 %v3399_v18, %s5838_s19 }
0x152d   :  { %v3403_v19 = vpop.permute.xlu0 %3402 }
0x152e   :  { %v3449_v20 = vpop.permute.xlu1 %3448  ;;  %4903 = vmatmul.mubr.msk.bf16.vlgmr.msra.gmra.mrb[80].mxu0 %vm2387_vm4, %v3403_v19 }
0x152f   :  { %4911 = vmatmul.mubr.msk.bf16.vlgmr.msra.gmra.mrb[80].mxu1 %vm2387_vm4, %v3449_v20  ;;  %4915 = vmatpush3.bf16.msra.mxu0 %v6795_v21 }
0x1530   :  { %4916 = vmatprep.subr.bf16.mxu0 %v5835_v5  ;;  %4918 = vmatprep.mubr.msk.bf16.mxu0 %vm5836_vm3, %v5835_v5 }
0x1531   :  { %4923 = vmatpush3.bf16.msra.mxu1 %v6579_v38  ;;  %4926 = vmatprep.mubr.msk.bf16.mxu1 %vm5836_vm3, %v5835_v5 }
0x1532   :  { %4924 = vmatprep.subr.bf16.mxu1 %v5835_v5 }
0x1533   :  { %4917 = vmatpush3.bf16.msra.mxu0 %v6805_v22 }
0x1534   :  { %4930 = vmatprep.subr.bf16.mxu0 %v5835_v5 }
0x1535   :  { %4925 = vmatpush3.bf16.msra.mxu1 %v6585_v40 }
0x1536   :  { %4919 = vmatmul.mubr.msk.bf16.vlgmr.msra.gmra.mrb[84].mxu0 %vm2387_vm4, %v3449_v20  ;;  %4938 = vmatprep.subr.bf16.mxu1 %v5835_v5 }
0x1537   :  { %4931 = vmatpush3.bf16.msra.mxu0 %v6581_v39  ;;  %4934 = vmatprep.mubr.msk.bf16.mxu0 %vm5836_vm3, %v5835_v5 }
0x1538   :  { %4932 = vmatprep.subr.bf16.mxu0 %v5835_v5 }
0x153b   :  { %4933 = vmatpush3.bf16.msra.mxu0 %v6587_v41 }
0x153c   :  { %4946 = vmatprep.subr.bf16.mxu0 %v5835_v5 }
0x1601   :  { %v3441_v38 = vpop.f32.mrb[80].mxu0 }
0x1602   :  { %v3487_v26 = vpop.f32.mrb[80].mxu1  ;;  %v4904_v29 = vpop.f32.mrb[81].mxu0 }
0x1603   :  { %v3488_v46 = vadd.f32 %v3487_v26, %v3441_v38  ;;  %v4912_v40 = vpop.f32.mrb[81].mxu1  ;;  %v3444_v24 = vpop.f32.mrb[82].mxu0 }
0x1604   :  { %v3490_v23 = vpop.f32.mrb[82].mxu1  ;;  %v4905_v17 = vpop.f32.mrb[83].mxu0 }
0x1605   :  { %v3493_v25 = vadd.f32 %v6618_v56, %v3488_v46  ;;  %v4913_v39 = vpop.f32.mrb[83].mxu1 }
0x1607   :  { %5278 = vtanh.f32 %v3493_v25  ;;  %v3494_v34 = vsub.f32 0.0, %v3493_v25 }
0x1609   :  { %v3552_v13 = vpop.f32.mrb[84].mxu0  ;;  %v3495_v36 = vmul.f32 1.442695, %v3494_v34 }
0x160a   :  { %v3558_v30 = vadd.f32 %v3552_v13, %v6564_v55  ;;  %v4920_v31 = vpop.f32.mrb[85].mxu0 }
0x160b   :  { %v3555_v62 = vpop.f32.mrb[86].mxu0 }
0x160c   :  { %5280 = vtanh.f32 %v3558_v30  ;;  %v4921_v41 = vpop.f32.mrb[87].mxu0  ;;  %v3559_v27 = vsub.f32 0.0, %v3558_v30 }
0x160d   :  { %5282 = vpow2.f32 %v3495_v36 }
0x160e   :  { %v3560_v37 = vmul.f32 1.442695, %v3559_v27 }
0x1610   :  { %5284 = vpow2.f32 %v3560_v37 }
0x1611   :  { %v5279_v32 = vpop.eup %5278 }
0x1612   :  { %3503 = vrot.lane.b32.xlu0 %v5279_v32, %s5814_s24 }
0x1616   :  { %v5281_v33 = vpop.eup %5280 }
0x1617   :  { %3568 = vrot.lane.b32.xlu1 %v5281_v33, %s5814_s24  ;;  %v5283_v42 = vpop.eup %5282 }
0x1618   :  { %v3497_v43 = vadd.f32 1.0, %v5283_v42 }
0x161a   :  { %v5285_v44 = vpop.eup %5284  ;;  %5286 = vrcp.f32 %v3497_v43 }
0x161b   :  { %v3562_v55 = vadd.f32 1.0, %v5285_v44 }
0x161d   :  { %5288 = vrcp.f32 %v3562_v55 }
0x1624   :  { %v5287_v47 = vpop.eup %5286 }
0x1625   :  { %v3501_v57 = vmul.f32 %v5287_v47, %v6783_v51 }
0x1627   :  { %v5289_v52 = vpop.eup %5288 }
0x1628   :  { %v3566_v3 = vmul.f32 %v5289_v52, %v6785_v9  ;;  %v5320_v9 = vld [vmem:[#allocation26] sm:$0xff]  }
0x1684   :  { %v3504_v49 = vpop.permute.xlu0 %3503 }
0x1685   :  { %v3506_v50 = vmul.f32 %v5287_v47, %v3504_v49 }
0x1687   :  { %3508 = vrot.lane.b32.xlu0 %v3506_v50, %s5838_s19 }
0x1689   :  { %v3569_v28 = vpop.permute.xlu1 %3568 }
0x168a   :  { %v3571_v54 = vmul.f32 %v5289_v52, %v3569_v28 }
0x168c   :  { %3573 = vrot.lane.b32.xlu1 %v3571_v54, %s5838_s19 }
0x16f9   :  { %v3509_v58 = vpop.permute.xlu0 %3508 }
0x16fa   :  { %v6825_v60 = vadd.f32 %v3509_v58, %v3501_v57 }
0x16fc   :  { %5290 = vtanh.f32 %v6825_v60 }
0x16fe   :  { %v3574_v61 = vpop.permute.xlu1 %3573 }
0x16ff   :  { %v6829_v63 = vadd.f32 %v3574_v61, %v3566_v3  ;;  %v5180_v3 = vld [vmem:[#allocation29] sm:$0xff]  }
0x1701   :  { %5292 = vtanh.f32 %v6829_v63 }
0x1706   :  { %v5291_v2 = vpop.eup %5290 }
0x1707   :  { %3514 = vrot.lane.b32.xlu0 %v5291_v2, %s5814_s24  ;;  %v5181_v2 = vld [vmem:[#allocation29 + $0x8] sm:$0xff]  }
0x170b   :  { %v5293_v6 = vpop.eup %5292 }
0x170c   :  { %3579 = vrot.lane.b32.xlu1 %v5293_v6, %s5814_s24  ;;  %v5182_v6 = vld [vmem:[#allocation29 + $0x10] sm:$0xff]  }
0x1779   :  { %v3515_v7 = vpop.permute.xlu0 %3514 }
0x177a   :  { %v3517_v1 = vmul.f32 %v5287_v47, %v3515_v7  ;;  %v5183_v7 = vld [vmem:[#allocation29 + $0x18] sm:$0xff]  }
0x177c   :  { %v3584_v35 = vpack.c.bf16 %v3517_v1, %v3517_v1  ;;  %v5184_v1 = vld [vmem:[#allocation29 + $0x20] sm:$0xff]  }
0x177e   :  { %3586 = vrot.lane.b32.xlu0 %v3584_v35, %s5838_s19  ;;  %v3580_v0 = vpop.permute.xlu1 %3579  ;;  %v5185_v35 = vld [vmem:[#allocation29 + $0x28] sm:$0xff]  }
0x177f   :  { %v3582_v59 = vmul.f32 %v5289_v52, %v3580_v0  ;;  %v4214_v0 = vld [vmem:[#allocation19] ss:$0 sm:$0xff] }
0x1781   :  { %v3583_v4 = vpack.c.bf16 %v3582_v59, %v3582_v59  ;;  %v5186_v59 = vld [vmem:[#allocation29 + $0x30] sm:$0xff]  }
0x1783   :  { %3632 = vrot.lane.b32.xlu1 %v3583_v4, %s5838_s19  ;;  %v2240_v4 = vadd.f32 %v4214_v0, %v6572_v16 }
0x17f0   :  { %v3587_v8 = vpop.permute.xlu0 %3586 }
0x17f1   :  { %4927 = vmatmul.mubr.msk.bf16.vlgmr.msra.gmra.mrb[84].mxu1 %vm2387_vm4, %v3587_v8  ;;  %v5187_v8 = vld [vmem:[#allocation29 + $0x38] sm:$0xff]  }
0x17f2   :  { %4939 = vmatpush3.bf16.msra.mxu1 %v6795_v21  ;;  %4942 = vmatprep.mubr.msk.bf16.mxu1 %vm5836_vm3, %v5835_v5 }
0x17f3   :  { %4940 = vmatprep.subr.bf16.mxu1 %v5835_v5 }
0x17f5   :  { %v3633_v51 = vpop.permute.xlu1 %3632 }
0x17f6   :  { %4941 = vmatpush3.bf16.msra.mxu1 %v6805_v22  ;;  %4935 = vmatmul.mubr.msk.bf16.vlgmr.msra.gmra.mrb[88].mxu0 %vm2387_vm4, %v3633_v51 }
0x17f7   :  { %4954 = vmatprep.subr.bf16.mxu1 %v5835_v5  ;;  %4947 = vmatpush3.bf16.msra.mxu0 %v5320_v9 }
0x17f8   :  { %4948 = vmatprep.subr.bf16.mxu0 %v5835_v5  ;;  %4950 = vmatprep.mubr.msk.bf16.mxu0 %vm5836_vm3, %v5835_v5 }
0x17f9   :  { %4943 = vmatmul.mubr.msk.bf16.vlgmr.msra.gmra.mrb[88].mxu1 %vm2387_vm4, %v3633_v51  ;;  %v2241_v51 = vmax.f32 %v2240_v4, 0.0 }
0x17fa   :  { %4955 = vmatpush3.bf16.msra.mxu1 %v5321_v10  ;;  %4958 = vmatprep.mubr.msk.bf16.mxu1 %vm5836_vm3, %v5835_v5 }
0x17fb   :  { %4956 = vmatprep.subr.bf16.mxu1 %v5835_v5  ;;  %4949 = vmatpush3.bf16.msra.mxu0 %v5322_v11  ;;  %v3886_v9 = vpack.c.bf16 %v2241_v51, %v2241_v51 }
0x17fc   :  { %4962 = vmatprep.subr.bf16.mxu0 %v5835_v5 }
0x17fe   :  { %4957 = vmatpush3.bf16.msra.mxu1 %v5323_v53 }
0x17ff   :  { %4970 = vmatprep.subr.bf16.mxu1 %v5835_v5 }
0x18c4   :  { %v3625_v12 = vpop.f32.mrb[84].mxu1 }
0x18c5   :  { %v4928_v48 = vpop.f32.mrb[85].mxu1 }
0x18c6   :  { %v3628_v14 = vpop.f32.mrb[86].mxu1 }
0x18c7   :  { %v4929_v15 = vpop.f32.mrb[87].mxu1 }
0x18c9   :  { %v3671_v18 = vpop.f32.mrb[88].mxu0 }
0x18ca   :  { %v3672_v19 = vadd.f32 %v3671_v18, %v3625_v12  ;;  %v4936_v20 = vpop.f32.mrb[89].mxu0 }
0x18cb   :  { %v3674_v21 = vpop.f32.mrb[90].mxu0 }
0x18cc   :  { %v3677_v22 = vadd.f32 %v6618_v56, %v3672_v19  ;;  %v3736_v38 = vpop.f32.mrb[88].mxu1  ;;  %v4937_v26 = vpop.f32.mrb[91].mxu0  ;;  %v5324_v19 = vld [vmem:[#allocation28] ss:$0 sm:$0xff] }
0x18cd   :  { %v3742_v29 = vadd.f32 %v3736_v38, %v6568_v45  ;;  %v4944_v46 = vpop.f32.mrb[89].mxu1 }
0x18ce   :  { %5294 = vtanh.f32 %v3677_v22  ;;  %v3739_v40 = vpop.f32.mrb[90].mxu1  ;;  %v3678_v25 = vsub.f32 0.0, %v3677_v22 }
0x18cf   :  { %5296 = vtanh.f32 %v3742_v29  ;;  %v4945_v24 = vpop.f32.mrb[91].mxu1  ;;  %v3743_v39 = vsub.f32 0.0, %v3742_v29 }
0x18d0   :  { %v3679_v13 = vmul.f32 1.442695, %v3678_v25 }
0x18d1   :  { %v3744_v30 = vmul.f32 1.442695, %v3743_v39 }
0x18d2   :  { %5298 = vpow2.f32 %v3679_v13 }
0x18d3   :  { %5300 = vpow2.f32 %v3744_v30 }
0x18d8   :  { %v5295_v23 = vpop.eup %5294 }
0x18d9   :  { %v5297_v17 = vpop.eup %5296  ;;  %3687 = vrot.lane.b32.xlu0 %v5295_v23, %s5814_s24 }
0x18da   :  { %3752 = vrot.lane.b32.xlu1 %v5297_v17, %s5814_s24 }
0x18dc   :  { %v5299_v56 = vpop.eup %5298 }
0x18dd   :  { %v5301_v31 = vpop.eup %5300  ;;  %v3681_v45 = vadd.f32 1.0, %v5299_v56 }
0x18de   :  { %v3746_v62 = vadd.f32 1.0, %v5301_v31  ;;  %v5188_v31 = vld [vmem:[#allocation31] sm:$0xff]  }
0x18df   :  { %5302 = vrcp.f32 %v3681_v45  ;;  %v5189_v45 = vld [vmem:[#allocation31 + $0x8] sm:$0xff]  }
0x18e0   :  { %5304 = vrcp.f32 %v3746_v62 }
0x18e9   :  { %v5303_v41 = vpop.eup %5302 }
0x18ea   :  { %v5305_v33 = vpop.eup %5304  ;;  %v3685_v37 = vmul.f32 %v5303_v41, %v6825_v60 }
0x18eb   :  { %v3750_v42 = vmul.f32 %v5305_v33, %v6829_v63 }
0x194b   :  { %v3688_v32 = vpop.permute.xlu0 %3687 }
0x194c   :  { %v3753_v34 = vpop.permute.xlu1 %3752  ;;  %v3690_v36 = vmul.f32 %v5303_v41, %v3688_v32 }
0x194d   :  { %v3755_v27 = vmul.f32 %v5305_v33, %v3753_v34 }
0x194e   :  { %3692 = vrot.lane.b32.xlu0 %v3690_v36, %s5838_s19 }
0x194f   :  { %3757 = vrot.lane.b32.xlu1 %v3755_v27, %s5838_s19  ;;  %v4264_v27 = vld [vmem:[#allocation32] ss:$0 sm:$0xff] }
0x19c0   :  { %v3693_v43 = vpop.permute.xlu0 %3692 }
0x19c1   :  { %v3758_v44 = vpop.permute.xlu1 %3757  ;;  %v6861_v55 = vadd.f32 %v3693_v43, %v3685_v37 }
0x19c2   :  { %v3760_v47 = vadd.f32 %v3758_v44, %v3750_v42 }
0x19c3   :  { %5306 = vtanh.f32 %v6861_v55 }
0x19c4   :  { %5308 = vtanh.f32 %v3760_v47 }
0x19cd   :  { %v5307_v49 = vpop.eup %5306 }
0x19ce   :  { %v5309_v50 = vpop.eup %5308  ;;  %3698 = vrot.lane.b32.xlu0 %v5307_v49, %s5814_s24 }
0x19cf   :  { %3763 = vrot.lane.b32.xlu1 %v5309_v50, %s5814_s24 }
0x1a40   :  { %v3699_v52 = vpop.permute.xlu0 %3698 }
0x1a41   :  { %v3764_v28 = vpop.permute.xlu1 %3763  ;;  %v3701_v54 = vmul.f32 %v5303_v41, %v3699_v52 }
0x1a42   :  { %v3766_v57 = vmul.f32 %v5305_v33, %v3764_v28 }
0x1a43   :  { %v3768_v58 = vpack.c.bf16 %v3701_v54, %v3701_v54 }
0x1a44   :  { %v3767_v60 = vpack.c.bf16 %v3766_v57, %v3766_v57 }
0x1a45   :  { %3770 = vrot.lane.b32.xlu0 %v3768_v58, %s5838_s19 }
0x1a46   :  { %3816 = vrot.lane.b32.xlu1 %v3767_v60, %s5838_s19 }
0x1ab7   :  { %v3771_v61 = vpop.permute.xlu0 %3770 }
0x1ab8   :  { %v3817_v63 = vpop.permute.xlu1 %3816  ;;  %4951 = vmatmul.mubr.msk.bf16.vlgmr.msra.gmra.mrb[92].mxu0 %vm2387_vm4, %v3771_v61 }
0x1ab9   :  { %4959 = vmatmul.mubr.msk.bf16.vlgmr.msra.gmra.mrb[92].mxu1 %vm2387_vm4, %v3817_v63  ;;  %4966 = vmatprep.mubr.msk.bf16.mxu0 %vm5836_vm3, %v5835_v5 }
0x1aba   :  { %4971 = vmatpush3.bf16.msra.mxu1 %v5180_v3  ;;  %4986 = vmatprep.mubr.msk.bf16.mxu1 %vm5836_vm3, %v5835_v5 }
0x1abb   :  { %4972 = vmatprep.subr.bf16.mxu1 %v5835_v5  ;;  %4963 = vmatpush3.bf16.msra.mxu0 %v5188_v31 }
0x1abc   :  { %4964 = vmatprep.subr.bf16.mxu0 %v5835_v5 }
0x1abe   :  { %4973 = vmatpush3.bf16.msra.mxu1 %v5181_v2 }
0x1abf   :  { %4974 = vmatprep.subr.bf16.mxu1 %v5835_v5  ;;  %4965 = vmatpush3.bf16.msra.mxu0 %v5189_v45 }
0x1ac2   :  { %4975 = vmatpush3.bf16.msra.mxu1 %v5182_v6 }
0x1ac3   :  { %4976 = vmatprep.subr.bf16.mxu1 %v5835_v5 }
0x1ac6   :  { %4977 = vmatpush3.bf16.msra.mxu1 %v5183_v7 }
0x1ac7   :  { %4978 = vmatprep.subr.bf16.mxu1 %v5835_v5 }
0x1aca   :  { %4979 = vmatpush3.bf16.msra.mxu1 %v5184_v1 }
0x1acb   :  { %4980 = vmatprep.subr.bf16.mxu1 %v5835_v5 }
0x1ace   :  { %4981 = vmatpush3.bf16.msra.mxu1 %v5185_v35 }
0x1acf   :  { %4982 = vmatprep.subr.bf16.mxu1 %v5835_v5 }
0x1ad2   :  { %4983 = vmatpush3.bf16.msra.mxu1 %v5186_v59 }
0x1ad3   :  { %4984 = vmatprep.subr.bf16.mxu1 %v5835_v5 }
0x1ad6   :  { %4985 = vmatpush3.bf16.msra.mxu1 %v5187_v8 }
0x1ad9   :  { %4987 = vmatmul.mubr.bf16.vlgmr.msra.gmra.mrb[96].mxu1 %v3886_v9 }
0x1b8b   :  { %v3809_v10 = vpop.f32.mrb[92].mxu0 }
0x1b8c   :  { %v3855_v11 = vpop.f32.mrb[92].mxu1  ;;  %v4952_v53 = vpop.f32.mrb[93].mxu0 }
0x1b8d   :  { %v3856_v12 = vadd.f32 %v3855_v11, %v3809_v10  ;;  %v4960_v48 = vpop.f32.mrb[93].mxu1  ;;  %v3812_v14 = vpop.f32.mrb[94].mxu0 }
0x1b8e   :  { %v3858_v15 = vpop.f32.mrb[94].mxu1  ;;  %v4953_v18 = vpop.f32.mrb[95].mxu0 }
0x1b8f   :  { %v3861_v16 = vadd.f32 %v5324_v19, %v3856_v12  ;;  %v4961_v20 = vpop.f32.mrb[95].mxu1 }
0x1b91   :  { %5310 = vtanh.f32 %v3861_v16  ;;  %v3862_v46 = vsub.f32 0.0, %v3861_v16 }
0x1b93   :  { %v3863_v40 = vmul.f32 1.442695, %v3862_v46 }
0x1b95   :  { %5312 = vpow2.f32 %v3863_v40 }
0x1b9b   :  { %v5311_v21 = vpop.eup %5310 }
0x1b9c   :  { %3871 = vrot.lane.b32.xlu0 %v5311_v21, %s5814_s24 }
0x1b9f   :  { %v5313_v24 = vpop.eup %5312 }
0x1ba0   :  { %v3865_v23 = vadd.f32 1.0, %v5313_v24 }
0x1ba2   :  { %5314 = vrcp.f32 %v3865_v23 }
0x1bac   :  { %v4048_v22 = vpop.f32.mrb[96].mxu1  ;;  %v5315_v17 = vpop.eup %5314 }
0x1bad   :  { %v4988_v38 = vpop.f32.mrb[97].mxu1  ;;  %v3869_v13 = vmul.f32 %v5315_v17, %v6861_v55 }
0x1bae   :  { %v4051_v26 = vpop.f32.mrb[98].mxu1 }
0x1baf   :  { %v4989_v29 = vpop.f32.mrb[99].mxu1 }
0x1c0e   :  { %v3872_v25 = vpop.permute.xlu0 %3871 }
0x1c0f   :  { %v3874_v39 = vmul.f32 %v5315_v17, %v3872_v25 }
0x1c11   :  { %3876 = vrot.lane.b32.xlu1 %v3874_v39, %s5838_s19 }
0x1c83   :  { %v3877_v30 = vpop.permute.xlu1 %3876 }
0x1c84   :  { %v3879_v56 = vadd.f32 %v3877_v30, %v3869_v13 }
0x1c86   :  { %5316 = vtanh.f32 %v3879_v56 }
0x1c90   :  { %v5317_v62 = vpop.eup %5316 }
0x1c91   :  { %3882 = vrot.lane.b32.xlu0 %v5317_v62, %s5814_s24  ;;  %s5765_s24 = scalar_lea.vmem %s4070_s30, 128 }
0x1c92   :  { %p5766_p6 = scmp.ne.s32.totalorder %s4070_s30, %s5765_s24  ;;  %p5771_p8 = scmp.lt.s32.totalorder %s5765_s24, %s5765_s24 }
0x1c94   :  { %p5772_p9 = por %p5771_p8, %p5770_p7 }
0x1c96   :  { %p5773_p10 = pnand %p5772_p9, %p5766_p6 }
0x1d03   :  { %v3883_v41 = vpop.permute.xlu0 %3882 }
0x1d04   :  { %v3885_v32 = vmul.f32 %v5315_v17, %v3883_v41 }
0x1d06   :  { %v3903_v33 = vpack.c.bf16 %v3885_v32, %v3885_v32 }
0x1d08   :  { %3909 = vrot.lane.b32.xlu1 %v3903_v33, %s5838_s19 }
0x1d7a   :  { %v3910_v34 = vpop.permute.xlu1 %3909 }
0x1d7b   :  { %4967 = vmatmul.mubr.msk.bf16.vlgmr.msra.gmra.mrb[96].mxu0 %vm2387_vm4, %v3910_v34 }
0x1e4e   :  { %v3960_v36 = vpop.f32.mrb[96].mxu0 }
0x1e4f   :  { %v4049_v37 = vadd.f32 %v4048_v22, %v3960_v36  ;;  %v4968_v42 = vpop.f32.mrb[97].mxu0 }
0x1e50   :  { %v3963_v43 = vpop.f32.mrb[98].mxu0 }
0x1e51   :  { %v4061_v5 = vadd.f32 %v4264_v27, %v4049_v37  ;;  %v4969_v44 = vpop.f32.mrb[99].mxu0 }
0x1e53   :  { %4062 = vst [vmem:[#allocation34] sm:$0xff] %v4061_v5 }
0x1e54   :  { %5776 = shalt.err (!%p5773_p10)
}
0x1e55   :  { %s6939_s0 = sld [smem:[#allocation52_spill]] }
0x1e5b   :  { %s5777_s28 = scalar_lea.hbm %s6939_s0, 128 }
0x1e5c   :  { %p5778_p11 = scmp.ne.s32.totalorder %s6939_s0, %s5777_s28  ;;  %p5781_p12 = scmp.lt.u32.totalorder %s5777_s28, %s6939_s0 }
0x1e5e   :  { %p5783_p13 = pnand %p5781_p12, %p5778_p11 }
0x1e60   :  { %5786 = shalt.err (!%p5783_p13)
}
0x1e61   :  { %4072 = dma.vmem_to_hbm [thread:$0]  %s4070_s30, 128, %s6939_s0, [#allocation4]  }
0x1e62   :  { %5809 = dma.done.wait [#allocation4], 128  }
0x1e63   :  { %5810 = vsyncadd [#allocation4], 4294967168 }
0x1e64   :  { %4076 = vsyncpa [#allocation3], 1 }
0x1e65   :  { %4077 = vsyncpa [#allocation6], 1 }
0x1e66   :  { %4078 = vsyncpa [#allocation9], 1 }
0x1e67   :  { %4079 = vsyncpa [#allocation12], 1 }
0x1e68   :  { %4080 = vsyncpa [#allocation15], 1 }
0x1e69   :  { %4081 = vsyncpa [#allocation18], 1 }
0x1e6a   :  { %4082 = vsyncpa [#allocation21], 1 }
0x1e6b   :  { %4083 = vsyncpa [#allocation24], 1 }
0x1e6c   :  { %4084 = vsyncpa [#allocation27], 1 }
0x1e6d   :  { %4085 = vsyncpa [#allocation30], 1 }
0x1e6e   :  { %4086 = vsyncpa [#allocation33], 1 }
0x1e6f   :  { %4087 = vsyncpa [#allocation4], 1 }

</bundles_post_ra>
